<compile_context>
chip_gen: v5e
topology: v5e:2x2
jax: 0.10.0
libtpu: 0.0.40
codegen_flags: <defaults>
</compile_context>

<pallas_src>
import jax
import jax.numpy as jnp
from jax.experimental import pallas as pl
from jax.experimental.pallas import tpu as pltpu


def conv1x1_kernel(x_ref, w_ref, o_ref):
    # x_ref: (1, Cin, HW) f32   — cast to bf16 in-register for the MXU.
    # w_ref: (Cout, Cin)  bf16  — pre-cast at parameter load.
    # o_ref: (1, Cout, HW) f32  — f32 accumulation, f32 writeback.
    x_bf16 = x_ref[0].astype(jnp.bfloat16)
    o_ref[0] = jnp.dot(
        w_ref[...], x_bf16, preferred_element_type=jnp.float32
    ).astype(o_ref.dtype)


def prepare_weight(w_oihw: jax.Array) -> jax.Array:
    """One-time parameter prep: (Cout, Cin, 1, 1) f32 -> (Cout, Cin) bf16."""
    cout, cin = w_oihw.shape[0], w_oihw.shape[1]
    return w_oihw.reshape(cout, cin).astype(jnp.bfloat16)


def conv2d_1x1(x_nchw: jax.Array, w2d_bf16: jax.Array) -> jax.Array:
    """1x1 stride-1 conv, no bias. x: (N, Cin, H, W) f32, w2d: (Cout, Cin) bf16."""
    n, cin, h, w = x_nchw.shape
    cout = w2d_bf16.shape[0]
    hw = h * w

    # Free reshape only (no transpose, no dtype convert -> no extra HBM pass).
    x3d = x_nchw.reshape(n, cin, hw)

    cost = pl.CostEstimate(
        flops=2 * n * hw * cin * cout,
        bytes_accessed=n * cin * hw * 4 + cout * cin * 2 + n * cout * hw * 4,
        transcendentals=0,
    )

    out3d = pl.pallas_call(
        conv1x1_kernel,
        out_shape=jax.ShapeDtypeStruct((n, cout, hw), jnp.float32),
        grid=(n,),
        in_specs=[
            pl.BlockSpec(
                (1, cin, hw),
                lambda i: (i, 0, 0),
                memory_space=pltpu.MemorySpace.VMEM,
            ),
            pl.BlockSpec(
                (cout, cin),
                lambda i: (0, 0),
                memory_space=pltpu.MemorySpace.VMEM,
            ),
        ],
        out_specs=pl.BlockSpec(
            (1, cout, hw),
            lambda i: (i, 0, 0),
            memory_space=pltpu.MemorySpace.VMEM,
        ),
        compiler_params=pltpu.CompilerParams(
            dimension_semantics=("parallel",),
        ),
        cost_estimate=cost,
    )(x3d, w2d_bf16)

    # (N, Cout, H*W) -> (N, Cout, H, W): free reshape, no transpose.
    return out3d.reshape(n, cout, h, w)


if __name__ == "__main__":
    key = jax.random.PRNGKey(0)
    kx, kw = jax.random.split(key)

    # Shapes from the PyTorch module: x402 = randn(1, 1440, 14, 14),
    # Conv2d(1440, 128, kernel_size=1, stride=1, bias=False).
    N, CIN, H, W = 1, 1440, 14, 14
    COUT = 128

    x = jax.random.normal(kx, (N, CIN, H, W), dtype=jnp.float32)
    # Deterministic synthetic weights (Kaiming-ish scale, not a checkpoint).
    weight = jax.random.normal(kw, (COUT, CIN, 1, 1), dtype=jnp.float32) * (
        1.0 / jnp.sqrt(CIN)
    )

    # One-time parameter prep (hoisted out of the per-call path).
    w2d_bf16 = prepare_weight(weight)

    y = conv2d_1x1(x, w2d_bf16)
    y = jax.block_until_ready(y)

    # Reference check in plain JAX (f32); tolerance covers bf16 MXU inputs.
    x2d = jnp.transpose(x, (0, 2, 3, 1)).reshape(-1, CIN)
    wref = weight.reshape(COUT, CIN).T
    ref = jnp.transpose((x2d @ wref).reshape(N, H, W, COUT), (0, 3, 1, 2))

    assert y.shape == (N, COUT, H, W), y.shape
    assert jnp.allclose(y, ref, atol=3e-2, rtol=3e-2), float(
        jnp.max(jnp.abs(y - ref))
    )

    print("KERNEL_OK")
</pallas_src>

<mosaic_0001>
module attributes {stable_mosaic.version = 11 : i64} {
  func.func @conv1x1_kernel(%arg0: i32, %arg1: memref<1x1440x196xf32, #tpu.memory_space<vmem>>, %arg2: memref<128x1440xbf16, #tpu.memory_space<vmem>>, %arg3: memref<1x128x196xf32, #tpu.memory_space<vmem>>) attributes {dimension_semantics = [#tpu.dimension_semantics<parallel>], iteration_bounds = array<i64: 1>, scalar_prefetch = 0 : i64, scratch_operands = 0 : i64, tpu.core_type = #tpu.core_type<tc>, window_params = [{transform_indices = @transform_0, window_bounds = array<i64: 1, 1440, 196>}, {pipeline_mode = #tpu.pipeline_mode<synchronous>, transform_indices = @transform_1, window_bounds = array<i64: 128, 1440>}, {transform_indices = @transform_2, window_bounds = array<i64: 1, 128, 196>}]} {
    %c0 = arith.constant 0 : index
    %c0_0 = arith.constant 0 : index
    %c0_1 = arith.constant 0 : index
    %0 = vector.load %arg1[%c0, %c0_0, %c0_1] : memref<1x1440x196xf32, #tpu.memory_space<vmem>>, vector<1x1440x196xf32>
    %1 = vector.shape_cast %0 : vector<1x1440x196xf32> to vector<1440x196xf32>
    %2 = arith.truncf %1 : vector<1440x196xf32> to vector<1440x196xbf16>
    %c0_2 = arith.constant 0 : index
    %c0_3 = arith.constant 0 : index
    %3 = vector.load %arg2[%c0_2, %c0_3] : memref<128x1440xbf16, #tpu.memory_space<vmem>>, vector<128x1440xbf16>
    %cst = arith.constant dense<0.000000e+00> : vector<128x196xf32>
    %4 = tpu.matmul %3, %2, %cst {dimension_numbers = #tpu.dot_dimension_numbers<[1], [0], [0], [1], [0, 0, 1, 1], [], []>} : vector<128x1440xbf16>, vector<1440x196xbf16>, vector<128x196xf32> -> vector<128x196xf32>
    %c0_4 = arith.constant 0 : index
    %c0_5 = arith.constant 0 : index
    %c0_6 = arith.constant 0 : index
    %5 = vector.load %arg3[%c0_4, %c0_5, %c0_6] : memref<1x128x196xf32, #tpu.memory_space<vmem>>, vector<1x128x196xf32>
    %6 = vector.shape_cast %5 : vector<1x128x196xf32> to vector<128x196xf32>
    %7 = vector.shape_cast %4 : vector<128x196xf32> to vector<1x128x196xf32>
    tpu.vector_store %arg3[%c0_4, %c0_5, %c0_6], %7 {strides = array<i32>} : memref<1x128x196xf32, #tpu.memory_space<vmem>>, vector<1x128x196xf32>,
    return
  }
  func.func @transform_0(%arg0: i32) -> (i32, i32, i32) {
    %c0_i32 = arith.constant 0 : i32
    %c0_i32_0 = arith.constant 0 : i32
    %c0_i32_1 = arith.constant 0 : i32
    return %arg0, %c0_i32, %c0_i32_0 : i32, i32, i32
  }
  func.func @transform_1(%arg0: i32) -> (i32, i32) {
    %c0_i32 = arith.constant 0 : i32
    %c0_i32_0 = arith.constant 0 : i32
    %c0_i32_1 = arith.constant 0 : i32
    return %c0_i32, %c0_i32_0 : i32, i32
  }
  func.func @transform_2(%arg0: i32) -> (i32, i32, i32) {
    %c0_i32 = arith.constant 0 : i32
    %c0_i32_0 = arith.constant 0 : i32
    %c0_i32_1 = arith.constant 0 : i32
    return %arg0, %c0_i32, %c0_i32_0 : i32, i32, i32
  }
}

</mosaic_0001>

<bundles_post_ra>
// kernel: tpu_custom_call.1
= control target key start
LH: loop header
LB: loop body
LE: loop exit
PB: predicated region body
PF: predicated region fallthrough
CT: control target
= control target key end

     0   :  { %vm1120_vm0 = vcmask 261120   ;;  %vm2322_vm1 = vcmask 556032   ;;  %s5229_s0 = inlined_call_operand.vmem [shape: f32[1,1440,196], index: 0, kind: input, shape index: {}]   ;;  %s5230_s1 = inlined_call_operand.vmem [shape: bf16[128,1440], index: 1, kind: input, shape index: {}]   ;;  %s5231_s2 = inlined_call_operand.vmem [shape: f32[1,128,196], index: 2, kind: output, shape index: {}]  }
   0x1   :  { %v40_v0 = vld [vmem:[%s5229_s0 + $0xe0] sm:$0xff]  ;;  %v42_v1 = vld [vmem:[%s5229_s0 + $0xf0] sm:$0xff] }
   0x2   :  { %v72_v2 = vld [vmem:[%s5229_s0 + $0x1e0] sm:$0xff]  ;;  %v386_v3 = vpack.c.bf16 %v42_v1, %v40_v0  ;;  %v74_v4 = vld [vmem:[%s5229_s0 + $0x1f0] sm:$0xff] }
   0x3   :  { %v104_v5 = vld [vmem:[%s5229_s0 + $0x2e0] sm:$0xff]  ;;  %v106_v6 = vld [vmem:[%s5229_s0 + $0x2f0] sm:$0xff]  ;;  %v402_v7 = vpack.c.bf16 %v74_v4, %v72_v2 }
   0x4   :  { %v418_v8 = vpack.c.bf16 %v106_v6, %v104_v5  ;;  %v136_v9 = vld [vmem:[%s5229_s0 + $0x3e0] sm:$0xff]  ;;  %v138_v10 = vld [vmem:[%s5229_s0 + $0x3f0] sm:$0xff]  ;;  %1145 = vmatpush.bf16.msra.mxu0 %v386_v3 }
   0x5   :  { %v36_v11 = vld [vmem:[%s5229_s0 + $0xc0] sm:$0xff]  ;;  %v434_v12 = vpack.c.bf16 %v138_v10, %v136_v9  ;;  %v38_v13 = vld [vmem:[%s5229_s0 + $0xd0] sm:$0xff]  ;;  %1194 = vmatpush.bf16.msra.mxu1 %v402_v7 }
   0x6   :  { %v68_v14 = vld [vmem:[%s5229_s0 + $0x1c0] sm:$0xff]  ;;  %v70_v15 = vld [vmem:[%s5229_s0 + $0x1d0] sm:$0xff]  ;;  %1243 = vmatpush.bf16.msra.mxu2 %v418_v8  ;;  %v384_v16 = vpack.c.bf16 %v38_v13, %v36_v11 }
   0x7   :  { %v400_v17 = vpack.c.bf16 %v70_v15, %v68_v14  ;;  %v100_v18 = vld [vmem:[%s5229_s0 + $0x2c0] sm:$0xff]  ;;  %v102_v19 = vld [vmem:[%s5229_s0 + $0x2d0] sm:$0xff]  ;;  %1292 = vmatpush.bf16.msra.mxu3 %v434_v12 }
   0x8   :  { %v132_v20 = vld [vmem:[%s5229_s0 + $0x3c0] sm:$0xff]  ;;  %v416_v21 = vpack.c.bf16 %v102_v19, %v100_v18  ;;  %v134_v22 = vld [vmem:[%s5229_s0 + $0x3d0] sm:$0xff]  ;;  %1146 = vmatpush.bf16.msra.mxu0 %v384_v16 }
   0x9   :  { %v32_v23 = vld [vmem:[%s5229_s0 + $0xa0] sm:$0xff]  ;;  %v34_v24 = vld [vmem:[%s5229_s0 + $0xb0] sm:$0xff]  ;;  %v432_v25 = vpack.c.bf16 %v134_v22, %v132_v20  ;;  %1195 = vmatpush.bf16.msra.mxu1 %v400_v17 }
   0xa   :  { %v64_v26 = vld [vmem:[%s5229_s0 + $0x1a0] sm:$0xff]  ;;  %v66_v27 = vld [vmem:[%s5229_s0 + $0x1b0] sm:$0xff]  ;;  %v382_v29 = vpack.c.bf16 %v34_v24, %v32_v23  ;;  %1244 = vmatpush.bf16.msra.mxu2 %v416_v21 }
   0xb   :  { %v96_v28 = vld [vmem:[%s5229_s0 + $0x2a0] sm:$0xff]  ;;  %v98_v30 = vld [vmem:[%s5229_s0 + $0x2b0] sm:$0xff]  ;;  %v398_v33 = vpack.c.bf16 %v66_v27, %v64_v26  ;;  %1293 = vmatpush.bf16.msra.mxu3 %v432_v25 }
   0xc   :  { %v128_v31 = vld [vmem:[%s5229_s0 + $0x3a0] sm:$0xff]  ;;  %v130_v32 = vld [vmem:[%s5229_s0 + $0x3b0] sm:$0xff]  ;;  %v414_v34 = vpack.c.bf16 %v98_v30, %v96_v28  ;;  %1147 = vmatpush.bf16.msra.mxu0 %v382_v29 }
   0xd   :  { %v28_v35 = vld [vmem:[%s5229_s0 + $0x80] sm:$0xff]  ;;  %v30_v36 = vld [vmem:[%s5229_s0 + $0x90] sm:$0xff]  ;;  %v430_v38 = vpack.c.bf16 %v130_v32, %v128_v31  ;;  %1196 = vmatpush.bf16.msra.mxu1 %v398_v33 }
   0xe   :  { %v60_v37 = vld [vmem:[%s5229_s0 + $0x180] sm:$0xff]  ;;  %v62_v39 = vld [vmem:[%s5229_s0 + $0x190] sm:$0xff]  ;;  %v380_v44 = vpack.c.bf16 %v30_v36, %v28_v35  ;;  %1245 = vmatpush.bf16.msra.mxu2 %v414_v34  ;;  %v2368_v35 = vld [vmem:[%s5230_s1 + $0x8] sm:$0xf] }
   0xf   :  { %v92_v40 = vld [vmem:[%s5229_s0 + $0x280] sm:$0xff]  ;;  %v94_v41 = vld [vmem:[%s5229_s0 + $0x290] sm:$0xff]  ;;  %v396_v45 = vpack.c.bf16 %v62_v39, %v60_v37  ;;  %1294 = vmatpush.bf16.msra.mxu3 %v430_v38 }
  0x10   :  { %v124_v42 = vld [vmem:[%s5229_s0 + $0x380] sm:$0xff]  ;;  %v126_v43 = vld [vmem:[%s5229_s0 + $0x390] sm:$0xff]  ;;  %v412_v46 = vpack.c.bf16 %v94_v41, %v92_v40  ;;  %1148 = vmatpush.bf16.msra.mxu0 %v380_v44  ;;  %v2765_v40 = vld [vmem:[%s5230_s1 + $0x34] sm:$0xf0] }
  0x11   :  { %v24_v47 = vld [vmem:[%s5229_s0 + $0x60] sm:$0xff]  ;;  %v26_v48 = vld [vmem:[%s5229_s0 + $0x70] sm:$0xff]  ;;  %v428_v50 = vpack.c.bf16 %v126_v43, %v124_v42  ;;  %1197 = vmatpush.bf16.msra.mxu1 %v396_v45  ;;  %v2759_v41 = vld [vmem:[%s5230_s1 + $0xc] sm:$0xf] }
  0x12   :  { %v56_v49 = vld [vmem:[%s5229_s0 + $0x160] sm:$0xff]  ;;  %v58_v51 = vld [vmem:[%s5229_s0 + $0x170] sm:$0xff]  ;;  %v378_v56 = vpack.c.bf16 %v26_v48, %v24_v47  ;;  %1246 = vmatpush.bf16.msra.mxu2 %v412_v46  ;;  %v2370_v42 = vld [vmem:[%s5230_s1 + $0x38] sm:$0xf0] }
  0x13   :  { %v88_v52 = vld [vmem:[%s5229_s0 + $0x260] sm:$0xff]  ;;  %v90_v53 = vld [vmem:[%s5229_s0 + $0x270] sm:$0xff]  ;;  %v394_v57 = vpack.c.bf16 %v58_v51, %v56_v49  ;;  %1295 = vmatpush.bf16.msra.mxu3 %v428_v50 }
  0x14   :  { %v120_v54 = vld [vmem:[%s5229_s0 + $0x360] sm:$0xff]  ;;  %v122_v55 = vld [vmem:[%s5229_s0 + $0x370] sm:$0xff]  ;;  %v410_v58 = vpack.c.bf16 %v90_v53, %v88_v52  ;;  %1149 = vmatpush.bf16.msra.mxu0 %v378_v56 }
  0x15   :  { %v20_v59 = vld [vmem:[%s5229_s0 + $0x40] sm:$0xff]  ;;  %v22_v60 = vld [vmem:[%s5229_s0 + $0x50] sm:$0xff]  ;;  %v426_v62 = vpack.c.bf16 %v122_v55, %v120_v54  ;;  %1198 = vmatpush.bf16.msra.mxu1 %v394_v57  ;;  %v3119_v54 = vor.u32 %v2765_v40, %v2368_v35  ;;  %v3127_v57 = vor.u32 %v2759_v41, %v2370_v42 }
  0x16   :  { %v52_v61 = vld [vmem:[%s5229_s0 + $0x140] sm:$0xff]  ;;  %v54_v63 = vld [vmem:[%s5229_s0 + $0x150] sm:$0xff]  ;;  %v376_v4 = vpack.c.bf16 %v22_v60, %v20_v59  ;;  %1247 = vmatpush.bf16.msra.mxu2 %v410_v58 }
  0x17   :  { %v84_v0 = vld [vmem:[%s5229_s0 + $0x240] sm:$0xff]  ;;  %v86_v1 = vld [vmem:[%s5229_s0 + $0x250] sm:$0xff]  ;;  %v392_v5 = vpack.c.bf16 %v54_v63, %v52_v61  ;;  %1296 = vmatpush.bf16.msra.mxu3 %v426_v62 }
  0x18   :  { %v116_v2 = vld [vmem:[%s5229_s0 + $0x340] sm:$0xff]  ;;  %v118_v3 = vld [vmem:[%s5229_s0 + $0x350] sm:$0xff]  ;;  %v408_v6 = vpack.c.bf16 %v86_v1, %v84_v0  ;;  %1150 = vmatpush.bf16.msra.mxu0 %v376_v4 }
  0x19   :  { %v16_v7 = vld [vmem:[%s5229_s0 + $0x20] sm:$0xff]  ;;  %v18_v8 = vld [vmem:[%s5229_s0 + $0x30] sm:$0xff]  ;;  %v424_v10 = vpack.c.bf16 %v118_v3, %v116_v2  ;;  %1199 = vmatpush.bf16.msra.mxu1 %v392_v5 }
  0x1a   :  { %v48_v9 = vld [vmem:[%s5229_s0 + $0x120] sm:$0xff]  ;;  %v50_v11 = vld [vmem:[%s5229_s0 + $0x130] sm:$0xff]  ;;  %v374_v17 = vpack.c.bf16 %v18_v8, %v16_v7  ;;  %1248 = vmatpush.bf16.msra.mxu2 %v408_v6 }
  0x1b   :  { %v80_v12 = vld [vmem:[%s5229_s0 + $0x220] sm:$0xff]  ;;  %v82_v13 = vld [vmem:[%s5229_s0 + $0x230] sm:$0xff]  ;;  %v390_v21 = vpack.c.bf16 %v50_v11, %v48_v9  ;;  %1297 = vmatpush.bf16.msra.mxu3 %v424_v10 }
  0x1c   :  { %v112_v14 = vld [vmem:[%s5229_s0 + $0x320] sm:$0xff]  ;;  %v114_v15 = vld [vmem:[%s5229_s0 + $0x330] sm:$0xff]  ;;  %v406_v22 = vpack.c.bf16 %v82_v13, %v80_v12  ;;  %1151 = vmatpush.bf16.msra.mxu0 %v374_v17 }
  0x1d   :  { %v12_v16 = vld [vmem:[%s5229_s0] sm:$0xff]  ;;  %v14_v18 = vld [vmem:[%s5229_s0 + $0x10] sm:$0xff]  ;;  %v422_v26 = vpack.c.bf16 %v114_v15, %v112_v14  ;;  %1200 = vmatpush.bf16.msra.mxu1 %v390_v21  ;;  %v2777_v21 = vld [vmem:[%s5230_s1 + $0x94] sm:$0xf0] }
  0x1e   :  { %v44_v19 = vld [vmem:[%s5229_s0 + $0x100] sm:$0xff]  ;;  %v46_v20 = vld [vmem:[%s5229_s0 + $0x110] sm:$0xff]  ;;  %v372_v34 = vpack.c.bf16 %v14_v18, %v12_v16  ;;  %1249 = vmatpush.bf16.msra.mxu2 %v406_v22  ;;  %v2771_v22 = vld [vmem:[%s5230_s1 + $0x6c] sm:$0xf] }
  0x1f   :  { %v76_v23 = vld [vmem:[%s5229_s0 + $0x200] sm:$0xff]  ;;  %v78_v24 = vld [vmem:[%s5229_s0 + $0x210] sm:$0xff]  ;;  %v388_v38 = vpack.c.bf16 %v46_v20, %v44_v19  ;;  %1298 = vmatpush.bf16.msra.mxu3 %v422_v26  ;;  %v2416_v20 = vld [vmem:[%s5230_s1 + $0x68] sm:$0xf] }
  0x20   :  { %v108_v25 = vld [vmem:[%s5229_s0 + $0x300] sm:$0xff]  ;;  %v110_v27 = vld [vmem:[%s5229_s0 + $0x310] sm:$0xff]  ;;  %v404_v39 = vpack.c.bf16 %v78_v24, %v76_v23  ;;  %1152 = vmatpush.bf16.msra.mxu0 %v372_v34  ;;  %v2418_v23 = vld [vmem:[%s5230_s1 + $0x98] sm:$0xf0]  ;;  %v3197_v26 = vor.u32 %v2777_v21, %v2416_v20 }
  0x21   :  { %v2360_v28 = vld [vmem:[%s5230_s1] sm:$0xf]  ;;  %v2764_v29 = vld [vmem:[%s5230_s1 + $0x2c] sm:$0xf0]  ;;  %v2758_v30 = vld [vmem:[%s5230_s1 + $0x4] sm:$0xf]  ;;  %v420_v43 = vpack.c.bf16 %v110_v27, %v108_v25  ;;  %1201 = vmatpush.bf16.msra.mxu1 %v388_v38  ;;  %v3199_v27 = vor.u32 %v2771_v22, %v2418_v23 }
  0x22   :  { %v2362_v31 = vld [vmem:[%s5230_s1 + $0x30] sm:$0xf0]  ;;  %v232_v32 = vld [vmem:[%s5229_s0 + $0x6e0] sm:$0xff]  ;;  %v3106_v48 = vor.u32 %v2764_v29, %v2360_v28  ;;  %1250 = vmatpush.bf16.msra.mxu2 %v404_v39  ;;  %v2776_v17 = vld [vmem:[%s5230_s1 + $0x8c] sm:$0xf0] }
  0x23   :  { %v234_v33 = vld [vmem:[%s5229_s0 + $0x6f0] sm:$0xff]  ;;  %v264_v36 = vld [vmem:[%s5229_s0 + $0x7e0] sm:$0xff]  ;;  %v3117_v53 = vor.u32 %v2758_v30, %v2362_v31  ;;  %1299 = vmatpush.bf16.msra.mxu3 %v420_v43 }
  0x24   :  { %v266_v37 = vld [vmem:[%s5229_s0 + $0x7f0] sm:$0xff]  ;;  %v482_v44 = vpack.c.bf16 %v234_v33, %v232_v32  ;;  %v168_v45 = vld [vmem:[%s5229_s0 + $0x4e0] sm:$0xff]  ;;  %1153 = vmatmul.bf16.vlgmr.msra.gmra.mxu0 %v3106_v48 }
  0x25   :  { %v170_v46 = vld [vmem:[%s5229_s0 + $0x4f0] sm:$0xff]  ;;  %v200_v47 = vld [vmem:[%s5229_s0 + $0x5e0] sm:$0xff]  ;;  %v498_v49 = vpack.c.bf16 %v266_v37, %v264_v36  ;;  %1202 = vmatmul.bf16.vlgmr.msra.gmra.mxu1 %v3117_v53  ;;  %1251 = vmatmul.bf16.vlgmr.msra.gmra.mxu2 %v3119_v54 }
  0x26   :  { %v202_v50 = vld [vmem:[%s5229_s0 + $0x5f0] sm:$0xff]  ;;  %v228_v51 = vld [vmem:[%s5229_s0 + $0x6c0] sm:$0xff]  ;;  %v450_v58 = vpack.c.bf16 %v170_v46, %v168_v45  ;;  %1439 = vmatpush.bf16.msrb.mxu2 %v482_v44  ;;  %1300 = vmatmul.bf16.vlgmr.msra.gmra.mxu3 %v3127_v57  ;;  %v2464_v44 = vld [vmem:[%s5230_s1 + $0xc8] sm:$0xf] }
  0x27   :  { %v230_v52 = vld [vmem:[%s5229_s0 + $0x6d0] sm:$0xff]  ;;  %v260_v55 = vld [vmem:[%s5229_s0 + $0x7c0] sm:$0xff]  ;;  %v466_v59 = vpack.c.bf16 %v202_v50, %v200_v47  ;;  %1488 = vmatpush.bf16.msrb.mxu3 %v498_v49  ;;  %v2789_v45 = vld [vmem:[%s5230_s1 + $0xf4] sm:$0xf0] }
  0x28   :  { %v262_v56 = vld [vmem:[%s5229_s0 + $0x7d0] sm:$0xff]  ;;  %v480_v60 = vpack.c.bf16 %v230_v52, %v228_v51  ;;  %v164_v61 = vld [vmem:[%s5229_s0 + $0x4c0] sm:$0xff]  ;;  %1341 = vmatpush.bf16.msrb.mxu0 %v450_v58  ;;  %v2783_v46 = vld [vmem:[%s5230_s1 + $0xcc] sm:$0xf]  ;;  %v3257_v51 = vor.u32 %v2789_v45, %v2464_v44 }
  0x29   :  { %v166_v62 = vld [vmem:[%s5229_s0 + $0x4d0] sm:$0xff]  ;;  %v496_v63 = vpack.c.bf16 %v262_v56, %v260_v55  ;;  %v196_v0 = vld [vmem:[%s5229_s0 + $0x5c0] sm:$0xff]  ;;  %1390 = vmatpush.bf16.msrb.mxu1 %v466_v59  ;;  %v2466_v47 = vld [vmem:[%s5230_s1 + $0xf8] sm:$0xf0] }
  0x2a   :  { %v198_v1 = vld [vmem:[%s5229_s0 + $0x5d0] sm:$0xff]  ;;  %v448_v2 = vpack.c.bf16 %v166_v62, %v164_v61  ;;  %v224_v3 = vld [vmem:[%s5229_s0 + $0x6a0] sm:$0xff]  ;;  %1440 = vmatpush.bf16.msrb.mxu2 %v480_v60  ;;  %v3259_v52 = vor.u32 %v2783_v46, %v2466_v47 }
  0x2b   :  { %v226_v4 = vld [vmem:[%s5229_s0 + $0x6b0] sm:$0xff]  ;;  %v160_v5 = vld [vmem:[%s5229_s0 + $0x4a0] sm:$0xff]  ;;  %v464_v6 = vpack.c.bf16 %v198_v1, %v196_v0  ;;  %1489 = vmatpush.bf16.msrb.mxu3 %v496_v63 }
  0x2c   :  { %v478_v7 = vpack.c.bf16 %v226_v4, %v224_v3  ;;  %v162_v8 = vld [vmem:[%s5229_s0 + $0x4b0] sm:$0xff]  ;;  %v256_v9 = vld [vmem:[%s5229_s0 + $0x7a0] sm:$0xff]  ;;  %1342 = vmatpush.bf16.msrb.mxu0 %v448_v2 }
  0x2d   :  { %v258_v10 = vld [vmem:[%s5229_s0 + $0x7b0] sm:$0xff]  ;;  %v192_v12 = vld [vmem:[%s5229_s0 + $0x5a0] sm:$0xff]  ;;  %v446_v14 = vpack.c.bf16 %v162_v8, %v160_v5  ;;  %1391 = vmatpush.bf16.msrb.mxu1 %v464_v6  ;;  %v2512_v8 = vld [vmem:[%s5230_s1 + $0x128] sm:$0xf] }
  0x2e   :  { %v494_v11 = vpack.c.bf16 %v258_v10, %v256_v9  ;;  %v194_v13 = vld [vmem:[%s5229_s0 + $0x5b0] sm:$0xff]  ;;  %1441 = vmatpush.bf16.msrb.mxu2 %v478_v7  ;;  %v2408_v16 = vld [vmem:[%s5230_s1 + $0x60] sm:$0xf]  ;;  %v2770_v18 = vld [vmem:[%s5230_s1 + $0x64] sm:$0xf] }
  0x2f   :  { %v462_v15 = vpack.c.bf16 %v194_v13, %v192_v12  ;;  %v2410_v19 = vld [vmem:[%s5230_s1 + $0x90] sm:$0xf0]  ;;  %v3193_v24 = vor.u32 %v2776_v17, %v2408_v16  ;;  %v220_v28 = vld [vmem:[%s5229_s0 + $0x680] sm:$0xff]  ;;  %v2788_v41 = vld [vmem:[%s5230_s1 + $0xec] sm:$0xf0] }
  0x30   :  { %1490 = vmatpush.bf16.msrb.mxu3 %v494_v11  ;;  %1343 = vmatpush.bf16.msrb.mxu0 %v446_v14  ;;  %v3195_v25 = vor.u32 %v2770_v18, %v2410_v19  ;;  %v222_v29 = vld [vmem:[%s5229_s0 + $0x690] sm:$0xff]  ;;  %v156_v30 = vld [vmem:[%s5229_s0 + $0x480] sm:$0xff]  ;;  %v2801_v9 = vld [vmem:[%s5230_s1 + $0x154] sm:$0xf0] }
  0x31   :  { %1392 = vmatpush.bf16.msrb.mxu1 %v462_v15  ;;  %v476_v31 = vpack.c.bf16 %v222_v29, %v220_v28  ;;  %v158_v32 = vld [vmem:[%s5229_s0 + $0x490] sm:$0xff]  ;;  %v252_v33 = vld [vmem:[%s5229_s0 + $0x780] sm:$0xff]  ;;  %v2795_v10 = vld [vmem:[%s5230_s1 + $0x12c] sm:$0xf]  ;;  %v3317_v14 = vor.u32 %v2801_v9, %v2512_v8 }
  0x32   :  { %v254_v34 = vld [vmem:[%s5229_s0 + $0x790] sm:$0xff]  ;;  %v444_v35 = vpack.c.bf16 %v158_v32, %v156_v30  ;;  %v188_v37 = vld [vmem:[%s5229_s0 + $0x580] sm:$0xff]  ;;  %v2514_v11 = vld [vmem:[%s5230_s1 + $0x158] sm:$0xf0] }
  0x33   :  { %v492_v36 = vpack.c.bf16 %v254_v34, %v252_v33  ;;  %v190_v38 = vld [vmem:[%s5229_s0 + $0x590] sm:$0xff]  ;;  %1442 = vmatpush.bf16.msrb.mxu2 %v476_v31  ;;  %v2456_v40 = vld [vmem:[%s5230_s1 + $0xc0] sm:$0xf]  ;;  %v2782_v42 = vld [vmem:[%s5230_s1 + $0xc4] sm:$0xf]  ;;  %v3319_v15 = vor.u32 %v2795_v10, %v2514_v11 }
  0x34   :  { %1158 = vmatmul.bf16.gmra.mxu0 %v3193_v24  ;;  %v460_v39 = vpack.c.bf16 %v190_v38, %v188_v37  ;;  %v2458_v43 = vld [vmem:[%s5230_s1 + $0xf0] sm:$0xf0]  ;;  %v3253_v49 = vor.u32 %v2788_v41, %v2456_v40  ;;  %v216_v55 = vld [vmem:[%s5229_s0 + $0x660] sm:$0xff]  ;;  %v2800_v5 = vld [vmem:[%s5230_s1 + $0x14c] sm:$0xf0] }
  0x35   :  { %1207 = vmatmul.bf16.gmra.mxu1 %v3195_v25  ;;  %1256 = vmatmul.bf16.gmra.mxu2 %v3197_v26  ;;  %v3255_v50 = vor.u32 %v2782_v42, %v2458_v43  ;;  %v218_v56 = vld [vmem:[%s5229_s0 + $0x670] sm:$0xff]  ;;  %v152_v58 = vld [vmem:[%s5229_s0 + $0x460] sm:$0xff]  ;;  %v2813_v37 = vld [vmem:[%s5230_s1 + $0x1b4] sm:$0xf0] }
  0x36   :  { %1305 = vmatmul.bf16.gmra.mxu3 %v3199_v27  ;;  %1344 = vmatpush.bf16.msrb.mxu0 %v444_v35  ;;  %v474_v59 = vpack.c.bf16 %v218_v56, %v216_v55  ;;  %v154_v60 = vld [vmem:[%s5229_s0 + $0x470] sm:$0xff]  ;;  %v248_v61 = vld [vmem:[%s5229_s0 + $0x760] sm:$0xff]  ;;  %v2807_v38 = vld [vmem:[%s5230_s1 + $0x18c] sm:$0xf] }
  0x37   :  { %1491 = vmatpush.bf16.msrb.mxu3 %v492_v36  ;;  %1393 = vmatpush.bf16.msrb.mxu1 %v460_v39  ;;  %v250_v62 = vld [vmem:[%s5229_s0 + $0x770] sm:$0xff]  ;;  %v442_v63 = vpack.c.bf16 %v154_v60, %v152_v58  ;;  %v184_v1 = vld [vmem:[%s5229_s0 + $0x560] sm:$0xff]  ;;  %v2560_v36 = vld [vmem:[%s5230_s1 + $0x188] sm:$0xf] }
  0x38   :  { %v490_v0 = vpack.c.bf16 %v250_v62, %v248_v61  ;;  %v186_v2 = vld [vmem:[%s5229_s0 + $0x570] sm:$0xff]  ;;  %1443 = vmatpush.bf16.msrb.mxu2 %v474_v59  ;;  %v2504_v4 = vld [vmem:[%s5230_s1 + $0x120] sm:$0xf]  ;;  %v2794_v6 = vld [vmem:[%s5230_s1 + $0x124] sm:$0xf]  ;;  %v3377_v42 = vor.u32 %v2813_v37, %v2560_v36 }
  0x39   :  { %v458_v3 = vpack.c.bf16 %v186_v2, %v184_v1  ;;  %v2506_v7 = vld [vmem:[%s5230_s1 + $0x150] sm:$0xf0]  ;;  %v3313_v12 = vor.u32 %v2800_v5, %v2504_v4  ;;  %v212_v16 = vld [vmem:[%s5229_s0 + $0x640] sm:$0xff]  ;;  %v2812_v33 = vld [vmem:[%s5230_s1 + $0x1ac] sm:$0xf0] }
  0x3a   :  { %1345 = vmatpush.bf16.msrb.mxu0 %v442_v63  ;;  %v3315_v13 = vor.u32 %v2794_v6, %v2506_v7  ;;  %v214_v17 = vld [vmem:[%s5229_s0 + $0x650] sm:$0xff]  ;;  %v148_v18 = vld [vmem:[%s5229_s0 + $0x440] sm:$0xff]  ;;  %v2562_v39 = vld [vmem:[%s5230_s1 + $0x1b8] sm:$0xf0] }
  0x3b   :  { %1492 = vmatpush.bf16.msrb.mxu3 %v490_v0  ;;  %1394 = vmatpush.bf16.msrb.mxu1 %v458_v3  ;;  %v472_v19 = vpack.c.bf16 %v214_v17, %v212_v16  ;;  %v150_v20 = vld [vmem:[%s5229_s0 + $0x450] sm:$0xff]  ;;  %v244_v21 = vld [vmem:[%s5229_s0 + $0x740] sm:$0xff]  ;;  %v3379_v43 = vor.u32 %v2807_v38, %v2562_v39  ;;  %v2608_v4 = vld [vmem:[%s5230_s1 + $0x1e8] sm:$0xf] }
  0x3c   :  { %v246_v22 = vld [vmem:[%s5229_s0 + $0x750] sm:$0xff]  ;;  %v440_v23 = vpack.c.bf16 %v150_v20, %v148_v18  ;;  %v180_v29 = vld [vmem:[%s5229_s0 + $0x540] sm:$0xff]  ;;  %v2825_v5 = vld [vmem:[%s5230_s1 + $0x214] sm:$0xf0] }
  0x3d   :  { %v488_v28 = vpack.c.bf16 %v246_v22, %v244_v21  ;;  %v182_v30 = vld [vmem:[%s5229_s0 + $0x550] sm:$0xff]  ;;  %1444 = vmatpush.bf16.msrb.mxu2 %v472_v19  ;;  %v2552_v32 = vld [vmem:[%s5230_s1 + $0x180] sm:$0xf]  ;;  %v2806_v34 = vld [vmem:[%s5230_s1 + $0x184] sm:$0xf]  ;;  %v3437_v10 = vor.u32 %v2825_v5, %v2608_v4 }
  0x3e   :  { %v456_v31 = vpack.c.bf16 %v182_v30, %v180_v29  ;;  %1346 = vmatpush.bf16.msrb.mxu0 %v440_v23  ;;  %v2554_v35 = vld [vmem:[%s5230_s1 + $0x1b0] sm:$0xf0]  ;;  %v3373_v40 = vor.u32 %v2812_v33, %v2552_v32  ;;  %v208_v44 = vld [vmem:[%s5229_s0 + $0x620] sm:$0xff]  ;;  %v2824_v1 = vld [vmem:[%s5230_s1 + $0x20c] sm:$0xf0] }
  0x3f   :  { %1493 = vmatpush.bf16.msrb.mxu3 %v488_v28  ;;  %v3375_v41 = vor.u32 %v2806_v34, %v2554_v35  ;;  %v210_v45 = vld [vmem:[%s5229_s0 + $0x630] sm:$0xff]  ;;  %v144_v46 = vld [vmem:[%s5229_s0 + $0x420] sm:$0xff]  ;;  %v2819_v6 = vld [vmem:[%s5230_s1 + $0x1ec] sm:$0xf] }
  0x40   :  { %1395 = vmatpush.bf16.msrb.mxu1 %v456_v31  ;;  %v470_v47 = vpack.c.bf16 %v210_v45, %v208_v44  ;;  %v146_v55 = vld [vmem:[%s5229_s0 + $0x430] sm:$0xff]  ;;  %v240_v56 = vld [vmem:[%s5229_s0 + $0x720] sm:$0xff]  ;;  %v2610_v7 = vld [vmem:[%s5230_s1 + $0x218] sm:$0xf0] }
  0x41   :  { %v242_v58 = vld [vmem:[%s5229_s0 + $0x730] sm:$0xff]  ;;  %v438_v59 = vpack.c.bf16 %v146_v55, %v144_v46  ;;  %v176_v61 = vld [vmem:[%s5229_s0 + $0x520] sm:$0xff]  ;;  %v3439_v11 = vor.u32 %v2819_v6, %v2610_v7  ;;  %v2656_v36 = vld [vmem:[%s5230_s1 + $0x248] sm:$0xf] }
  0x42   :  { %v486_v60 = vpack.c.bf16 %v242_v58, %v240_v56  ;;  %v178_v62 = vld [vmem:[%s5229_s0 + $0x530] sm:$0xff]  ;;  %1445 = vmatpush.bf16.msrb.mxu2 %v470_v47  ;;  %v2600_v0 = vld [vmem:[%s5230_s1 + $0x1e0] sm:$0xf]  ;;  %v2818_v2 = vld [vmem:[%s5230_s1 + $0x1e4] sm:$0xf] }
  0x43   :  { %v454_v63 = vpack.c.bf16 %v178_v62, %v176_v61  ;;  %1347 = vmatpush.bf16.msrb.mxu0 %v438_v59  ;;  %v2602_v3 = vld [vmem:[%s5230_s1 + $0x210] sm:$0xf0]  ;;  %v3433_v8 = vor.u32 %v2824_v1, %v2600_v0  ;;  %v204_v16 = vld [vmem:[%s5229_s0 + $0x600] sm:$0xff]  ;;  %v2836_v33 = vld [vmem:[%s5230_s1 + $0x26c] sm:$0xf0] }
  0x44   :  { %1163 = vmatmul.bf16.gmra.mxu0 %v3253_v49  ;;  %1494 = vmatpush.bf16.msrb.mxu3 %v486_v60  ;;  %v3435_v9 = vor.u32 %v2818_v2, %v2602_v3  ;;  %v206_v17 = vld [vmem:[%s5229_s0 + $0x610] sm:$0xff]  ;;  %v140_v18 = vld [vmem:[%s5229_s0 + $0x400] sm:$0xff]  ;;  %v2837_v37 = vld [vmem:[%s5230_s1 + $0x274] sm:$0xf0] }
  0x45   :  { %1212 = vmatmul.bf16.gmra.mxu1 %v3255_v50  ;;  %1261 = vmatmul.bf16.gmra.mxu2 %v3257_v51  ;;  %v468_v19 = vpack.c.bf16 %v206_v17, %v204_v16  ;;  %v142_v20 = vld [vmem:[%s5229_s0 + $0x410] sm:$0xff]  ;;  %v236_v21 = vld [vmem:[%s5229_s0 + $0x700] sm:$0xff]  ;;  %v2831_v38 = vld [vmem:[%s5230_s1 + $0x24c] sm:$0xf]  ;;  %v3497_v46 = vor.u32 %v2837_v37, %v2656_v36 }
  0x46   :  { %1310 = vmatmul.bf16.gmra.mxu3 %v3259_v52  ;;  %1396 = vmatpush.bf16.msrb.mxu1 %v454_v63  ;;  %v238_v22 = vld [vmem:[%s5229_s0 + $0x710] sm:$0xff]  ;;  %v436_v23 = vpack.c.bf16 %v142_v20, %v140_v18  ;;  %v172_v29 = vld [vmem:[%s5229_s0 + $0x500] sm:$0xff]  ;;  %v2658_v39 = vld [vmem:[%s5230_s1 + $0x278] sm:$0xf0] }
  0x47   :  { %v484_v28 = vpack.c.bf16 %v238_v22, %v236_v21  ;;  %v174_v30 = vld [vmem:[%s5229_s0 + $0x510] sm:$0xff]  ;;  %1446 = vmatpush.bf16.msrb.mxu2 %v468_v19  ;;  %v2648_v32 = vld [vmem:[%s5230_s1 + $0x240] sm:$0xf]  ;;  %v2830_v34 = vld [vmem:[%s5230_s1 + $0x244] sm:$0xf]  ;;  %v3499_v47 = vor.u32 %v2831_v38, %v2658_v39 }
  0x48   :  { %v452_v31 = vpack.c.bf16 %v174_v30, %v172_v29  ;;  %1348 = vmatpush.bf16.msrb.mxu0 %v436_v23  ;;  %v2650_v35 = vld [vmem:[%s5230_s1 + $0x270] sm:$0xf0]  ;;  %v3493_v44 = vor.u32 %v2836_v33, %v2648_v32  ;;  %v360_v55 = vld [vmem:[%s5229_s0 + $0xae0] sm:$0xff]  ;;  %v2848_v5 = vld [vmem:[%s5230_s1 + $0x2cc] sm:$0xf0] }
  0x49   :  { %1495 = vmatpush.bf16.msrb.mxu3 %v484_v28  ;;  %v3495_v45 = vor.u32 %v2830_v34, %v2650_v35  ;;  %5297 = vst [vmem:[#allocation2_spill] sm:$0xff] %v3499_v47  ;;  %v362_v56 = vld [vmem:[%s5229_s0 + $0xaf0] sm:$0xff]  ;;  %v296_v58 = vld [vmem:[%s5229_s0 + $0x8e0] sm:$0xff]  ;;  %v2704_v16 = vld [vmem:[%s5230_s1 + $0x2a8] sm:$0xf] }
  0x4a   :  { %1397 = vmatpush.bf16.msrb.mxu1 %v452_v31  ;;  %v546_v59 = vpack.c.bf16 %v362_v56, %v360_v55  ;;  %v298_v60 = vld [vmem:[%s5229_s0 + $0x8f0] sm:$0xff]  ;;  %v368_v61 = vld [vmem:[%s5229_s0 + $0xb20] sm:$0xff]  ;;  %v2849_v17 = vld [vmem:[%s5230_s1 + $0x2d4] sm:$0xf0] }
  0x4b   :  { %v370_v62 = vld [vmem:[%s5229_s0 + $0xb30] sm:$0xff]  ;;  %v514_v63 = vpack.c.bf16 %v298_v60, %v296_v58  ;;  %v328_v1 = vld [vmem:[%s5229_s0 + $0x9e0] sm:$0xff]  ;;  %v2843_v18 = vld [vmem:[%s5230_s1 + $0x2ac] sm:$0xf]  ;;  %v3557_v22 = vor.u32 %v2849_v17, %v2704_v16 }
  0x4c   :  { %v550_v0 = vpack.c.bf16 %v370_v62, %v368_v61  ;;  %1635 = vmatpush.bf16.msra.mxu2 %v546_v59  ;;  %v330_v2 = vld [vmem:[%s5229_s0 + $0x9f0] sm:$0xff]  ;;  %v2696_v4 = vld [vmem:[%s5230_s1 + $0x2a0] sm:$0xf]  ;;  %v2842_v6 = vld [vmem:[%s5230_s1 + $0x2a4] sm:$0xf] }
  0x4d   :  { %1537 = vmatpush.bf16.msra.mxu0 %v514_v63  ;;  %v530_v3 = vpack.c.bf16 %v330_v2, %v328_v1  ;;  %v2698_v7 = vld [vmem:[%s5230_s1 + $0x2d0] sm:$0xf0]  ;;  %v2706_v19 = vld [vmem:[%s5230_s1 + $0x2d8] sm:$0xf0]  ;;  %v3553_v20 = vor.u32 %v2848_v5, %v2696_v4  ;;  %5300 = vst [vmem:[#allocation5_spill] sm:$0xff] %v3557_v22  ;;  %v356_v28 = vld [vmem:[%s5229_s0 + $0xac0] sm:$0xff] }
  0x4e   :  { %1690 = vmatpush.bf16.msra.mxu3 %v550_v0  ;;  %v3555_v21 = vor.u32 %v2842_v6, %v2698_v7  ;;  %v3559_v23 = vor.u32 %v2843_v18, %v2706_v19  ;;  %v358_v29 = vld [vmem:[%s5229_s0 + $0xad0] sm:$0xff]  ;;  %v292_v30 = vld [vmem:[%s5229_s0 + $0x8c0] sm:$0xff]  ;;  %v2384_v56 = vld [vmem:[%s5230_s1 + $0x18] sm:$0xf] }
  0x4f   :  { %1586 = vmatpush.bf16.msra.mxu1 %v530_v3  ;;  %5298 = vst [vmem:[#allocation3_spill] sm:$0xff] %v3553_v20  ;;  %v544_v31 = vpack.c.bf16 %v358_v29, %v356_v28  ;;  %v294_v32 = vld [vmem:[%s5229_s0 + $0x8d0] sm:$0xff]  ;;  %v324_v34 = vld [vmem:[%s5229_s0 + $0x9c0] sm:$0xff]  ;;  %v2767_v58 = vld [vmem:[%s5230_s1 + $0x44] sm:$0xf0] }
  0x50   :  { %5299 = vst [vmem:[#allocation4_spill] sm:$0xff] %v3555_v21  ;;  %v512_v33 = vpack.c.bf16 %v294_v32, %v292_v30  ;;  %v326_v35 = vld [vmem:[%s5229_s0 + $0x9d0] sm:$0xff]  ;;  %v2766_v38 = vld [vmem:[%s5230_s1 + $0x3c] sm:$0xf0]  ;;  %v2378_v55 = vld [vmem:[%s5230_s1 + $0x40] sm:$0xf0]  ;;  %v3611_v0 = vor.u32 %v2767_v58, %v2384_v56 }
  0x51   :  { %5301 = vst [vmem:[#allocation6_spill] sm:$0xff] %v3559_v23  ;;  %1636 = vmatpush.bf16.msra.mxu2 %v544_v31  ;;  %v528_v36 = vpack.c.bf16 %v326_v35, %v324_v34  ;;  %v2376_v37 = vld [vmem:[%s5230_s1 + $0x10] sm:$0xf]  ;;  %v2760_v39 = vld [vmem:[%s5230_s1 + $0x14] sm:$0xf]  ;;  %v352_v4 = vld [vmem:[%s5229_s0 + $0xaa0] sm:$0xff] }
  0x52   :  { %1538 = vmatpush.bf16.msra.mxu0 %v512_v33  ;;  %v2761_v59 = vld [vmem:[%s5230_s1 + $0x1c] sm:$0xf]  ;;  %v2386_v60 = vld [vmem:[%s5230_s1 + $0x48] sm:$0xf0]  ;;  %v3607_v61 = vor.u32 %v2766_v38, %v2376_v37  ;;  %v3609_v63 = vor.u32 %v2760_v39, %v2378_v55  ;;  %5304 = vst [vmem:[#allocation9_spill] sm:$0xff] %v3611_v0  ;;  %v354_v5 = vld [vmem:[%s5229_s0 + $0xab0] sm:$0xff] }
  0x53   :  { %1587 = vmatpush.bf16.msra.mxu1 %v528_v36  ;;  %v3613_v2 = vor.u32 %v2761_v59, %v2386_v60  ;;  %v288_v6 = vld [vmem:[%s5229_s0 + $0x8a0] sm:$0xff]  ;;  %v542_v7 = vpack.c.bf16 %v354_v5, %v352_v4  ;;  %v290_v16 = vld [vmem:[%s5229_s0 + $0x8b0] sm:$0xff]  ;;  %v2432_v55 = vld [vmem:[%s5230_s1 + $0x78] sm:$0xf] }
  0x54   :  { %1168 = vmatmul.bf16.gmra.mxu0 %v3313_v12  ;;  %5302 = vst [vmem:[#allocation7_spill] sm:$0xff] %v3607_v61  ;;  %v510_v18 = vpack.c.bf16 %v290_v16, %v288_v6  ;;  %v320_v33 = vld [vmem:[%s5229_s0 + $0x9a0] sm:$0xff]  ;;  %v322_v34 = vld [vmem:[%s5229_s0 + $0x9b0] sm:$0xff]  ;;  %v2779_v56 = vld [vmem:[%s5230_s1 + $0xa4] sm:$0xf0] }
  0x55   :  { %1217 = vmatmul.bf16.gmra.mxu1 %v3315_v13  ;;  %1266 = vmatmul.bf16.gmra.mxu2 %v3317_v14  ;;  %5303 = vst [vmem:[#allocation8_spill] sm:$0xff] %v3609_v63  ;;  %v526_v35 = vpack.c.bf16 %v322_v34, %v320_v33  ;;  %v2424_v36 = vld [vmem:[%s5230_s1 + $0x70] sm:$0xf]  ;;  %v2778_v37 = vld [vmem:[%s5230_s1 + $0x9c] sm:$0xf0]  ;;  %v3667_v6 = vor.u32 %v2779_v56, %v2432_v55 }
  0x56   :  { %1315 = vmatmul.bf16.gmra.mxu3 %v3319_v15  ;;  %5305 = vst [vmem:[#allocation10_spill] sm:$0xff] %v3613_v2  ;;  %1637 = vmatpush.bf16.msra.mxu2 %v542_v7  ;;  %v2772_v38 = vld [vmem:[%s5230_s1 + $0x74] sm:$0xf]  ;;  %v2426_v39 = vld [vmem:[%s5230_s1 + $0xa0] sm:$0xf0] }
  0x57   :  { %1539 = vmatpush.bf16.msra.mxu0 %v510_v18  ;;  %1588 = vmatpush.bf16.msra.mxu1 %v526_v35  ;;  %v2773_v58 = vld [vmem:[%s5230_s1 + $0x7c] sm:$0xf]  ;;  %v2434_v59 = vld [vmem:[%s5230_s1 + $0xa8] sm:$0xf0]  ;;  %v3665_v5 = vor.u32 %v2772_v38, %v2426_v39  ;;  %5308 = vst [vmem:[#allocation13_spill] sm:$0xff] %v3667_v6  ;;  %v316_v56 = vld [vmem:[%s5229_s0 + $0x980] sm:$0xff] }
  0x58   :  { %v3669_v16 = vor.u32 %v2773_v58, %v2434_v59  ;;  %v318_v58 = vld [vmem:[%s5229_s0 + $0x990] sm:$0xff] }
  0x59   :  { %5307 = vst [vmem:[#allocation12_spill] sm:$0xff] %v3665_v5  ;;  %v524_v59 = vpack.c.bf16 %v318_v58, %v316_v56 }
  0x5a   :  { %5309 = vst [vmem:[#allocation14_spill] sm:$0xff] %v3669_v16 }
  0x5b   :  { %1589 = vmatpush.bf16.msra.mxu1 %v524_v59  ;;  %v346_v59 = vld [vmem:[%s5229_s0 + $0xa70] sm:$0xff] }
  0x64   :  { %1173 = vmatmul.bf16.gmra.mxu0 %v3373_v40 }
  0x65   :  { %1222 = vmatmul.bf16.gmra.mxu1 %v3375_v41  ;;  %1271 = vmatmul.bf16.gmra.mxu2 %v3377_v42 }
  0x66   :  { %1320 = vmatmul.bf16.gmra.mxu3 %v3379_v43 }
  0x74   :  { %1178 = vmatmul.bf16.gmra.mxu0 %v3433_v8 }
  0x75   :  { %1227 = vmatmul.bf16.gmra.mxu1 %v3435_v9  ;;  %1276 = vmatmul.bf16.gmra.mxu2 %v3437_v10 }
  0x76   :  { %1325 = vmatmul.bf16.gmra.mxu3 %v3439_v11 }
  0x84   :  { %1183 = vmatmul.bf16.gmra.mxu0 %v3493_v44 }
  0x85   :  { %1232 = vmatmul.bf16.gmra.mxu1 %v3495_v45  ;;  %1281 = vmatmul.bf16.gmra.mxu2 %v3497_v46 }
  0x86   :  { %1330 = vmatmul.bf16.gmra.mxu3 %v3499_v47 }
  0x94   :  { %1188 = vmatmul.bf16.gmra.mxu0 %v3553_v20 }
  0x95   :  { %1237 = vmatmul.bf16.gmra.mxu1 %v3555_v21  ;;  %1286 = vmatmul.bf16.gmra.mxu2 %v3557_v22 }
  0x96   :  { %1335 = vmatmul.bf16.gmra.mxu3 %v3559_v23 }
  0xa1   :  { %v1154_v62 = vpop.f32.mrf.mxu0 }
  0xa2   :  { %v1203_v1 = vpop.f32.mrf.mxu1 }
  0xa3   :  { %v1204_v3 = vadd.f32 %v1203_v1, %v1154_v62  ;;  %v3663_v62 = vor.u32 %v2778_v37, %v2424_v36 }
  0xa4   :  { %1349 = vmatmul.bf16.vlgmr.msrb.gmra.mxu0 %v3607_v61 }
  0xa5   :  { %1398 = vmatmul.bf16.vlgmr.msrb.gmra.mxu1 %v3609_v63  ;;  %1447 = vmatmul.bf16.vlgmr.msrb.gmra.mxu2 %v3611_v0  ;;  %5306 = vst [vmem:[#allocation11_spill] sm:$0xff] %v3663_v62 }
  0xa6   :  { %1496 = vmatmul.bf16.vlgmr.msrb.gmra.mxu3 %v3613_v2 }
  0xa8   :  { %v1252_v17 = vpop.f32.mrf.mxu2 }
  0xa9   :  { %v1253_v19 = vadd.f32 %v1252_v17, %v1204_v3  ;;  %v1301_v28 = vpop.f32.mrf.mxu3  ;;  %v1156_v29 = vpop.f32.mrf.mxu0 }
  0xaa   :  { %v1205_v30 = vpop.f32.mrf.mxu1 }
  0xab   :  { %v3631_v31 = vadd.f32 %v1301_v28, %v1253_v19  ;;  %v1206_v32 = vadd.f32 %v1205_v30, %v1156_v29  ;;  %v348_v19 = vld [vmem:[%s5229_s0 + $0xa80] sm:$0xff]  ;;  %v350_v28 = vld [vmem:[%s5229_s0 + $0xa90] sm:$0xff] }
  0xac   :  { %v284_v29 = vld [vmem:[%s5229_s0 + $0x880] sm:$0xff]  ;;  %v540_v30 = vpack.c.bf16 %v350_v28, %v348_v19  ;;  %v2785_v19 = vld [vmem:[%s5230_s1 + $0xdc] sm:$0xf]  ;;  %v2482_v28 = vld [vmem:[%s5230_s1 + $0x108] sm:$0xf0] }
  0xae   :  { %1638 = vmatpush.bf16.msra.mxu2 %v540_v30 }
  0xb0   :  { %v1254_v60 = vpop.f32.mrf.mxu2 }
  0xb1   :  { %v1255_v1 = vadd.f32 %v1254_v60, %v1206_v32  ;;  %v1303_v3 = vpop.f32.mrf.mxu3  ;;  %v1159_v4 = vpop.f32.mrf.mxu0  ;;  %v286_v32 = vld [vmem:[%s5229_s0 + $0x890] sm:$0xff] }
  0xb2   :  { %v1208_v7 = vpop.f32.mrf.mxu1  ;;  %v508_v34 = vpack.c.bf16 %v286_v32, %v284_v29  ;;  %v2472_v60 = vld [vmem:[%s5230_s1 + $0xd0] sm:$0xf] }
  0xb3   :  { %v3671_v17 = vadd.f32 %v1303_v3, %v1255_v1  ;;  %v1209_v18 = vadd.f32 %v1208_v7, %v1159_v4  ;;  %v2790_v1 = vld [vmem:[%s5230_s1 + $0xfc] sm:$0xf0]  ;;  %v2784_v3 = vld [vmem:[%s5230_s1 + $0xd4] sm:$0xf]  ;;  %v2474_v4 = vld [vmem:[%s5230_s1 + $0x100] sm:$0xf0] }
  0xb4   :  { %1354 = vmatmul.bf16.gmra.mxu0 %v3663_v62  ;;  %v2480_v7 = vld [vmem:[%s5230_s1 + $0xd8] sm:$0xf]  ;;  %v3721_v30 = vor.u32 %v2790_v1, %v2472_v60  ;;  %v280_v60 = vld [vmem:[%s5229_s0 + $0x860] sm:$0xff] }
  0xb5   :  { %1403 = vmatmul.bf16.gmra.mxu1 %v3665_v5  ;;  %1452 = vmatmul.bf16.gmra.mxu2 %v3667_v6 }
  0xb6   :  { %1501 = vmatmul.bf16.gmra.mxu3 %v3669_v16  ;;  %1540 = vmatpush.bf16.msra.mxu0 %v508_v34  ;;  %5310 = vst [vmem:[#allocation15_spill] sm:$0xff] %v3721_v30 }
  0xb8   :  { %v1257_v33 = vpop.f32.mrf.mxu2 }
  0xb9   :  { %v1258_v35 = vadd.f32 %v1257_v33, %v1209_v18  ;;  %v1306_v36 = vpop.f32.mrf.mxu3  ;;  %v1161_v37 = vpop.f32.mrf.mxu0  ;;  %v2791_v18 = vld [vmem:[%s5230_s1 + $0x104] sm:$0xf0] }
  0xba   :  { %v1210_v38 = vpop.f32.mrf.mxu1 }
  0xbb   :  { %v3689_v39 = vadd.f32 %v1306_v36, %v1258_v35  ;;  %v1211_v55 = vadd.f32 %v1210_v38, %v1161_v37  ;;  %v3723_v35 = vor.u32 %v2784_v3, %v2474_v4  ;;  %v3725_v36 = vor.u32 %v2791_v18, %v2480_v7  ;;  %v282_v3 = vld [vmem:[%s5229_s0 + $0x870] sm:$0xff]  ;;  %v364_v4 = vld [vmem:[%s5229_s0 + $0xb00] sm:$0xff] }
  0xbc   :  { %v3727_v38 = vor.u32 %v2785_v19, %v2482_v28  ;;  %v366_v7 = vld [vmem:[%s5229_s0 + $0xb10] sm:$0xff]  ;;  %v506_v19 = vpack.c.bf16 %v282_v3, %v280_v60 }
  0xbd   :  { %5311 = vst [vmem:[#allocation16_spill] sm:$0xff] %v3723_v35  ;;  %v548_v28 = vpack.c.bf16 %v366_v7, %v364_v4  ;;  %v2796_v3 = vld [vmem:[%s5230_s1 + $0x134] sm:$0xf]  ;;  %v2522_v4 = vld [vmem:[%s5230_s1 + $0x160] sm:$0xf0] }
  0xbe   :  { %5312 = vst [vmem:[#allocation17_spill] sm:$0xff] %v3725_v36  ;;  %1541 = vmatpush.bf16.msra.mxu0 %v506_v19  ;;  %v2803_v7 = vld [vmem:[%s5230_s1 + $0x164] sm:$0xf0]  ;;  %v2530_v19 = vld [vmem:[%s5230_s1 + $0x168] sm:$0xf0] }
  0xbf   :  { %5313 = vst [vmem:[#allocation18_spill] sm:$0xff] %v3727_v38  ;;  %1691 = vmatpush.bf16.msra.mxu3 %v548_v28 }
  0xc0   :  { %v1259_v29 = vpop.f32.mrf.mxu2 }
  0xc1   :  { %v1260_v32 = vadd.f32 %v1259_v29, %v1211_v55  ;;  %v1308_v33 = vpop.f32.mrf.mxu3  ;;  %v1164_v34 = vpop.f32.mrf.mxu0  ;;  %v344_v55 = vld [vmem:[%s5229_s0 + $0xa60] sm:$0xff] }
  0xc2   :  { %v1213_v37 = vpop.f32.mrf.mxu1  ;;  %v538_v1 = vpack.c.bf16 %v346_v59, %v344_v55  ;;  %v312_v59 = vld [vmem:[%s5229_s0 + $0x960] sm:$0xff] }
  0xc3   :  { %v3729_v56 = vadd.f32 %v1308_v33, %v1260_v32  ;;  %v1214_v58 = vadd.f32 %v1213_v37, %v1164_v34 }
  0xc4   :  { %1359 = vmatmul.bf16.gmra.mxu0 %v3721_v30  ;;  %1639 = vmatpush.bf16.msra.mxu2 %v538_v1  ;;  %v2802_v1 = vld [vmem:[%s5230_s1 + $0x15c] sm:$0xf0] }
  0xc5   :  { %1408 = vmatmul.bf16.gmra.mxu1 %v3723_v35  ;;  %1457 = vmatmul.bf16.gmra.mxu2 %v3725_v36 }
  0xc6   :  { %1506 = vmatmul.bf16.gmra.mxu3 %v3727_v38  ;;  %v314_v38 = vld [vmem:[%s5229_s0 + $0x970] sm:$0xff] }
  0xc7   :  { %v522_v60 = vpack.c.bf16 %v314_v38, %v312_v59  ;;  %v2528_v38 = vld [vmem:[%s5230_s1 + $0x138] sm:$0xf]  ;;  %v3787_v59 = vor.u32 %v2796_v3, %v2522_v4  ;;  %v278_v3 = vld [vmem:[%s5229_s0 + $0x850] sm:$0xff] }
  0xc8   :  { %v1262_v18 = vpop.f32.mrf.mxu2  ;;  %v3789_v36 = vor.u32 %v2803_v7, %v2528_v38 }
  0xc9   :  { %v1263_v29 = vadd.f32 %v1262_v18, %v1214_v58  ;;  %v1311_v32 = vpop.f32.mrf.mxu3  ;;  %v1166_v33 = vpop.f32.mrf.mxu0  ;;  %v2520_v58 = vld [vmem:[%s5230_s1 + $0x130] sm:$0xf]  ;;  %1590 = vmatpush.bf16.msra.mxu1 %v522_v60  ;;  %v2797_v18 = vld [vmem:[%s5230_s1 + $0x13c] sm:$0xf]  ;;  %5315 = vst [vmem:[#allocation20_spill] sm:$0xff] %v3787_v59 }
  0xca   :  { %v1215_v34 = vpop.f32.mrf.mxu1  ;;  %5316 = vst [vmem:[#allocation21_spill] sm:$0xff] %v3789_v36  ;;  %v3791_v60 = vor.u32 %v2797_v18, %v2530_v19 }
  0xcb   :  { %v3753_v37 = vadd.f32 %v1311_v32, %v1263_v29  ;;  %v1216_v55 = vadd.f32 %v1215_v34, %v1166_v33  ;;  %v3785_v29 = vor.u32 %v2802_v1, %v2520_v58  ;;  %v342_v58 = vld [vmem:[%s5229_s0 + $0xa50] sm:$0xff] }
  0xcc   :  { %5317 = vst [vmem:[#allocation22_spill] sm:$0xff] %v3791_v60 }
  0xcd   :  { %5314 = vst [vmem:[#allocation19_spill] sm:$0xff] %v3785_v29 }
  0xd0   :  { %v1264_v28 = vpop.f32.mrf.mxu2 }
  0xd1   :  { %v1265_v32 = vadd.f32 %v1264_v28, %v1216_v55  ;;  %v1313_v33 = vpop.f32.mrf.mxu3  ;;  %v1169_v34 = vpop.f32.mrf.mxu0  ;;  %v340_v55 = vld [vmem:[%s5229_s0 + $0xa40] sm:$0xff] }
  0xd2   :  { %v1218_v35 = vpop.f32.mrf.mxu1  ;;  %v536_v1 = vpack.c.bf16 %v342_v58, %v340_v55  ;;  %v310_v55 = vld [vmem:[%s5229_s0 + $0x950] sm:$0xff] }
  0xd3   :  { %v3793_v30 = vadd.f32 %v1313_v33, %v1265_v32  ;;  %v1219_v16 = vadd.f32 %v1218_v35, %v1169_v34  ;;  %v276_v35 = vld [vmem:[%s5229_s0 + $0x840] sm:$0xff] }
  0xd4   :  { %1364 = vmatmul.bf16.gmra.mxu0 %v3785_v29  ;;  %v504_v38 = vpack.c.bf16 %v278_v3, %v276_v35  ;;  %1640 = vmatpush.bf16.msra.mxu2 %v536_v1  ;;  %v308_v34 = vld [vmem:[%s5229_s0 + $0x940] sm:$0xff]  ;;  %v2808_v1 = vld [vmem:[%s5230_s1 + $0x194] sm:$0xf] }
  0xd5   :  { %1413 = vmatmul.bf16.gmra.mxu1 %v3787_v59  ;;  %1462 = vmatmul.bf16.gmra.mxu2 %v3789_v36  ;;  %v520_v58 = vpack.c.bf16 %v310_v55, %v308_v34  ;;  %v2814_v35 = vld [vmem:[%s5230_s1 + $0x1bc] sm:$0xf0]  ;;  %v2570_v3 = vld [vmem:[%s5230_s1 + $0x1c0] sm:$0xf0] }
  0xd6   :  { %1511 = vmatmul.bf16.gmra.mxu3 %v3791_v60  ;;  %1542 = vmatpush.bf16.msra.mxu0 %v504_v38  ;;  %v2815_v38 = vld [vmem:[%s5230_s1 + $0x1c4] sm:$0xf0]  ;;  %v3845_v36 = vor.u32 %v2808_v1, %v2570_v3 }
  0xd7   :  { %1591 = vmatpush.bf16.msra.mxu1 %v520_v58 }
  0xd8   :  { %v1267_v4 = vpop.f32.mrf.mxu2  ;;  %5319 = vst [vmem:[#allocation24_spill] sm:$0xff] %v3845_v36 }
  0xd9   :  { %v1268_v7 = vadd.f32 %v1267_v4, %v1219_v16  ;;  %v1316_v18 = vpop.f32.mrf.mxu3  ;;  %v1171_v19 = vpop.f32.mrf.mxu0  ;;  %v2568_v16 = vld [vmem:[%s5230_s1 + $0x190] sm:$0xf]  ;;  %v2576_v4 = vld [vmem:[%s5230_s1 + $0x198] sm:$0xf] }
  0xda   :  { %v1220_v28 = vpop.f32.mrf.mxu1  ;;  %v3847_v59 = vor.u32 %v2815_v38, %v2576_v4 }
  0xdb   :  { %v3811_v32 = vadd.f32 %v1316_v18, %v1268_v7  ;;  %v1221_v33 = vadd.f32 %v1220_v28, %v1171_v19  ;;  %v2809_v7 = vld [vmem:[%s5230_s1 + $0x19c] sm:$0xf]  ;;  %v2578_v18 = vld [vmem:[%s5230_s1 + $0x1c8] sm:$0xf0]  ;;  %v3843_v28 = vor.u32 %v2814_v35, %v2568_v16  ;;  %v338_v16 = vld [vmem:[%s5229_s0 + $0xa30] sm:$0xff] }
  0xdc   :  { %5320 = vst [vmem:[#allocation25_spill] sm:$0xff] %v3847_v59  ;;  %v3849_v58 = vor.u32 %v2809_v7, %v2578_v18  ;;  %v274_v35 = vld [vmem:[%s5229_s0 + $0x830] sm:$0xff] }
  0xdd   :  { %5318 = vst [vmem:[#allocation23_spill] sm:$0xff] %v3843_v28 }
  0xde   :  { %5321 = vst [vmem:[#allocation26_spill] sm:$0xff] %v3849_v58 }
  0xe0   :  { %v1269_v19 = vpop.f32.mrf.mxu2 }
  0xe1   :  { %v1270_v34 = vadd.f32 %v1269_v19, %v1221_v33  ;;  %v1318_v55 = vpop.f32.mrf.mxu3  ;;  %v1174_v60 = vpop.f32.mrf.mxu0  ;;  %v336_v33 = vld [vmem:[%s5229_s0 + $0xa20] sm:$0xff] }
  0xe2   :  { %v1223_v29 = vpop.f32.mrf.mxu1 }
  0xe3   :  { %v3851_v6 = vadd.f32 %v1318_v55, %v1270_v34  ;;  %v1224_v5 = vadd.f32 %v1223_v29, %v1174_v60  ;;  %v272_v29 = vld [vmem:[%s5229_s0 + $0x820] sm:$0xff]  ;;  %v534_v60 = vpack.c.bf16 %v338_v16, %v336_v33  ;;  %v306_v33 = vld [vmem:[%s5229_s0 + $0x930] sm:$0xff] }
  0xe4   :  { %1369 = vmatmul.bf16.gmra.mxu0 %v3843_v28  ;;  %v502_v3 = vpack.c.bf16 %v274_v35, %v272_v29  ;;  %v304_v55 = vld [vmem:[%s5229_s0 + $0x920] sm:$0xff] }
  0xe5   :  { %1418 = vmatmul.bf16.gmra.mxu1 %v3845_v36  ;;  %1467 = vmatmul.bf16.gmra.mxu2 %v3847_v59  ;;  %v518_v16 = vpack.c.bf16 %v306_v33, %v304_v55  ;;  %v2826_v29 = vld [vmem:[%s5230_s1 + $0x21c] sm:$0xf0]  ;;  %v2618_v35 = vld [vmem:[%s5230_s1 + $0x220] sm:$0xf0] }
  0xe6   :  { %1516 = vmatmul.bf16.gmra.mxu3 %v3849_v58  ;;  %1641 = vmatpush.bf16.msra.mxu2 %v534_v60  ;;  %v2820_v60 = vld [vmem:[%s5230_s1 + $0x1f4] sm:$0xf] }
  0xe7   :  { %1543 = vmatpush.bf16.msra.mxu0 %v502_v3  ;;  %v2827_v3 = vld [vmem:[%s5230_s1 + $0x224] sm:$0xf0]  ;;  %1592 = vmatpush.bf16.msra.mxu1 %v518_v16  ;;  %v3903_v59 = vor.u32 %v2820_v60, %v2618_v35 }
  0xe8   :  { %v1272_v1 = vpop.f32.mrf.mxu2 }
  0xe9   :  { %v1273_v4 = vadd.f32 %v1272_v1, %v1224_v5  ;;  %v1321_v38 = vpop.f32.mrf.mxu3  ;;  %v1176_v7 = vpop.f32.mrf.mxu0  ;;  %v2616_v5 = vld [vmem:[%s5230_s1 + $0x1f0] sm:$0xf]  ;;  %v2624_v1 = vld [vmem:[%s5230_s1 + $0x1f8] sm:$0xf]  ;;  %5323 = vst [vmem:[#allocation28_spill] sm:$0xff] %v3903_v59 }
  0xea   :  { %v1225_v18 = vpop.f32.mrf.mxu1  ;;  %v3905_v36 = vor.u32 %v2827_v3, %v2624_v1 }
  0xeb   :  { %v3869_v19 = vadd.f32 %v1321_v38, %v1273_v4  ;;  %v1226_v34 = vadd.f32 %v1225_v18, %v1176_v7  ;;  %v2821_v4 = vld [vmem:[%s5230_s1 + $0x1fc] sm:$0xf]  ;;  %v2626_v38 = vld [vmem:[%s5230_s1 + $0x228] sm:$0xf0]  ;;  %v3901_v18 = vor.u32 %v2826_v29, %v2616_v5  ;;  %v334_v5 = vld [vmem:[%s5229_s0 + $0xa10] sm:$0xff] }
  0xec   :  { %5324 = vst [vmem:[#allocation29_spill] sm:$0xff] %v3905_v36  ;;  %v3907_v16 = vor.u32 %v2821_v4, %v2626_v38  ;;  %v270_v29 = vld [vmem:[%s5229_s0 + $0x810] sm:$0xff] }
  0xed   :  { %5322 = vst [vmem:[#allocation27_spill] sm:$0xff] %v3901_v18 }
  0xee   :  { %5325 = vst [vmem:[#allocation30_spill] sm:$0xff] %v3907_v16 }
  0xf0   :  { %v1274_v7 = vpop.f32.mrf.mxu2 }
  0xf1   :  { %v1275_v55 = vadd.f32 %v1274_v7, %v1226_v34  ;;  %v1323_v33 = vpop.f32.mrf.mxu3  ;;  %v1179_v58 = vpop.f32.mrf.mxu0  ;;  %v332_v34 = vld [vmem:[%s5229_s0 + $0xa00] sm:$0xff] }
  0xf2   :  { %v1228_v28 = vpop.f32.mrf.mxu1 }
  0xf3   :  { %v3909_v62 = vadd.f32 %v1323_v33, %v1275_v55  ;;  %v1229_v2 = vadd.f32 %v1228_v28, %v1179_v58  ;;  %v268_v28 = vld [vmem:[%s5229_s0 + $0x800] sm:$0xff]  ;;  %v532_v58 = vpack.c.bf16 %v334_v5, %v332_v34  ;;  %v302_v34 = vld [vmem:[%s5229_s0 + $0x910] sm:$0xff] }
  0xf4   :  { %1374 = vmatmul.bf16.gmra.mxu0 %v3901_v18  ;;  %v500_v35 = vpack.c.bf16 %v270_v29, %v268_v28  ;;  %v300_v33 = vld [vmem:[%s5229_s0 + $0x900] sm:$0xff] }
  0xf5   :  { %1423 = vmatmul.bf16.gmra.mxu1 %v3903_v59  ;;  %1472 = vmatmul.bf16.gmra.mxu2 %v3905_v36  ;;  %v516_v5 = vpack.c.bf16 %v302_v34, %v300_v33  ;;  %v2838_v28 = vld [vmem:[%s5230_s1 + $0x27c] sm:$0xf0]  ;;  %v2666_v29 = vld [vmem:[%s5230_s1 + $0x280] sm:$0xf0] }
  0xf6   :  { %1521 = vmatmul.bf16.gmra.mxu3 %v3907_v16  ;;  %1642 = vmatpush.bf16.msra.mxu2 %v532_v58  ;;  %v2832_v58 = vld [vmem:[%s5230_s1 + $0x254] sm:$0xf] }
  0xf7   :  { %1544 = vmatpush.bf16.msra.mxu0 %v500_v35  ;;  %v2839_v35 = vld [vmem:[%s5230_s1 + $0x284] sm:$0xf0]  ;;  %1593 = vmatpush.bf16.msra.mxu1 %v516_v5  ;;  %v3961_v36 = vor.u32 %v2832_v58, %v2666_v29  ;;  %v139_v29 = vld [vmem:[%s5229_s0 + $0x3f8] sm:$0xff] }
  0xf8   :  { %v1277_v60 = vpop.f32.mrf.mxu2  ;;  %v137_v58 = vld [vmem:[%s5229_s0 + $0x3e8] sm:$0xff] }
  0xf9   :  { %v1278_v1 = vadd.f32 %v1277_v60, %v1229_v2  ;;  %v1326_v3 = vpop.f32.mrf.mxu3  ;;  %v1181_v4 = vpop.f32.mrf.mxu0  ;;  %v2664_v2 = vld [vmem:[%s5230_s1 + $0x250] sm:$0xf]  ;;  %v2672_v60 = vld [vmem:[%s5230_s1 + $0x258] sm:$0xf]  ;;  %5327 = vst [vmem:[#allocation32_spill] sm:$0xff] %v3961_v36 }
  0xfa   :  { %v1230_v38 = vpop.f32.mrf.mxu1  ;;  %v3963_v59 = vor.u32 %v2839_v35, %v2672_v60 }
  0xfb   :  { %v3927_v7 = vadd.f32 %v1326_v3, %v1278_v1  ;;  %v1231_v55 = vadd.f32 %v1230_v38, %v1181_v4  ;;  %v2833_v1 = vld [vmem:[%s5230_s1 + $0x25c] sm:$0xf]  ;;  %v2674_v3 = vld [vmem:[%s5230_s1 + $0x288] sm:$0xf0]  ;;  %v3959_v38 = vor.u32 %v2838_v28, %v2664_v2 }
  0xfc   :  { %5328 = vst [vmem:[#allocation33_spill] sm:$0xff] %v3963_v59  ;;  %v3965_v5 = vor.u32 %v2833_v1, %v2674_v3  ;;  %v107_v2 = vld [vmem:[%s5229_s0 + $0x2f8] sm:$0xff]  ;;  %v435_v1 = vpack.c.bf16 %v139_v29, %v137_v58  ;;  %v2714_v58 = vld [vmem:[%s5230_s1 + $0x2e0] sm:$0xf0] }
  0xfd   :  { %5326 = vst [vmem:[#allocation31_spill] sm:$0xff] %v3959_v38  ;;  %v43_v28 = vld [vmem:[%s5229_s0 + $0xf8] sm:$0xff] }
  0xfe   :  { %5329 = vst [vmem:[#allocation34_spill] sm:$0xff] %v3965_v5  ;;  %1880 = vmatpush.bf16.msrb.mxu3 %v435_v1  ;;  %v2845_v29 = vld [vmem:[%s5230_s1 + $0x2bc] sm:$0xf] }
 0x100   :  { %v1279_v4 = vpop.f32.mrf.mxu2 }
 0x101   :  { %v1280_v33 = vadd.f32 %v1279_v4, %v1231_v55  ;;  %v1328_v34 = vpop.f32.mrf.mxu3  ;;  %v1184_v16 = vpop.f32.mrf.mxu0  ;;  %v105_v55 = vld [vmem:[%s5229_s0 + $0x2e8] sm:$0xff] }
 0x102   :  { %v1233_v18 = vpop.f32.mrf.mxu1 }
 0x103   :  { %v3967_v0 = vadd.f32 %v1328_v34, %v1280_v33  ;;  %v1234_v63 = vadd.f32 %v1233_v18, %v1184_v16  ;;  %v41_v18 = vld [vmem:[%s5229_s0 + $0xe8] sm:$0xff]  ;;  %v419_v16 = vpack.c.bf16 %v107_v2, %v105_v55 }
 0x104   :  { %1379 = vmatmul.bf16.gmra.mxu0 %v3959_v38  ;;  %v387_v35 = vpack.c.bf16 %v43_v28, %v41_v18  ;;  %v2844_v28 = vld [vmem:[%s5230_s1 + $0x2b4] sm:$0xf] }
 0x105   :  { %1428 = vmatmul.bf16.gmra.mxu1 %v3961_v36  ;;  %1477 = vmatmul.bf16.gmra.mxu2 %v3963_v59  ;;  %v75_v59 = vld [vmem:[%s5229_s0 + $0x1f8] sm:$0xff] }
 0x106   :  { %1526 = vmatmul.bf16.gmra.mxu3 %v3965_v5  ;;  %1831 = vmatpush.bf16.msrb.mxu2 %v419_v16  ;;  %v73_v5 = vld [vmem:[%s5229_s0 + $0x1e8] sm:$0xff]  ;;  %v2850_v16 = vld [vmem:[%s5230_s1 + $0x2dc] sm:$0xf0] }
 0x107   :  { %1733 = vmatpush.bf16.msrb.mxu0 %v387_v35  ;;  %v403_v18 = vpack.c.bf16 %v75_v59, %v73_v5  ;;  %v2720_v59 = vld [vmem:[%s5230_s1 + $0x2b8] sm:$0xf]  ;;  %v2851_v5 = vld [vmem:[%s5230_s1 + $0x2e4] sm:$0xf0] }
 0x108   :  { %v1282_v60 = vpop.f32.mrf.mxu2  ;;  %v4027_v36 = vor.u32 %v2851_v5, %v2720_v59  ;;  %v135_v59 = vld [vmem:[%s5229_s0 + $0x3d8] sm:$0xff] }
 0x109   :  { %v1283_v3 = vadd.f32 %v1282_v60, %v1234_v63  ;;  %v1331_v4 = vpop.f32.mrf.mxu3  ;;  %v1186_v33 = vpop.f32.mrf.mxu0  ;;  %v2712_v63 = vld [vmem:[%s5230_s1 + $0x2b0] sm:$0xf]  ;;  %1782 = vmatpush.bf16.msrb.mxu1 %v403_v18  ;;  %v2722_v60 = vld [vmem:[%s5230_s1 + $0x2e8] sm:$0xf0] }
 0x10a   :  { %v1235_v34 = vpop.f32.mrf.mxu1  ;;  %v4023_v1 = vor.u32 %v2850_v16, %v2712_v63  ;;  %5332 = vst [vmem:[#allocation37_spill] sm:$0xff] %v4027_v36  ;;  %v4029_v18 = vor.u32 %v2845_v29, %v2722_v60  ;;  %v103_v63 = vld [vmem:[%s5229_s0 + $0x2d8] sm:$0xff] }
 0x10b   :  { %v3991_v55 = vadd.f32 %v1331_v4, %v1283_v3  ;;  %v1236_v2 = vadd.f32 %v1235_v34, %v1186_v33  ;;  %v4025_v34 = vor.u32 %v2844_v28, %v2714_v58  ;;  %v39_v28 = vld [vmem:[%s5229_s0 + $0xd8] sm:$0xff]  ;;  %v133_v58 = vld [vmem:[%s5229_s0 + $0x3c8] sm:$0xff] }
 0x10c   :  { %5330 = vst [vmem:[#allocation35_spill] sm:$0xff] %v4023_v1  ;;  %v433_v60 = vpack.c.bf16 %v135_v59, %v133_v58  ;;  %v2394_v58 = vld [vmem:[%s5230_s1 + $0x50] sm:$0xf0]  ;;  %v2763_v59 = vld [vmem:[%s5230_s1 + $0x2c] sm:$0xf] }
 0x10d   :  { %5331 = vst [vmem:[#allocation36_spill] sm:$0xff] %v4025_v34 }
 0x10e   :  { %5333 = vst [vmem:[#allocation38_spill] sm:$0xff] %v4029_v18  ;;  %1881 = vmatpush.bf16.msrb.mxu3 %v433_v60 }
 0x110   :  { %v1284_v35 = vpop.f32.mrf.mxu2 }
 0x111   :  { %v1285_v3 = vadd.f32 %v1284_v35, %v1236_v2  ;;  %v1333_v4 = vpop.f32.mrf.mxu3  ;;  %v1189_v33 = vpop.f32.mrf.mxu0  ;;  %v101_v2 = vld [vmem:[%s5229_s0 + $0x2c8] sm:$0xff] }
 0x112   :  { %v1238_v38 = vpop.f32.mrf.mxu1  ;;  %v417_v16 = vpack.c.bf16 %v103_v63, %v101_v2 }
 0x113   :  { %v4031_v61 = vadd.f32 %v1333_v4, %v1285_v3  ;;  %v1239_v23 = vadd.f32 %v1238_v38, %v1189_v33  ;;  %v37_v38 = vld [vmem:[%s5229_s0 + $0xc8] sm:$0xff] }
 0x114   :  { %1384 = vmatmul.bf16.gmra.mxu0 %v4023_v1  ;;  %v385_v29 = vpack.c.bf16 %v39_v28, %v37_v38  ;;  %1832 = vmatpush.bf16.msrb.mxu2 %v417_v16  ;;  %v2768_v16 = vld [vmem:[%s5230_s1 + $0x4c] sm:$0xf0]  ;;  %v2762_v28 = vld [vmem:[%s5230_s1 + $0x24] sm:$0xf] }
 0x115   :  { %1433 = vmatmul.bf16.gmra.mxu1 %v4025_v34  ;;  %1482 = vmatmul.bf16.gmra.mxu2 %v4027_v36  ;;  %v71_v36 = vld [vmem:[%s5229_s0 + $0x1d8] sm:$0xff] }
 0x116   :  { %1531 = vmatmul.bf16.gmra.mxu3 %v4029_v18  ;;  %1734 = vmatpush.bf16.msrb.mxu0 %v385_v29  ;;  %v69_v18 = vld [vmem:[%s5229_s0 + $0x1c8] sm:$0xff] }
 0x117   :  { %v401_v38 = vpack.c.bf16 %v71_v36, %v69_v18  ;;  %v2400_v36 = vld [vmem:[%s5230_s1 + $0x28] sm:$0xf]  ;;  %v2769_v18 = vld [vmem:[%s5230_s1 + $0x54] sm:$0xf0] }
 0x118   :  { %v1287_v5 = vpop.f32.mrf.mxu2  ;;  %v4091_v34 = vor.u32 %v2769_v18, %v2400_v36 }
 0x119   :  { %v1288_v35 = vadd.f32 %v1287_v5, %v1239_v23  ;;  %v1336_v3 = vpop.f32.mrf.mxu3  ;;  %v1191_v4 = vpop.f32.mrf.mxu0  ;;  %v2392_v23 = vld [vmem:[%s5230_s1 + $0x20] sm:$0xf]  ;;  %1783 = vmatpush.bf16.msrb.mxu1 %v401_v38  ;;  %v2402_v5 = vld [vmem:[%s5230_s1 + $0x58] sm:$0xf0] }
 0x11a   :  { %v1240_v33 = vpop.f32.mrf.mxu1  ;;  %v4087_v60 = vor.u32 %v2768_v16, %v2392_v23  ;;  %5336 = vst [vmem:[#allocation41_spill] sm:$0xff] %v4091_v34  ;;  %v4094_v22 = vor.u32 %v2763_v59, %v2402_v5  ;;  %v35_v16 = vld [vmem:[%s5229_s0 + $0xb8] sm:$0xff] }
 0x11b   :  { %v4055_v2 = vadd.f32 %v1336_v3, %v1288_v35  ;;  %v1241_v63 = vadd.f32 %v1240_v33, %v1191_v4  ;;  %v4089_v33 = vor.u32 %v2762_v28, %v2394_v58  ;;  %v129_v28 = vld [vmem:[%s5229_s0 + $0x3a8] sm:$0xff]  ;;  %v131_v58 = vld [vmem:[%s5229_s0 + $0x3b8] sm:$0xff] }
 0x11c   :  { %5334 = vst [vmem:[#allocation39_spill] sm:$0xff] %v4087_v60  ;;  %v431_v59 = vpack.c.bf16 %v131_v58, %v129_v28  ;;  %v2442_v28 = vld [vmem:[%s5230_s1 + $0xb0] sm:$0xf0]  ;;  %v2448_v58 = vld [vmem:[%s5230_s1 + $0x88] sm:$0xf] }
 0x11d   :  { %5335 = vst [vmem:[#allocation40_spill] sm:$0xff] %v4089_v33 }
 0x11e   :  { %5337 = vst [vmem:[#allocation42_spill] sm:$0xff] %v4094_v22  ;;  %1882 = vmatpush.bf16.msrb.mxu3 %v431_v59  ;;  %v2450_v59 = vld [vmem:[%s5230_s1 + $0xb8] sm:$0xf0] }
 0x120   :  { %v1289_v29 = vpop.f32.mrf.mxu2 }
 0x121   :  { %v1290_v35 = vadd.f32 %v1289_v29, %v1241_v63  ;;  %v1338_v3 = vpop.f32.mrf.mxu3  ;;  %v1350_v4 = vpop.f32.mrf.mxu0  ;;  %v99_v63 = vld [vmem:[%s5229_s0 + $0x2b8] sm:$0xff] }
 0x122   :  { %v1351_v38 = vadd.f32 %v1350_v4, %v3631_v31  ;;  %v1399_v1 = vpop.f32.mrf.mxu1  ;;  %v97_v31 = vld [vmem:[%s5229_s0 + $0x2a8] sm:$0xff] }
 0x123   :  { %v4096_v21 = vadd.f32 %v1338_v3, %v1290_v35  ;;  %v415_v23 = vpack.c.bf16 %v99_v63, %v97_v31  ;;  %v65_v31 = vld [vmem:[%s5229_s0 + $0x1a8] sm:$0xff]  ;;  %v67_v63 = vld [vmem:[%s5229_s0 + $0x1b8] sm:$0xff] }
 0x124   :  { %v1400_v20 = vadd.f32 %v1399_v1, %v1351_v38  ;;  %1545 = vmatmul.bf16.vlgmr.msra.gmra.mxu0 %v4087_v60  ;;  %v33_v1 = vld [vmem:[%s5229_s0 + $0xa8] sm:$0xff] }
 0x125   :  { %1594 = vmatmul.bf16.vlgmr.msra.gmra.mxu1 %v4089_v33  ;;  %1643 = vmatmul.bf16.vlgmr.msra.gmra.mxu2 %v4091_v34  ;;  %v383_v18 = vpack.c.bf16 %v35_v16, %v33_v1  ;;  %v2774_v16 = vld [vmem:[%s5230_s1 + $0x84] sm:$0xf] }
 0x126   :  { %2742 = vmatmul.msk.bf16.vlgmr.msra.gmra.mxu3 %vm1120_vm0, %v4094_v22  ;;  %1833 = vmatpush.bf16.msrb.mxu2 %v415_v23  ;;  %v2440_v23 = vld [vmem:[%s5230_s1 + $0x80] sm:$0xf] }
 0x127   :  { %1735 = vmatpush.bf16.msrb.mxu0 %v383_v18  ;;  %v2775_v18 = vld [vmem:[%s5230_s1 + $0x8c] sm:$0xf] }
 0x128   :  { %v1448_v36 = vpop.f32.mrf.mxu2  ;;  %v4161_v34 = vor.u32 %v2775_v18, %v2450_v59 }
 0x129   :  { %v1449_v5 = vadd.f32 %v1448_v36, %v1400_v20  ;;  %v1497_v29 = vpop.f32.mrf.mxu3  ;;  %v1352_v35 = vpop.f32.mrf.mxu0  ;;  %v399_v20 = vpack.c.bf16 %v67_v63, %v65_v31  ;;  %v2781_v36 = vld [vmem:[%s5230_s1 + $0xb4] sm:$0xf0]  ;;  %v4156_v31 = vor.u32 %v2774_v16, %v2442_v28  ;;  %v125_v16 = vld [vmem:[%s5229_s0 + $0x388] sm:$0xff] }
 0x12a   :  { %v1353_v3 = vadd.f32 %v1352_v35, %v3671_v17  ;;  %v1401_v4 = vpop.f32.mrf.mxu1  ;;  %v2780_v17 = vld [vmem:[%s5230_s1 + $0xac] sm:$0xf0]  ;;  %v4158_v63 = vor.u32 %v2781_v36, %v2448_v58  ;;  %5341 = vst [vmem:[#allocation46_spill] sm:$0xff] %v4161_v34  ;;  %v127_v28 = vld [vmem:[%s5229_s0 + $0x398] sm:$0xff] }
 0x12b   :  { %v4122_v38 = vadd.f32 %v1497_v29, %v1449_v5  ;;  %1784 = vmatpush.bf16.msrb.mxu1 %v399_v20  ;;  %v4154_v29 = vor.u32 %v2780_v17, %v2440_v23  ;;  %5339 = vst [vmem:[#allocation44_spill] sm:$0xff] %v4156_v31  ;;  %v31_v17 = vld [vmem:[%s5229_s0 + $0x98] sm:$0xff]  ;;  %v429_v18 = vpack.c.bf16 %v127_v28, %v125_v16  ;;  %v2490_v16 = vld [vmem:[%s5230_s1 + $0x110] sm:$0xf0]  ;;  %v2496_v28 = vld [vmem:[%s5230_s1 + $0xe8] sm:$0xf] }
 0x12c   :  { %v1402_v1 = vadd.f32 %v1401_v4, %v1353_v3  ;;  %5340 = vst [vmem:[#allocation45_spill] sm:$0xff] %v4158_v63 }
 0x12d   :  { %5338 = vst [vmem:[#allocation43_spill] sm:$0xff] %v4154_v29  ;;  %1883 = vmatpush.bf16.msrb.mxu3 %v429_v18  ;;  %v2498_v18 = vld [vmem:[%s5230_s1 + $0x118] sm:$0xf0] }
 0x130   :  { %v1450_v5 = vpop.f32.mrf.mxu2 }
 0x131   :  { %v1451_v35 = vadd.f32 %v1450_v5, %v1402_v1  ;;  %v1499_v3 = vpop.f32.mrf.mxu3  ;;  %v1355_v4 = vpop.f32.mrf.mxu0  ;;  %v93_v1 = vld [vmem:[%s5229_s0 + $0x288] sm:$0xff] }
 0x132   :  { %v1356_v20 = vadd.f32 %v1355_v4, %v3689_v39  ;;  %v1404_v22 = vpop.f32.mrf.mxu1  ;;  %v95_v39 = vld [vmem:[%s5229_s0 + $0x298] sm:$0xff] }
 0x133   :  { %v4163_v33 = vadd.f32 %v1499_v3, %v1451_v35  ;;  %v413_v23 = vpack.c.bf16 %v95_v39, %v93_v1  ;;  %v61_v1 = vld [vmem:[%s5229_s0 + $0x188] sm:$0xff]  ;;  %v63_v39 = vld [vmem:[%s5229_s0 + $0x198] sm:$0xff] }
 0x134   :  { %v1405_v60 = vadd.f32 %v1404_v22, %v1356_v20  ;;  %1550 = vmatmul.bf16.gmra.mxu0 %v4154_v29  ;;  %v29_v22 = vld [vmem:[%s5229_s0 + $0x88] sm:$0xff] }
 0x135   :  { %1599 = vmatmul.bf16.gmra.mxu1 %v4156_v31  ;;  %1648 = vmatmul.bf16.gmra.mxu2 %v4158_v63  ;;  %v381_v36 = vpack.c.bf16 %v31_v17, %v29_v22  ;;  %v2786_v17 = vld [vmem:[%s5230_s1 + $0xe4] sm:$0xf] }
 0x136   :  { %2743 = vmatmul.msk.bf16.gmra.mxu3 %vm1120_vm0, %v4161_v34  ;;  %1834 = vmatpush.bf16.msrb.mxu2 %v413_v23  ;;  %v2488_v23 = vld [vmem:[%s5230_s1 + $0xe0] sm:$0xf] }
 0x137   :  { %1736 = vmatpush.bf16.msrb.mxu0 %v381_v36  ;;  %v2787_v36 = vld [vmem:[%s5230_s1 + $0xec] sm:$0xf] }
 0x138   :  { %v1453_v58 = vpop.f32.mrf.mxu2  ;;  %v4228_v63 = vor.u32 %v2787_v36, %v2498_v18 }
 0x139   :  { %v1454_v59 = vadd.f32 %v1453_v58, %v1405_v60  ;;  %v1502_v5 = vpop.f32.mrf.mxu3  ;;  %v1357_v35 = vpop.f32.mrf.mxu0  ;;  %v397_v60 = vpack.c.bf16 %v63_v39, %v61_v1  ;;  %v2793_v58 = vld [vmem:[%s5230_s1 + $0x114] sm:$0xf0]  ;;  %v4223_v1 = vor.u32 %v2786_v17, %v2490_v16  ;;  %v121_v17 = vld [vmem:[%s5229_s0 + $0x368] sm:$0xff] }
 0x13a   :  { %v1358_v3 = vadd.f32 %v1357_v35, %v3729_v56  ;;  %v1406_v4 = vpop.f32.mrf.mxu1  ;;  %v2792_v56 = vld [vmem:[%s5230_s1 + $0x10c] sm:$0xf0]  ;;  %v4225_v39 = vor.u32 %v2793_v58, %v2496_v28  ;;  %5345 = vst [vmem:[#allocation50_spill] sm:$0xff] %v4228_v63  ;;  %v123_v16 = vld [vmem:[%s5229_s0 + $0x378] sm:$0xff] }
 0x13b   :  { %v4189_v20 = vadd.f32 %v1502_v5, %v1454_v59  ;;  %1785 = vmatpush.bf16.msrb.mxu1 %v397_v60  ;;  %v4221_v5 = vor.u32 %v2792_v56, %v2488_v23  ;;  %5343 = vst [vmem:[#allocation48_spill] sm:$0xff] %v4223_v1  ;;  %v27_v56 = vld [vmem:[%s5229_s0 + $0x78] sm:$0xff]  ;;  %v427_v36 = vpack.c.bf16 %v123_v16, %v121_v17  ;;  %v2538_v17 = vld [vmem:[%s5230_s1 + $0x170] sm:$0xf0]  ;;  %v2544_v16 = vld [vmem:[%s5230_s1 + $0x148] sm:$0xf] }
 0x13c   :  { %v1407_v22 = vadd.f32 %v1406_v4, %v1358_v3  ;;  %5344 = vst [vmem:[#allocation49_spill] sm:$0xff] %v4225_v39 }
 0x13d   :  { %5342 = vst [vmem:[#allocation47_spill] sm:$0xff] %v4221_v5  ;;  %1884 = vmatpush.bf16.msrb.mxu3 %v427_v36  ;;  %v2546_v36 = vld [vmem:[%s5230_s1 + $0x178] sm:$0xf0] }
 0x140   :  { %v1455_v59 = vpop.f32.mrf.mxu2 }
 0x141   :  { %v1456_v35 = vadd.f32 %v1455_v59, %v1407_v22  ;;  %v1504_v3 = vpop.f32.mrf.mxu3  ;;  %v1360_v4 = vpop.f32.mrf.mxu0  ;;  %v89_v22 = vld [vmem:[%s5229_s0 + $0x268] sm:$0xff] }
 0x142   :  { %v1361_v60 = vadd.f32 %v1360_v4, %v3753_v37  ;;  %v1409_v34 = vpop.f32.mrf.mxu1  ;;  %v91_v37 = vld [vmem:[%s5229_s0 + $0x278] sm:$0xff] }
 0x143   :  { %v4230_v31 = vadd.f32 %v1504_v3, %v1456_v35  ;;  %v411_v23 = vpack.c.bf16 %v91_v37, %v89_v22  ;;  %v57_v22 = vld [vmem:[%s5229_s0 + $0x168] sm:$0xff]  ;;  %v59_v37 = vld [vmem:[%s5229_s0 + $0x178] sm:$0xff] }
 0x144   :  { %v1410_v29 = vadd.f32 %v1409_v34, %v1361_v60  ;;  %1555 = vmatmul.bf16.gmra.mxu0 %v4221_v5  ;;  %v25_v34 = vld [vmem:[%s5229_s0 + $0x68] sm:$0xff] }
 0x145   :  { %1604 = vmatmul.bf16.gmra.mxu1 %v4223_v1  ;;  %1653 = vmatmul.bf16.gmra.mxu2 %v4225_v39  ;;  %v379_v58 = vpack.c.bf16 %v27_v56, %v25_v34  ;;  %v2798_v56 = vld [vmem:[%s5230_s1 + $0x144] sm:$0xf] }
 0x146   :  { %2744 = vmatmul.msk.bf16.gmra.mxu3 %vm1120_vm0, %v4228_v63  ;;  %1835 = vmatpush.bf16.msrb.mxu2 %v411_v23  ;;  %v2536_v23 = vld [vmem:[%s5230_s1 + $0x140] sm:$0xf] }
 0x147   :  { %1737 = vmatpush.bf16.msrb.mxu0 %v379_v58  ;;  %v2799_v58 = vld [vmem:[%s5230_s1 + $0x14c] sm:$0xf] }
 0x148   :  { %v1458_v28 = vpop.f32.mrf.mxu2  ;;  %v4295_v39 = vor.u32 %v2799_v58, %v2546_v36 }
 0x149   :  { %v1459_v18 = vadd.f32 %v1458_v28, %v1410_v29  ;;  %v1507_v59 = vpop.f32.mrf.mxu3  ;;  %v1362_v35 = vpop.f32.mrf.mxu0  ;;  %v395_v29 = vpack.c.bf16 %v59_v37, %v57_v22  ;;  %v2805_v28 = vld [vmem:[%s5230_s1 + $0x174] sm:$0xf0]  ;;  %v4290_v22 = vor.u32 %v2798_v56, %v2538_v17  ;;  %v117_v56 = vld [vmem:[%s5229_s0 + $0x348] sm:$0xff] }
 0x14a   :  { %v1363_v3 = vadd.f32 %v1362_v35, %v3793_v30  ;;  %v1411_v4 = vpop.f32.mrf.mxu1  ;;  %v2804_v30 = vld [vmem:[%s5230_s1 + $0x16c] sm:$0xf0]  ;;  %v4292_v37 = vor.u32 %v2805_v28, %v2544_v16  ;;  %5349 = vst [vmem:[#allocation54_spill] sm:$0xff] %v4295_v39  ;;  %v119_v17 = vld [vmem:[%s5229_s0 + $0x358] sm:$0xff] }
 0x14b   :  { %v4256_v60 = vadd.f32 %v1507_v59, %v1459_v18  ;;  %1786 = vmatpush.bf16.msrb.mxu1 %v395_v29  ;;  %v4288_v59 = vor.u32 %v2804_v30, %v2536_v23  ;;  %5347 = vst [vmem:[#allocation52_spill] sm:$0xff] %v4290_v22  ;;  %v23_v30 = vld [vmem:[%s5229_s0 + $0x58] sm:$0xff]  ;;  %v425_v58 = vpack.c.bf16 %v119_v17, %v117_v56  ;;  %v2586_v56 = vld [vmem:[%s5230_s1 + $0x1d0] sm:$0xf0]  ;;  %v2592_v17 = vld [vmem:[%s5230_s1 + $0x1a8] sm:$0xf] }
 0x14c   :  { %v1412_v34 = vadd.f32 %v1411_v4, %v1363_v3  ;;  %5348 = vst [vmem:[#allocation53_spill] sm:$0xff] %v4292_v37 }
 0x14d   :  { %5346 = vst [vmem:[#allocation51_spill] sm:$0xff] %v4288_v59  ;;  %1885 = vmatpush.bf16.msrb.mxu3 %v425_v58  ;;  %v2594_v58 = vld [vmem:[%s5230_s1 + $0x1d8] sm:$0xf0] }
 0x150   :  { %v1460_v18 = vpop.f32.mrf.mxu2 }
 0x151   :  { %v1461_v35 = vadd.f32 %v1460_v18, %v1412_v34  ;;  %v1509_v3 = vpop.f32.mrf.mxu3  ;;  %v1365_v4 = vpop.f32.mrf.mxu0  ;;  %v85_v34 = vld [vmem:[%s5229_s0 + $0x248] sm:$0xff] }
 0x152   :  { %v1366_v29 = vadd.f32 %v1365_v4, %v3811_v32  ;;  %v1414_v63 = vpop.f32.mrf.mxu1  ;;  %v87_v32 = vld [vmem:[%s5229_s0 + $0x258] sm:$0xff] }
 0x153   :  { %v4297_v1 = vadd.f32 %v1509_v3, %v1461_v35  ;;  %v409_v23 = vpack.c.bf16 %v87_v32, %v85_v34  ;;  %v53_v34 = vld [vmem:[%s5229_s0 + $0x148] sm:$0xff]  ;;  %v55_v32 = vld [vmem:[%s5229_s0 + $0x158] sm:$0xff] }
 0x154   :  { %v1415_v5 = vadd.f32 %v1414_v63, %v1366_v29  ;;  %1560 = vmatmul.bf16.gmra.mxu0 %v4288_v59  ;;  %v21_v63 = vld [vmem:[%s5229_s0 + $0x48] sm:$0xff] }
 0x155   :  { %1609 = vmatmul.bf16.gmra.mxu1 %v4290_v22  ;;  %1658 = vmatmul.bf16.gmra.mxu2 %v4292_v37  ;;  %v377_v28 = vpack.c.bf16 %v23_v30, %v21_v63  ;;  %v2810_v30 = vld [vmem:[%s5230_s1 + $0x1a4] sm:$0xf] }
 0x156   :  { %2745 = vmatmul.msk.bf16.gmra.mxu3 %vm1120_vm0, %v4295_v39  ;;  %1836 = vmatpush.bf16.msrb.mxu2 %v409_v23  ;;  %v2584_v23 = vld [vmem:[%s5230_s1 + $0x1a0] sm:$0xf] }
 0x157   :  { %1738 = vmatpush.bf16.msrb.mxu0 %v377_v28  ;;  %v2811_v28 = vld [vmem:[%s5230_s1 + $0x1ac] sm:$0xf] }
 0x158   :  { %v1463_v16 = vpop.f32.mrf.mxu2  ;;  %v4362_v37 = vor.u32 %v2811_v28, %v2594_v58 }
 0x159   :  { %v1464_v36 = vadd.f32 %v1463_v16, %v1415_v5  ;;  %v1512_v18 = vpop.f32.mrf.mxu3  ;;  %v1367_v35 = vpop.f32.mrf.mxu0  ;;  %v393_v5 = vpack.c.bf16 %v55_v32, %v53_v34  ;;  %v2817_v16 = vld [vmem:[%s5230_s1 + $0x1d4] sm:$0xf0]  ;;  %v4357_v34 = vor.u32 %v2810_v30, %v2586_v56  ;;  %v113_v30 = vld [vmem:[%s5229_s0 + $0x328] sm:$0xff] }
 0x15a   :  { %v1368_v3 = vadd.f32 %v1367_v35, %v3851_v6  ;;  %v1416_v4 = vpop.f32.mrf.mxu1  ;;  %v2816_v6 = vld [vmem:[%s5230_s1 + $0x1cc] sm:$0xf0]  ;;  %v4359_v32 = vor.u32 %v2817_v16, %v2592_v17  ;;  %5353 = vst [vmem:[#allocation58_spill] sm:$0xff] %v4362_v37  ;;  %v115_v56 = vld [vmem:[%s5229_s0 + $0x338] sm:$0xff] }
 0x15b   :  { %v4323_v29 = vadd.f32 %v1512_v18, %v1464_v36  ;;  %1787 = vmatpush.bf16.msrb.mxu1 %v393_v5  ;;  %v4355_v18 = vor.u32 %v2816_v6, %v2584_v23  ;;  %5351 = vst [vmem:[#allocation56_spill] sm:$0xff] %v4357_v34  ;;  %v19_v6 = vld [vmem:[%s5229_s0 + $0x38] sm:$0xff]  ;;  %v423_v28 = vpack.c.bf16 %v115_v56, %v113_v30  ;;  %v2634_v30 = vld [vmem:[%s5230_s1 + $0x230] sm:$0xf0]  ;;  %v2640_v56 = vld [vmem:[%s5230_s1 + $0x208] sm:$0xf] }
 0x15c   :  { %v1417_v63 = vadd.f32 %v1416_v4, %v1368_v3  ;;  %5352 = vst [vmem:[#allocation57_spill] sm:$0xff] %v4359_v32 }
 0x15d   :  { %5350 = vst [vmem:[#allocation55_spill] sm:$0xff] %v4355_v18  ;;  %1886 = vmatpush.bf16.msrb.mxu3 %v423_v28  ;;  %v2642_v28 = vld [vmem:[%s5230_s1 + $0x238] sm:$0xf0] }
 0x160   :  { %v1465_v36 = vpop.f32.mrf.mxu2 }
 0x161   :  { %v1466_v35 = vadd.f32 %v1465_v36, %v1417_v63  ;;  %v1514_v3 = vpop.f32.mrf.mxu3  ;;  %v1370_v4 = vpop.f32.mrf.mxu0  ;;  %v81_v63 = vld [vmem:[%s5229_s0 + $0x228] sm:$0xff] }
 0x162   :  { %v1371_v5 = vadd.f32 %v1370_v4, %v3869_v19  ;;  %v1419_v39 = vpop.f32.mrf.mxu1  ;;  %v83_v19 = vld [vmem:[%s5229_s0 + $0x238] sm:$0xff] }
 0x163   :  { %v4364_v22 = vadd.f32 %v1514_v3, %v1466_v35  ;;  %v407_v23 = vpack.c.bf16 %v83_v19, %v81_v63  ;;  %v49_v63 = vld [vmem:[%s5229_s0 + $0x128] sm:$0xff]  ;;  %v51_v19 = vld [vmem:[%s5229_s0 + $0x138] sm:$0xff] }
 0x164   :  { %v1420_v59 = vadd.f32 %v1419_v39, %v1371_v5  ;;  %1565 = vmatmul.bf16.gmra.mxu0 %v4355_v18  ;;  %v17_v39 = vld [vmem:[%s5229_s0 + $0x28] sm:$0xff] }
 0x165   :  { %1614 = vmatmul.bf16.gmra.mxu1 %v4357_v34  ;;  %1663 = vmatmul.bf16.gmra.mxu2 %v4359_v32  ;;  %v375_v16 = vpack.c.bf16 %v19_v6, %v17_v39  ;;  %v2822_v6 = vld [vmem:[%s5230_s1 + $0x204] sm:$0xf] }
 0x166   :  { %2746 = vmatmul.msk.bf16.gmra.mxu3 %vm1120_vm0, %v4362_v37  ;;  %1837 = vmatpush.bf16.msrb.mxu2 %v407_v23  ;;  %v2632_v23 = vld [vmem:[%s5230_s1 + $0x200] sm:$0xf] }
 0x167   :  { %1739 = vmatpush.bf16.msrb.mxu0 %v375_v16  ;;  %v2823_v16 = vld [vmem:[%s5230_s1 + $0x20c] sm:$0xf] }
 0x168   :  { %v1468_v17 = vpop.f32.mrf.mxu2  ;;  %v4429_v32 = vor.u32 %v2823_v16, %v2642_v28 }
 0x169   :  { %v1469_v58 = vadd.f32 %v1468_v17, %v1420_v59  ;;  %v1517_v36 = vpop.f32.mrf.mxu3  ;;  %v1372_v35 = vpop.f32.mrf.mxu0  ;;  %v391_v59 = vpack.c.bf16 %v51_v19, %v49_v63  ;;  %v2829_v17 = vld [vmem:[%s5230_s1 + $0x234] sm:$0xf0]  ;;  %v4424_v63 = vor.u32 %v2822_v6, %v2634_v30  ;;  %v109_v6 = vld [vmem:[%s5229_s0 + $0x308] sm:$0xff] }
 0x16a   :  { %v1373_v3 = vadd.f32 %v1372_v35, %v3909_v62  ;;  %v1421_v4 = vpop.f32.mrf.mxu1  ;;  %v2828_v62 = vld [vmem:[%s5230_s1 + $0x22c] sm:$0xf0]  ;;  %v4426_v19 = vor.u32 %v2829_v17, %v2640_v56  ;;  %5357 = vst [vmem:[#allocation62_spill] sm:$0xff] %v4429_v32  ;;  %v111_v30 = vld [vmem:[%s5229_s0 + $0x318] sm:$0xff] }
 0x16b   :  { %v4390_v5 = vadd.f32 %v1517_v36, %v1469_v58  ;;  %1788 = vmatpush.bf16.msrb.mxu1 %v391_v59  ;;  %v4422_v36 = vor.u32 %v2828_v62, %v2632_v23  ;;  %5355 = vst [vmem:[#allocation60_spill] sm:$0xff] %v4424_v63  ;;  %v15_v62 = vld [vmem:[%s5229_s0 + $0x18] sm:$0xff]  ;;  %v421_v16 = vpack.c.bf16 %v111_v30, %v109_v6  ;;  %v2682_v6 = vld [vmem:[%s5230_s1 + $0x290] sm:$0xf0]  ;;  %v2688_v30 = vld [vmem:[%s5230_s1 + $0x268] sm:$0xf] }
 0x16c   :  { %v1422_v39 = vadd.f32 %v1421_v4, %v1373_v3  ;;  %5356 = vst [vmem:[#allocation61_spill] sm:$0xff] %v4426_v19 }
 0x16d   :  { %5354 = vst [vmem:[#allocation59_spill] sm:$0xff] %v4422_v36  ;;  %1887 = vmatpush.bf16.msrb.mxu3 %v421_v16  ;;  %v2690_v16 = vld [vmem:[%s5230_s1 + $0x298] sm:$0xf0] }
 0x170   :  { %v1470_v58 = vpop.f32.mrf.mxu2 }
 0x171   :  { %v1471_v35 = vadd.f32 %v1470_v58, %v1422_v39  ;;  %v1519_v3 = vpop.f32.mrf.mxu3  ;;  %v1375_v4 = vpop.f32.mrf.mxu0  ;;  %v77_v39 = vld [vmem:[%s5229_s0 + $0x208] sm:$0xff] }
 0x172   :  { %v1376_v59 = vadd.f32 %v1375_v4, %v3927_v7  ;;  %v1424_v37 = vpop.f32.mrf.mxu1  ;;  %v79_v7 = vld [vmem:[%s5229_s0 + $0x218] sm:$0xff] }
 0x173   :  { %v4431_v34 = vadd.f32 %v1519_v3, %v1471_v35  ;;  %v405_v23 = vpack.c.bf16 %v79_v7, %v77_v39  ;;  %v45_v39 = vld [vmem:[%s5229_s0 + $0x108] sm:$0xff]  ;;  %v47_v7 = vld [vmem:[%s5229_s0 + $0x118] sm:$0xff] }
 0x174   :  { %v1425_v18 = vadd.f32 %v1424_v37, %v1376_v59  ;;  %1570 = vmatmul.bf16.gmra.mxu0 %v4422_v36  ;;  %v13_v37 = vld [vmem:[%s5229_s0 + $0x8] sm:$0xff] }
 0x175   :  { %1619 = vmatmul.bf16.gmra.mxu1 %v4424_v63  ;;  %1668 = vmatmul.bf16.gmra.mxu2 %v4426_v19  ;;  %v373_v17 = vpack.c.bf16 %v15_v62, %v13_v37  ;;  %v2834_v62 = vld [vmem:[%s5230_s1 + $0x264] sm:$0xf] }
 0x176   :  { %2747 = vmatmul.msk.bf16.gmra.mxu3 %vm1120_vm0, %v4429_v32  ;;  %1838 = vmatpush.bf16.msrb.mxu2 %v405_v23  ;;  %v2680_v23 = vld [vmem:[%s5230_s1 + $0x260] sm:$0xf] }
 0x177   :  { %1740 = vmatpush.bf16.msrb.mxu0 %v373_v17  ;;  %v2835_v17 = vld [vmem:[%s5230_s1 + $0x26c] sm:$0xf] }
 0x178   :  { %v1473_v56 = vpop.f32.mrf.mxu2  ;;  %v4496_v19 = vor.u32 %v2835_v17, %v2690_v16 }
 0x179   :  { %v1474_v28 = vadd.f32 %v1473_v56, %v1425_v18  ;;  %v1522_v58 = vpop.f32.mrf.mxu3  ;;  %v1377_v35 = vpop.f32.mrf.mxu0  ;;  %v389_v18 = vpack.c.bf16 %v47_v7, %v45_v39  ;;  %v2841_v56 = vld [vmem:[%s5230_s1 + $0x294] sm:$0xf0]  ;;  %v4491_v39 = vor.u32 %v2834_v62, %v2682_v6  ;;  %v265_v62 = vld [vmem:[%s5229_s0 + $0x7e8] sm:$0xff] }
 0x17a   :  { %v1378_v3 = vadd.f32 %v1377_v35, %v3967_v0  ;;  %v1426_v4 = vpop.f32.mrf.mxu1  ;;  %v2840_v0 = vld [vmem:[%s5230_s1 + $0x28c] sm:$0xf0]  ;;  %v4493_v7 = vor.u32 %v2841_v56, %v2688_v30  ;;  %5361 = vst [vmem:[#allocation66_spill] sm:$0xff] %v4496_v19  ;;  %v267_v6 = vld [vmem:[%s5229_s0 + $0x7f8] sm:$0xff] }
 0x17b   :  { %v4457_v59 = vadd.f32 %v1522_v58, %v1474_v28  ;;  %1789 = vmatpush.bf16.msrb.mxu1 %v389_v18  ;;  %v4489_v58 = vor.u32 %v2840_v0, %v2680_v23  ;;  %5359 = vst [vmem:[#allocation64_spill] sm:$0xff] %v4491_v39  ;;  %v171_v0 = vld [vmem:[%s5229_s0 + $0x4f8] sm:$0xff]  ;;  %v499_v17 = vpack.c.bf16 %v267_v6, %v265_v62  ;;  %v2736_v62 = vld [vmem:[%s5230_s1 + $0x2c8] sm:$0xf] }
 0x17c   :  { %v1427_v37 = vadd.f32 %v1426_v4, %v1378_v3  ;;  %5360 = vst [vmem:[#allocation65_spill] sm:$0xff] %v4493_v7  ;;  %v2853_v6 = vld [vmem:[%s5230_s1 + $0x2f4] sm:$0xf0] }
 0x17d   :  { %5358 = vst [vmem:[#allocation63_spill] sm:$0xff] %v4489_v58  ;;  %2076 = vmatpush.bf16.msra.mxu3 %v499_v17  ;;  %v2738_v17 = vld [vmem:[%s5230_s1 + $0x2f8] sm:$0xf0] }
 0x180   :  { %v1475_v28 = vpop.f32.mrf.mxu2 }
 0x181   :  { %v1476_v35 = vadd.f32 %v1475_v28, %v1427_v37  ;;  %v1524_v3 = vpop.f32.mrf.mxu3  ;;  %v1380_v4 = vpop.f32.mrf.mxu0  ;;  %v233_v37 = vld [vmem:[%s5229_s0 + $0x6e8] sm:$0xff] }
 0x182   :  { %v1381_v18 = vadd.f32 %v1380_v4, %v3991_v55  ;;  %v1429_v32 = vpop.f32.mrf.mxu1  ;;  %v235_v55 = vld [vmem:[%s5229_s0 + $0x6f8] sm:$0xff] }
 0x183   :  { %v4498_v63 = vadd.f32 %v1524_v3, %v1476_v35  ;;  %v483_v23 = vpack.c.bf16 %v235_v55, %v233_v37  ;;  %v2728_v55 = vld [vmem:[%s5230_s1 + $0x2c0] sm:$0xf] }
 0x184   :  { %v1430_v36 = vadd.f32 %v1429_v32, %v1381_v18  ;;  %1575 = vmatmul.bf16.gmra.mxu0 %v4489_v58  ;;  %v169_v32 = vld [vmem:[%s5229_s0 + $0x4e8] sm:$0xff] }
 0x185   :  { %1624 = vmatmul.bf16.gmra.mxu1 %v4491_v39  ;;  %1673 = vmatmul.bf16.gmra.mxu2 %v4493_v7  ;;  %v451_v56 = vpack.c.bf16 %v171_v0, %v169_v32  ;;  %v2852_v32 = vld [vmem:[%s5230_s1 + $0x2ec] sm:$0xf0]  ;;  %v2730_v0 = vld [vmem:[%s5230_s1 + $0x2f0] sm:$0xf0]  ;;  %v4560_v7 = vor.u32 %v2853_v6, %v2736_v62  ;;  %v263_v62 = vld [vmem:[%s5229_s0 + $0x7d8] sm:$0xff] }
 0x186   :  { %2748 = vmatmul.msk.bf16.gmra.mxu3 %vm1120_vm0, %v4496_v19  ;;  %2027 = vmatpush.bf16.msra.mxu2 %v483_v23  ;;  %v203_v23 = vld [vmem:[%s5229_s0 + $0x5f8] sm:$0xff] }
 0x187   :  { %1929 = vmatpush.bf16.msra.mxu0 %v451_v56  ;;  %v2847_v56 = vld [vmem:[%s5230_s1 + $0x2cc] sm:$0xf] }
 0x188   :  { %v1478_v30 = vpop.f32.mrf.mxu2  ;;  %v4563_v39 = vor.u32 %v2847_v56, %v2738_v17 }
 0x189   :  { %v1479_v16 = vadd.f32 %v1478_v30, %v1430_v36  ;;  %v1527_v28 = vpop.f32.mrf.mxu3  ;;  %v1382_v35 = vpop.f32.mrf.mxu0  ;;  %v2846_v36 = vld [vmem:[%s5230_s1 + $0x2c4] sm:$0xf] }
 0x18a   :  { %v1383_v3 = vadd.f32 %v1382_v35, %v4031_v61  ;;  %v1431_v4 = vpop.f32.mrf.mxu1  ;;  %v201_v61 = vld [vmem:[%s5229_s0 + $0x5e8] sm:$0xff]  ;;  %v4558_v19 = vor.u32 %v2846_v36, %v2730_v0  ;;  %v167_v36 = vld [vmem:[%s5229_s0 + $0x4d8] sm:$0xff] }
 0x18b   :  { %v4524_v18 = vadd.f32 %v1527_v28, %v1479_v16  ;;  %v467_v30 = vpack.c.bf16 %v203_v23, %v201_v61  ;;  %v4556_v28 = vor.u32 %v2852_v32, %v2728_v55  ;;  %v165_v55 = vld [vmem:[%s5229_s0 + $0x4c8] sm:$0xff] }
 0x18c   :  { %v1432_v37 = vadd.f32 %v1431_v4, %v1383_v3  ;;  %v261_v0 = vld [vmem:[%s5229_s0 + $0x7c8] sm:$0xff] }
 0x18d   :  { %1978 = vmatpush.bf16.msra.mxu1 %v467_v30  ;;  %v449_v30 = vpack.c.bf16 %v167_v36, %v165_v55  ;;  %v497_v56 = vpack.c.bf16 %v263_v62, %v261_v0 }
 0x18f   :  { %1930 = vmatpush.bf16.msra.mxu0 %v449_v30  ;;  %2077 = vmatpush.bf16.msra.mxu3 %v497_v56  ;;  %v225_v30 = vld [vmem:[%s5229_s0 + $0x6a8] sm:$0xff]  ;;  %v227_v56 = vld [vmem:[%s5229_s0 + $0x6b8] sm:$0xff] }
 0x190   :  { %v1480_v16 = vpop.f32.mrf.mxu2 }
 0x191   :  { %v1481_v35 = vadd.f32 %v1480_v16, %v1432_v37  ;;  %v1529_v3 = vpop.f32.mrf.mxu3  ;;  %v1385_v4 = vpop.f32.mrf.mxu0  ;;  %v229_v37 = vld [vmem:[%s5229_s0 + $0x6c8] sm:$0xff] }
 0x192   :  { %v1386_v61 = vadd.f32 %v1385_v4, %v4055_v2  ;;  %v1434_v23 = vpop.f32.mrf.mxu1  ;;  %v231_v2 = vld [vmem:[%s5229_s0 + $0x6d8] sm:$0xff] }
 0x193   :  { %v4565_v58 = vadd.f32 %v1529_v3, %v1481_v35  ;;  %v481_v32 = vpack.c.bf16 %v231_v2, %v229_v37  ;;  %v197_v37 = vld [vmem:[%s5229_s0 + $0x5c8] sm:$0xff]  ;;  %v199_v2 = vld [vmem:[%s5229_s0 + $0x5d8] sm:$0xff] }
 0x194   :  { %v1435_v47 = vadd.f32 %v1434_v23, %v1386_v61  ;;  %1580 = vmatmul.bf16.gmra.mxu0 %v4556_v28 }
 0x195   :  { %1629 = vmatmul.bf16.gmra.mxu1 %v4558_v19  ;;  %1678 = vmatmul.bf16.gmra.mxu2 %v4560_v7 }
 0x196   :  { %2749 = vmatmul.msk.bf16.gmra.mxu3 %vm1120_vm0, %v4563_v39  ;;  %2028 = vmatpush.bf16.msra.mxu2 %v481_v32 }
 0x198   :  { %v1483_v6 = vpop.f32.mrf.mxu2 }
 0x199   :  { %v1484_v17 = vadd.f32 %v1483_v6, %v1435_v47  ;;  %v1532_v16 = vpop.f32.mrf.mxu3  ;;  %v1387_v35 = vpop.f32.mrf.mxu0  ;;  %v465_v47 = vpack.c.bf16 %v199_v2, %v197_v37 }
 0x19a   :  { %v1388_v3 = vadd.f32 %v1387_v35, %v4096_v21  ;;  %v1436_v4 = vpop.f32.mrf.mxu1 }
 0x19b   :  { %v4591_v61 = vadd.f32 %v1532_v16, %v1484_v17  ;;  %1979 = vmatpush.bf16.msra.mxu1 %v465_v47 }
 0x19c   :  { %v1437_v23 = vadd.f32 %v1436_v4, %v1388_v3 }
 0x1a0   :  { %v1485_v55 = vpop.f32.mrf.mxu2 }
 0x1a1   :  { %v1486_v32 = vadd.f32 %v1485_v55, %v1437_v23  ;;  %v1534_v36 = vpop.f32.mrf.mxu3  ;;  %v1546_v21 = vpop.f32.mrf.mxu0 }
 0x1a2   :  { %v1595_v0 = vpop.f32.mrf.mxu1  ;;  %v1547_v6 = vadd.f32 %v1546_v21, %v4122_v38  ;;  %v161_v38 = vld [vmem:[%s5229_s0 + $0x4a8] sm:$0xff] }
 0x1a3   :  { %v4599_v62 = vadd.f32 %v1534_v36, %v1486_v32  ;;  %v193_v32 = vld [vmem:[%s5229_s0 + $0x5a8] sm:$0xff]  ;;  %v195_v36 = vld [vmem:[%s5229_s0 + $0x5b8] sm:$0xff] }
 0x1a4   :  { %1741 = vmatmul.bf16.vlgmr.msrb.gmra.mxu0 %v3106_v48  ;;  %v1596_v17 = vadd.f32 %v1595_v0, %v1547_v6  ;;  %v479_v48 = vpack.c.bf16 %v227_v56, %v225_v30  ;;  %v463_v21 = vpack.c.bf16 %v195_v36, %v193_v32  ;;  %v189_v32 = vld [vmem:[%s5229_s0 + $0x588] sm:$0xff]  ;;  %v191_v36 = vld [vmem:[%s5229_s0 + $0x598] sm:$0xff] }
 0x1a5   :  { %1790 = vmatmul.bf16.vlgmr.msrb.gmra.mxu1 %v3117_v53  ;;  %1839 = vmatmul.bf16.vlgmr.msrb.gmra.mxu2 %v3119_v54  ;;  %v163_v53 = vld [vmem:[%s5229_s0 + $0x4b8] sm:$0xff]  ;;  %v257_v54 = vld [vmem:[%s5229_s0 + $0x7a8] sm:$0xff] }
 0x1a6   :  { %1888 = vmatmul.bf16.vlgmr.msrb.gmra.mxu3 %v3127_v57  ;;  %v259_v57 = vld [vmem:[%s5229_s0 + $0x7b8] sm:$0xff]  ;;  %v447_v35 = vpack.c.bf16 %v163_v53, %v161_v38  ;;  %2029 = vmatpush.bf16.msra.mxu2 %v479_v48  ;;  %v221_v53 = vld [vmem:[%s5229_s0 + $0x688] sm:$0xff] }
 0x1a7   :  { %v495_v3 = vpack.c.bf16 %v259_v57, %v257_v54  ;;  %1980 = vmatpush.bf16.msra.mxu1 %v463_v21  ;;  %v461_v21 = vpack.c.bf16 %v191_v36, %v189_v32 }
 0x1a8   :  { %v1644_v16 = vpop.f32.mrf.mxu2  ;;  %1931 = vmatpush.bf16.msra.mxu0 %v447_v35 }
 0x1a9   :  { %v1645_v4 = vadd.f32 %v1644_v16, %v1596_v17  ;;  %v1693_v23 = vpop.f32.mrf.mxu3  ;;  %v1548_v37 = vpop.f32.mrf.mxu0  ;;  %2078 = vmatpush.bf16.msra.mxu3 %v495_v3 }
 0x1aa   :  { %v1597_v2 = vpop.f32.mrf.mxu1  ;;  %v1549_v55 = vadd.f32 %v1548_v37, %v4163_v33 }
 0x1ab   :  { %v1694_v47 = vadd.f32 %v1693_v23, %v1645_v4  ;;  %1981 = vmatpush.bf16.msra.mxu1 %v461_v21 }
 0x1ac   :  { %v1598_v0 = vadd.f32 %v1597_v2, %v1549_v55 }
 0x1ad   :  { %2321 = vst [vmem:[%s5231_s2] sm:$0xff] %v1694_v47 }
 0x1b0   :  { %v1646_v6 = vpop.f32.mrf.mxu2 }
 0x1b1   :  { %v1647_v30 = vadd.f32 %v1646_v6, %v1598_v0  ;;  %v1695_v56 = vpop.f32.mrf.mxu3  ;;  %v1551_v38 = vpop.f32.mrf.mxu0 }
 0x1b2   :  { %v1600_v33 = vpop.f32.mrf.mxu1  ;;  %v1552_v48 = vadd.f32 %v1551_v38, %v4189_v20  ;;  %v223_v20 = vld [vmem:[%s5229_s0 + $0x698] sm:$0xff] }
 0x1b3   :  { %v1696_v17 = vadd.f32 %v1695_v56, %v1647_v30  ;;  %v477_v57 = vpack.c.bf16 %v223_v20, %v221_v53 }
 0x1b4   :  { %1746 = vmatmul.bf16.gmra.mxu0 %v3193_v24  ;;  %v157_v24 = vld [vmem:[%s5229_s0 + $0x488] sm:$0xff]  ;;  %v1601_v54 = vadd.f32 %v1600_v33, %v1552_v48 }
 0x1b5   :  { %2324 = vst [vmem:[%s5231_s2 + $0x10] sm:$0xff] %v1696_v17  ;;  %1795 = vmatmul.bf16.gmra.mxu1 %v3195_v25  ;;  %1844 = vmatmul.bf16.gmra.mxu2 %v3197_v26  ;;  %v159_v25 = vld [vmem:[%s5229_s0 + $0x498] sm:$0xff]  ;;  %v253_v26 = vld [vmem:[%s5229_s0 + $0x788] sm:$0xff] }
 0x1b6   :  { %1893 = vmatmul.bf16.gmra.mxu3 %v3199_v27  ;;  %v255_v27 = vld [vmem:[%s5229_s0 + $0x798] sm:$0xff]  ;;  %v445_v35 = vpack.c.bf16 %v159_v25, %v157_v24  ;;  %2030 = vmatpush.bf16.msra.mxu2 %v477_v57  ;;  %v217_v48 = vld [vmem:[%s5229_s0 + $0x668] sm:$0xff] }
 0x1b7   :  { %v493_v3 = vpack.c.bf16 %v255_v27, %v253_v26 }
 0x1b8   :  { %v1649_v16 = vpop.f32.mrf.mxu2  ;;  %1932 = vmatpush.bf16.msra.mxu0 %v445_v35 }
 0x1b9   :  { %v1650_v4 = vadd.f32 %v1649_v16, %v1601_v54  ;;  %v1698_v23 = vpop.f32.mrf.mxu3  ;;  %v1553_v37 = vpop.f32.mrf.mxu0  ;;  %2079 = vmatpush.bf16.msra.mxu3 %v493_v3 }
 0x1ba   :  { %v1602_v2 = vpop.f32.mrf.mxu1  ;;  %v1554_v55 = vadd.f32 %v1553_v37, %v4230_v31 }
 0x1bb   :  { %v1699_v47 = vadd.f32 %v1698_v23, %v1650_v4  ;;  %v185_v4 = vld [vmem:[%s5229_s0 + $0x568] sm:$0xff]  ;;  %v187_v23 = vld [vmem:[%s5229_s0 + $0x578] sm:$0xff] }
 0x1bc   :  { %v1603_v0 = vadd.f32 %v1602_v2, %v1554_v55  ;;  %v459_v37 = vpack.c.bf16 %v187_v23, %v185_v4 }
 0x1bd   :  { %2326 = vst [vmem:[%s5231_s2 + $0x20] sm:$0xff] %v1699_v47 }
 0x1be   :  { %1982 = vmatpush.bf16.msra.mxu1 %v459_v37 }
 0x1c0   :  { %v1651_v6 = vpop.f32.mrf.mxu2 }
 0x1c1   :  { %v1652_v30 = vadd.f32 %v1651_v6, %v1603_v0  ;;  %v1700_v56 = vpop.f32.mrf.mxu3  ;;  %v1556_v38 = vpop.f32.mrf.mxu0  ;;  %v213_v6 = vld [vmem:[%s5229_s0 + $0x648] sm:$0xff] }
 0x1c2   :  { %v1605_v31 = vpop.f32.mrf.mxu1  ;;  %v1557_v17 = vadd.f32 %v1556_v38, %v4256_v60  ;;  %v219_v60 = vld [vmem:[%s5229_s0 + $0x678] sm:$0xff] }
 0x1c3   :  { %v1701_v33 = vadd.f32 %v1700_v56, %v1652_v30  ;;  %v475_v20 = vpack.c.bf16 %v219_v60, %v217_v48 }
 0x1c4   :  { %1751 = vmatmul.bf16.gmra.mxu0 %v3253_v49  ;;  %v153_v49 = vld [vmem:[%s5229_s0 + $0x468] sm:$0xff]  ;;  %v1606_v53 = vadd.f32 %v1605_v31, %v1557_v17 }
 0x1c5   :  { %2328 = vst [vmem:[%s5231_s2 + $0x30] sm:$0xff] %v1701_v33  ;;  %1800 = vmatmul.bf16.gmra.mxu1 %v3255_v50  ;;  %1849 = vmatmul.bf16.gmra.mxu2 %v3257_v51  ;;  %v155_v50 = vld [vmem:[%s5229_s0 + $0x478] sm:$0xff]  ;;  %v249_v51 = vld [vmem:[%s5229_s0 + $0x768] sm:$0xff] }
 0x1c6   :  { %1898 = vmatmul.bf16.gmra.mxu3 %v3259_v52  ;;  %v251_v52 = vld [vmem:[%s5229_s0 + $0x778] sm:$0xff]  ;;  %v443_v54 = vpack.c.bf16 %v155_v50, %v153_v49  ;;  %2031 = vmatpush.bf16.msra.mxu2 %v475_v20  ;;  %v181_v50 = vld [vmem:[%s5229_s0 + $0x548] sm:$0xff] }
 0x1c7   :  { %v491_v57 = vpack.c.bf16 %v251_v52, %v249_v51  ;;  %v183_v51 = vld [vmem:[%s5229_s0 + $0x558] sm:$0xff] }
 0x1c8   :  { %v1654_v24 = vpop.f32.mrf.mxu2  ;;  %1933 = vmatpush.bf16.msra.mxu0 %v443_v54  ;;  %v457_v52 = vpack.c.bf16 %v183_v51, %v181_v50 }
 0x1c9   :  { %v1655_v25 = vadd.f32 %v1654_v24, %v1606_v53  ;;  %v1703_v26 = vpop.f32.mrf.mxu3  ;;  %v1558_v27 = vpop.f32.mrf.mxu0  ;;  %2080 = vmatpush.bf16.msra.mxu3 %v491_v57 }
 0x1ca   :  { %v1607_v16 = vpop.f32.mrf.mxu1  ;;  %v1559_v3 = vadd.f32 %v1558_v27, %v4297_v1  ;;  %1983 = vmatpush.bf16.msra.mxu1 %v457_v52 }
 0x1cb   :  { %v1704_v35 = vadd.f32 %v1703_v26, %v1655_v25 }
 0x1cc   :  { %v1608_v2 = vadd.f32 %v1607_v16, %v1559_v3 }
 0x1cd   :  { %2330 = vst [vmem:[%s5231_s2 + $0x40] sm:$0xff] %v1704_v35  ;;  %v209_v35 = vld [vmem:[%s5229_s0 + $0x628] sm:$0xff] }
 0x1d0   :  { %v1656_v47 = vpop.f32.mrf.mxu2 }
 0x1d1   :  { %v1657_v55 = vadd.f32 %v1656_v47, %v1608_v2  ;;  %v1705_v32 = vpop.f32.mrf.mxu3  ;;  %v1561_v36 = vpop.f32.mrf.mxu0 }
 0x1d2   :  { %v1610_v1 = vpop.f32.mrf.mxu1  ;;  %v1562_v0 = vadd.f32 %v1561_v36, %v4323_v29  ;;  %v215_v29 = vld [vmem:[%s5229_s0 + $0x658] sm:$0xff] }
 0x1d3   :  { %v1706_v21 = vadd.f32 %v1705_v32, %v1657_v55  ;;  %v473_v56 = vpack.c.bf16 %v215_v29, %v213_v6  ;;  %v179_v6 = vld [vmem:[%s5229_s0 + $0x538] sm:$0xff] }
 0x1d4   :  { %1756 = vmatmul.bf16.gmra.mxu0 %v3313_v12  ;;  %v149_v12 = vld [vmem:[%s5229_s0 + $0x448] sm:$0xff]  ;;  %v1611_v30 = vadd.f32 %v1610_v1, %v1562_v0 }
 0x1d5   :  { %2332 = vst [vmem:[%s5231_s2 + $0x50] sm:$0xff] %v1706_v21  ;;  %1805 = vmatmul.bf16.gmra.mxu1 %v3315_v13  ;;  %1854 = vmatmul.bf16.gmra.mxu2 %v3317_v14  ;;  %v151_v13 = vld [vmem:[%s5229_s0 + $0x458] sm:$0xff]  ;;  %v245_v14 = vld [vmem:[%s5229_s0 + $0x748] sm:$0xff] }
 0x1d6   :  { %1903 = vmatmul.bf16.gmra.mxu3 %v3319_v15  ;;  %v247_v15 = vld [vmem:[%s5229_s0 + $0x758] sm:$0xff]  ;;  %v441_v31 = vpack.c.bf16 %v151_v13, %v149_v12  ;;  %2032 = vmatpush.bf16.msra.mxu2 %v473_v56  ;;  %v177_v0 = vld [vmem:[%s5229_s0 + $0x528] sm:$0xff] }
 0x1d7   :  { %v489_v33 = vpack.c.bf16 %v247_v15, %v245_v14  ;;  %v455_v29 = vpack.c.bf16 %v179_v6, %v177_v0  ;;  %v329_v0 = vld [vmem:[%s5229_s0 + $0x9e8] sm:$0xff]  ;;  %v331_v6 = vld [vmem:[%s5229_s0 + $0x9f8] sm:$0xff] }
 0x1d8   :  { %v1659_v38 = vpop.f32.mrf.mxu2  ;;  %1934 = vmatpush.bf16.msra.mxu0 %v441_v31  ;;  %v205_v31 = vld [vmem:[%s5229_s0 + $0x608] sm:$0xff] }
 0x1d9   :  { %v1660_v17 = vadd.f32 %v1659_v38, %v1611_v30  ;;  %v1708_v48 = vpop.f32.mrf.mxu3  ;;  %v1563_v60 = vpop.f32.mrf.mxu0  ;;  %2081 = vmatpush.bf16.msra.mxu3 %v489_v33  ;;  %1984 = vmatpush.bf16.msra.mxu1 %v455_v29  ;;  %v531_v29 = vpack.c.bf16 %v331_v6, %v329_v0 }
 0x1da   :  { %v1612_v49 = vpop.f32.mrf.mxu1  ;;  %v1564_v20 = vadd.f32 %v1563_v60, %v4364_v22 }
 0x1db   :  { %v1709_v53 = vadd.f32 %v1708_v48, %v1660_v17 }
 0x1dc   :  { %v1613_v24 = vadd.f32 %v1612_v49, %v1564_v20 }
 0x1dd   :  { %2334 = vst [vmem:[%s5231_s2 + $0x60] sm:$0xff] %v1709_v53 }
 0x1e0   :  { %v1661_v54 = vpop.f32.mrf.mxu2 }
 0x1e1   :  { %v1662_v57 = vadd.f32 %v1661_v54, %v1613_v24  ;;  %v1710_v25 = vpop.f32.mrf.mxu3  ;;  %v1566_v26 = vpop.f32.mrf.mxu0  ;;  %v173_v54 = vld [vmem:[%s5229_s0 + $0x508] sm:$0xff] }
 0x1e2   :  { %v1615_v22 = vpop.f32.mrf.mxu1  ;;  %v1567_v16 = vadd.f32 %v1566_v26, %v4390_v5  ;;  %v211_v5 = vld [vmem:[%s5229_s0 + $0x638] sm:$0xff] }
 0x1e3   :  { %v1711_v27 = vadd.f32 %v1710_v25, %v1662_v57  ;;  %v471_v4 = vpack.c.bf16 %v211_v5, %v209_v35  ;;  %v175_v57 = vld [vmem:[%s5229_s0 + $0x518] sm:$0xff] }
 0x1e4   :  { %1761 = vmatmul.bf16.gmra.mxu0 %v3373_v40  ;;  %v145_v40 = vld [vmem:[%s5229_s0 + $0x428] sm:$0xff]  ;;  %v1616_v3 = vadd.f32 %v1615_v22, %v1567_v16  ;;  %v453_v25 = vpack.c.bf16 %v175_v57, %v173_v54  ;;  %v327_v54 = vld [vmem:[%s5229_s0 + $0x9d8] sm:$0xff] }
 0x1e5   :  { %2336 = vst [vmem:[%s5231_s2 + $0x70] sm:$0xff] %v1711_v27  ;;  %1810 = vmatmul.bf16.gmra.mxu1 %v3375_v41  ;;  %1859 = vmatmul.bf16.gmra.mxu2 %v3377_v42  ;;  %v147_v41 = vld [vmem:[%s5229_s0 + $0x438] sm:$0xff]  ;;  %v241_v42 = vld [vmem:[%s5229_s0 + $0x728] sm:$0xff] }
 0x1e6   :  { %1908 = vmatmul.bf16.gmra.mxu3 %v3379_v43  ;;  %v243_v43 = vld [vmem:[%s5229_s0 + $0x738] sm:$0xff]  ;;  %v439_v37 = vpack.c.bf16 %v147_v41, %v145_v40  ;;  %2033 = vmatpush.bf16.msra.mxu2 %v471_v4  ;;  %v361_v4 = vld [vmem:[%s5229_s0 + $0xae8] sm:$0xff] }
 0x1e7   :  { %v487_v2 = vpack.c.bf16 %v243_v43, %v241_v42  ;;  %1985 = vmatpush.bf16.msra.mxu1 %v453_v25  ;;  %v371_v43 = vld [vmem:[%s5229_s0 + $0xb38] sm:$0xff] }
 0x1e8   :  { %v1664_v23 = vpop.f32.mrf.mxu2  ;;  %1935 = vmatpush.bf16.msra.mxu0 %v439_v37 }
 0x1e9   :  { %v1665_v47 = vadd.f32 %v1664_v23, %v1616_v3  ;;  %v1713_v55 = vpop.f32.mrf.mxu3  ;;  %v1568_v32 = vpop.f32.mrf.mxu0  ;;  %2082 = vmatpush.bf16.msra.mxu3 %v487_v2  ;;  %v5362_v3 = vld [vmem:[#allocation2_spill] sm:$0xff] }
 0x1ea   :  { %v1617_v36 = vpop.f32.mrf.mxu1  ;;  %v1569_v21 = vadd.f32 %v1568_v32, %v4431_v34 }
 0x1eb   :  { %v1714_v1 = vadd.f32 %v1713_v55, %v1665_v47  ;;  %2174 = vmatpush.bf16.msrb.mxu1 %v531_v29 }
 0x1ec   :  { %v1618_v12 = vadd.f32 %v1617_v36, %v1569_v21 }
 0x1ed   :  { %2338 = vst [vmem:[%s5231_s2 + $0x80] sm:$0xff] %v1714_v1 }
 0x1f0   :  { %v1666_v30 = vpop.f32.mrf.mxu2 }
 0x1f1   :  { %v1667_v56 = vadd.f32 %v1666_v30, %v1618_v12  ;;  %v1715_v13 = vpop.f32.mrf.mxu3  ;;  %v1571_v14 = vpop.f32.mrf.mxu0 }
 0x1f2   :  { %v1620_v34 = vpop.f32.mrf.mxu1  ;;  %v1572_v38 = vadd.f32 %v1571_v14, %v4457_v59  ;;  %v207_v59 = vld [vmem:[%s5229_s0 + $0x618] sm:$0xff] }
 0x1f3   :  { %v1716_v15 = vadd.f32 %v1715_v13, %v1667_v56  ;;  %v469_v17 = vpack.c.bf16 %v207_v59, %v205_v31  ;;  %v5364_v31 = vld [vmem:[#allocation4_spill] sm:$0xff]  ;;  %v5365_v59 = vld [vmem:[#allocation5_spill] sm:$0xff] }
 0x1f4   :  { %1766 = vmatmul.bf16.gmra.mxu0 %v3433_v8  ;;  %v141_v8 = vld [vmem:[%s5229_s0 + $0x408] sm:$0xff]  ;;  %v1621_v33 = vadd.f32 %v1620_v34, %v1572_v38 }
 0x1f5   :  { %2340 = vst [vmem:[%s5231_s2 + $0x90] sm:$0xff] %v1716_v15  ;;  %1815 = vmatmul.bf16.gmra.mxu1 %v3435_v9  ;;  %1864 = vmatmul.bf16.gmra.mxu2 %v3437_v10  ;;  %v143_v9 = vld [vmem:[%s5229_s0 + $0x418] sm:$0xff]  ;;  %v237_v10 = vld [vmem:[%s5229_s0 + $0x708] sm:$0xff] }
 0x1f6   :  { %1913 = vmatmul.bf16.gmra.mxu3 %v3439_v11  ;;  %v239_v11 = vld [vmem:[%s5229_s0 + $0x718] sm:$0xff]  ;;  %v437_v60 = vpack.c.bf16 %v143_v9, %v141_v8  ;;  %2034 = vmatpush.bf16.msra.mxu2 %v469_v17  ;;  %v5363_v38 = vld [vmem:[#allocation3_spill] sm:$0xff]  ;;  %v5366_v8 = vld [vmem:[#allocation6_spill] sm:$0xff] }
 0x1f7   :  { %v485_v49 = vpack.c.bf16 %v239_v11, %v237_v10  ;;  %v293_v17 = vld [vmem:[%s5229_s0 + $0x8c8] sm:$0xff]  ;;  %v295_v11 = vld [vmem:[%s5229_s0 + $0x8d8] sm:$0xff] }
 0x1f8   :  { %v1669_v48 = vpop.f32.mrf.mxu2  ;;  %1936 = vmatpush.bf16.msra.mxu0 %v437_v60  ;;  %v513_v60 = vpack.c.bf16 %v295_v11, %v293_v17 }
 0x1f9   :  { %v1670_v53 = vadd.f32 %v1669_v48, %v1621_v33  ;;  %v1718_v20 = vpop.f32.mrf.mxu3  ;;  %v1573_v50 = vpop.f32.mrf.mxu0  ;;  %2083 = vmatpush.bf16.msra.mxu3 %v485_v49  ;;  %v357_v33 = vld [vmem:[%s5229_s0 + $0xac8] sm:$0xff] }
 0x1fa   :  { %v1622_v51 = vpop.f32.mrf.mxu1  ;;  %v1574_v24 = vadd.f32 %v1573_v50, %v4498_v63 }
 0x1fb   :  { %v1719_v52 = vadd.f32 %v1718_v20, %v1670_v53 }
 0x1fc   :  { %v1623_v26 = vadd.f32 %v1622_v51, %v1574_v24  ;;  %v325_v24 = vld [vmem:[%s5229_s0 + $0x9c8] sm:$0xff] }
 0x1fd   :  { %2342 = vst [vmem:[%s5231_s2 + $0xa0] sm:$0xff] %v1719_v52  ;;  %v529_v57 = vpack.c.bf16 %v327_v54, %v325_v24 }
 0x1ff   :  { %2175 = vmatpush.bf16.msrb.mxu1 %v529_v57 }
 0x200   :  { %v1671_v22 = vpop.f32.mrf.mxu2 }
 0x201   :  { %v1672_v27 = vadd.f32 %v1671_v22, %v1623_v26  ;;  %v1720_v16 = vpop.f32.mrf.mxu3  ;;  %v1576_v35 = vpop.f32.mrf.mxu0 }
 0x202   :  { %v1625_v63 = vpop.f32.mrf.mxu1  ;;  %v1577_v40 = vadd.f32 %v1576_v35, %v4524_v18  ;;  %v363_v18 = vld [vmem:[%s5229_s0 + $0xaf8] sm:$0xff] }
 0x203   :  { %v1721_v5 = vadd.f32 %v1720_v16, %v1672_v27  ;;  %v547_v42 = vpack.c.bf16 %v363_v18, %v361_v4  ;;  %v5370_v4 = vld [vmem:[#allocation10_spill] sm:$0xff]  ;;  %v353_v18 = vld [vmem:[%s5229_s0 + $0xaa8] sm:$0xff] }
 0x204   :  { %1771 = vmatmul.bf16.gmra.mxu0 %v3493_v44  ;;  %v297_v44 = vld [vmem:[%s5229_s0 + $0x8e8] sm:$0xff]  ;;  %v1626_v41 = vadd.f32 %v1625_v63, %v1577_v40  ;;  %v5368_v40 = vld [vmem:[#allocation8_spill] sm:$0xff] }
 0x205   :  { %2344 = vst [vmem:[%s5231_s2 + $0xb0] sm:$0xff] %v1721_v5  ;;  %1820 = vmatmul.bf16.gmra.mxu1 %v3495_v45  ;;  %1869 = vmatmul.bf16.gmra.mxu2 %v3497_v46  ;;  %v299_v45 = vld [vmem:[%s5229_s0 + $0x8f8] sm:$0xff]  ;;  %v369_v46 = vld [vmem:[%s5229_s0 + $0xb28] sm:$0xff] }
 0x206   :  { %1918 = vmatmul.bf16.gmra.mxu3 %v5362_v3  ;;  %v515_v37 = vpack.c.bf16 %v299_v45, %v297_v44  ;;  %v551_v2 = vpack.c.bf16 %v371_v43, %v369_v46  ;;  %2223 = vmatpush.bf16.msrb.mxu2 %v547_v42  ;;  %v5367_v5 = vld [vmem:[#allocation7_spill] sm:$0xff]  ;;  %v5369_v3 = vld [vmem:[#allocation9_spill] sm:$0xff] }
 0x207   :  { %v355_v44 = vld [vmem:[%s5229_s0 + $0xab8] sm:$0xff] }
 0x208   :  { %v1674_v23 = vpop.f32.mrf.mxu2  ;;  %2125 = vmatpush.bf16.msrb.mxu0 %v515_v37  ;;  %2278 = vmatpush.bf16.msrb.mxu3 %v551_v2  ;;  %v543_v42 = vpack.c.bf16 %v355_v44, %v353_v18  ;;  %v291_v45 = vld [vmem:[%s5229_s0 + $0x8b8] sm:$0xff] }
 0x209   :  { %v1675_v47 = vadd.f32 %v1674_v23, %v1626_v41  ;;  %v1723_v55 = vpop.f32.mrf.mxu3  ;;  %v1578_v32 = vpop.f32.mrf.mxu0  ;;  %v289_v41 = vld [vmem:[%s5229_s0 + $0x8a8] sm:$0xff]  ;;  %v367_v18 = vld [vmem:[%s5229_s0 + $0xb18] sm:$0xff] }
 0x20a   :  { %v1627_v36 = vpop.f32.mrf.mxu1  ;;  %v1579_v21 = vadd.f32 %v1578_v32, %v4565_v58  ;;  %v511_v43 = vpack.c.bf16 %v291_v45, %v289_v41 }
 0x20b   :  { %v1724_v1 = vadd.f32 %v1723_v55, %v1675_v47 }
 0x20c   :  { %v1628_v12 = vadd.f32 %v1627_v36, %v1579_v21  ;;  %2126 = vmatpush.bf16.msrb.mxu0 %v513_v60  ;;  %v321_v36 = vld [vmem:[%s5229_s0 + $0x9a8] sm:$0xff] }
 0x20d   :  { %2346 = vst [vmem:[%s5231_s2 + $0xc0] sm:$0xff] %v1724_v1  ;;  %v323_v1 = vld [vmem:[%s5229_s0 + $0x9b8] sm:$0xff] }
 0x20e   :  { %v527_v21 = vpack.c.bf16 %v323_v1, %v321_v36 }
 0x210   :  { %v1676_v30 = vpop.f32.mrf.mxu2  ;;  %2127 = vmatpush.bf16.msrb.mxu0 %v511_v43  ;;  %2176 = vmatpush.bf16.msrb.mxu1 %v527_v21 }
 0x211   :  { %v1677_v56 = vadd.f32 %v1676_v30, %v1628_v12  ;;  %v1725_v13 = vpop.f32.mrf.mxu3  ;;  %v1581_v14 = vpop.f32.mrf.mxu0 }
 0x212   :  { %v1630_v58 = vpop.f32.mrf.mxu1  ;;  %v1582_v15 = vadd.f32 %v1581_v14, %v4591_v61  ;;  %v359_v61 = vld [vmem:[%s5229_s0 + $0xad8] sm:$0xff]  ;;  %v5371_v14 = vld [vmem:[#allocation11_spill] sm:$0xff] }
 0x213   :  { %v1726_v34 = vadd.f32 %v1725_v13, %v1677_v56  ;;  %v545_v10 = vpack.c.bf16 %v359_v61, %v357_v33  ;;  %v287_v33 = vld [vmem:[%s5229_s0 + $0x898] sm:$0xff] }
 0x214   :  { %1776 = vmatmul.bf16.gmra.mxu0 %v5363_v38  ;;  %v1631_v9 = vadd.f32 %v1630_v58, %v1582_v15  ;;  %v5372_v58 = vld [vmem:[#allocation12_spill] sm:$0xff]  ;;  %v5374_v15 = vld [vmem:[#allocation14_spill] sm:$0xff]  ;;  %v349_v38 = vld [vmem:[%s5229_s0 + $0xa88] sm:$0xff] }
 0x215   :  { %2348 = vst [vmem:[%s5231_s2 + $0xd0] sm:$0xff] %v1726_v34  ;;  %1825 = vmatmul.bf16.gmra.mxu1 %v5364_v31  ;;  %1874 = vmatmul.bf16.gmra.mxu2 %v5365_v59  ;;  %v5373_v34 = vld [vmem:[#allocation13_spill] sm:$0xff]  ;;  %v285_v59 = vld [vmem:[%s5229_s0 + $0x888] sm:$0xff] }
 0x216   :  { %1923 = vmatmul.bf16.gmra.mxu3 %v5366_v8  ;;  %2224 = vmatpush.bf16.msrb.mxu2 %v545_v10  ;;  %v351_v31 = vld [vmem:[%s5229_s0 + $0xa98] sm:$0xff]  ;;  %v509_v17 = vpack.c.bf16 %v287_v33, %v285_v59 }
 0x217   :  { %v541_v8 = vpack.c.bf16 %v351_v31, %v349_v38  ;;  %v343_v38 = vld [vmem:[%s5229_s0 + $0xa58] sm:$0xff]  ;;  %v277_v31 = vld [vmem:[%s5229_s0 + $0x848] sm:$0xff] }
 0x218   :  { %v1679_v48 = vpop.f32.mrf.mxu2  ;;  %2128 = vmatpush.bf16.msrb.mxu0 %v509_v17 }
 0x219   :  { %v1680_v49 = vadd.f32 %v1679_v48, %v1631_v9  ;;  %v1728_v53 = vpop.f32.mrf.mxu3  ;;  %v1583_v20 = vpop.f32.mrf.mxu0 }
 0x21a   :  { %v1632_v50 = vpop.f32.mrf.mxu1  ;;  %v1584_v52 = vadd.f32 %v1583_v20, %v4599_v62  ;;  %2225 = vmatpush.bf16.msrb.mxu2 %v543_v42  ;;  %v319_v20 = vld [vmem:[%s5229_s0 + $0x998] sm:$0xff] }
 0x21b   :  { %v1729_v51 = vadd.f32 %v1728_v53, %v1680_v49  ;;  %v317_v53 = vld [vmem:[%s5229_s0 + $0x988] sm:$0xff] }
 0x21c   :  { %v1633_v25 = vadd.f32 %v1632_v50, %v1584_v52  ;;  %v525_v50 = vpack.c.bf16 %v319_v20, %v317_v53  ;;  %v309_v53 = vld [vmem:[%s5229_s0 + $0x948] sm:$0xff]  ;;  %v311_v20 = vld [vmem:[%s5229_s0 + $0x958] sm:$0xff] }
 0x21d   :  { %2350 = vst [vmem:[%s5231_s2 + $0xe0] sm:$0xff] %v1729_v51 }
 0x21e   :  { %2226 = vmatpush.bf16.msrb.mxu2 %v541_v8  ;;  %2177 = vmatpush.bf16.msrb.mxu1 %v525_v50  ;;  %v279_v8 = vld [vmem:[%s5229_s0 + $0x858] sm:$0xff]  ;;  %v521_v50 = vpack.c.bf16 %v311_v20, %v309_v53  ;;  %v301_v20 = vld [vmem:[%s5229_s0 + $0x908] sm:$0xff] }
 0x220   :  { %v1681_v26 = vpop.f32.mrf.mxu2 }
 0x221   :  { %v1682_v22 = vadd.f32 %v1681_v26, %v1633_v25  ;;  %v1730_v27 = vpop.f32.mrf.mxu3  ;;  %v1742_v16 = vpop.f32.mrf.mxu0 }
 0x222   :  { %v1791_v62 = vpop.f32.mrf.mxu1 }
 0x223   :  { %v1731_v35 = vadd.f32 %v1730_v27, %v1682_v22  ;;  %v1792_v63 = vadd.f32 %v1791_v62, %v1742_v16  ;;  %v5375_v22 = vld [vmem:[#allocation15_spill] sm:$0xff]  ;;  %v5376_v27 = vld [vmem:[#allocation16_spill] sm:$0xff]  ;;  %v5377_v16 = vld [vmem:[#allocation17_spill] sm:$0xff] }
 0x224   :  { %1937 = vmatmul.bf16.vlgmr.msra.gmra.mxu0 %v5367_v5  ;;  %v5378_v62 = vld [vmem:[#allocation18_spill] sm:$0xff]  ;;  %v281_v5 = vld [vmem:[%s5229_s0 + $0x868] sm:$0xff] }
 0x225   :  { %2352 = vst [vmem:[%s5231_s2 + $0xf0] sm:$0xff] %v1731_v35  ;;  %1986 = vmatmul.bf16.vlgmr.msra.gmra.mxu1 %v5368_v40  ;;  %2035 = vmatmul.bf16.vlgmr.msra.gmra.mxu2 %v5369_v3  ;;  %v345_v35 = vld [vmem:[%s5229_s0 + $0xa68] sm:$0xff]  ;;  %v283_v3 = vld [vmem:[%s5229_s0 + $0x878] sm:$0xff] }
 0x226   :  { %2084 = vmatmul.bf16.vlgmr.msra.gmra.mxu3 %v5370_v4  ;;  %v365_v4 = vld [vmem:[%s5229_s0 + $0xb08] sm:$0xff]  ;;  %v507_v41 = vpack.c.bf16 %v283_v3, %v281_v5  ;;  %v339_v5 = vld [vmem:[%s5229_s0 + $0xa38] sm:$0xff] }
 0x227   :  { %v549_v42 = vpack.c.bf16 %v367_v18, %v365_v4  ;;  %v275_v4 = vld [vmem:[%s5229_s0 + $0x838] sm:$0xff] }
 0x228   :  { %v1840_v46 = vpop.f32.mrf.mxu2  ;;  %2129 = vmatpush.bf16.msrb.mxu0 %v507_v41 }
 0x229   :  { %v1841_v23 = vadd.f32 %v1840_v46, %v1792_v63  ;;  %v1889_v37 = vpop.f32.mrf.mxu3  ;;  %v1744_v2 = vpop.f32.mrf.mxu0  ;;  %v347_v63 = vld [vmem:[%s5229_s0 + $0xa78] sm:$0xff]  ;;  %2279 = vmatpush.bf16.msrb.mxu3 %v549_v42 }
 0x22a   :  { %v1793_v47 = vpop.f32.mrf.mxu1  ;;  %v539_v40 = vpack.c.bf16 %v347_v63, %v345_v35  ;;  %v5386_v35 = vld [vmem:[#allocation26_spill] sm:$0xff]  ;;  %v337_v63 = vld [vmem:[%s5229_s0 + $0xa28] sm:$0xff] }
 0x22b   :  { %v4899_v55 = vadd.f32 %v1889_v37, %v1841_v23  ;;  %v1794_v32 = vadd.f32 %v1793_v47, %v1744_v2  ;;  %v313_v47 = vld [vmem:[%s5229_s0 + $0x968] sm:$0xff]  ;;  %v535_v3 = vpack.c.bf16 %v339_v5, %v337_v63  ;;  %v5393_v63 = vld [vmem:[#allocation33_spill] sm:$0xff]  ;;  %v5394_v5 = vld [vmem:[#allocation34_spill] sm:$0xff] }
 0x22c   :  { %2227 = vmatpush.bf16.msrb.mxu2 %v539_v40  ;;  %v273_v40 = vld [vmem:[%s5229_s0 + $0x828] sm:$0xff] }
 0x230   :  { %v1842_v0 = vpop.f32.mrf.mxu2 }
 0x231   :  { %v1843_v6 = vadd.f32 %v1842_v0, %v1794_v32  ;;  %v1891_v29 = vpop.f32.mrf.mxu3  ;;  %v1747_v12 = vpop.f32.mrf.mxu0  ;;  %v315_v32 = vld [vmem:[%s5229_s0 + $0x978] sm:$0xff] }
 0x232   :  { %v1796_v30 = vpop.f32.mrf.mxu1  ;;  %v523_v36 = vpack.c.bf16 %v315_v32, %v313_v47  ;;  %v307_v47 = vld [vmem:[%s5229_s0 + $0x938] sm:$0xff] }
 0x233   :  { %v4907_v56 = vadd.f32 %v1891_v29, %v1843_v6  ;;  %v1797_v13 = vadd.f32 %v1796_v30, %v1747_v12 }
 0x234   :  { %1942 = vmatmul.bf16.gmra.mxu0 %v5371_v14  ;;  %2178 = vmatpush.bf16.msrb.mxu1 %v523_v36  ;;  %v5380_v14 = vld [vmem:[#allocation20_spill] sm:$0xff] }
 0x235   :  { %1991 = vmatmul.bf16.gmra.mxu1 %v5372_v58  ;;  %2040 = vmatmul.bf16.gmra.mxu2 %v5373_v34  ;;  %v5381_v58 = vld [vmem:[#allocation21_spill] sm:$0xff]  ;;  %v5382_v34 = vld [vmem:[#allocation22_spill] sm:$0xff] }
 0x236   :  { %2089 = vmatmul.bf16.gmra.mxu3 %v5374_v15  ;;  %v341_v15 = vld [vmem:[%s5229_s0 + $0xa48] sm:$0xff] }
 0x237   :  { %v537_v59 = vpack.c.bf16 %v343_v38, %v341_v15  ;;  %v333_v15 = vld [vmem:[%s5229_s0 + $0xa08] sm:$0xff]  ;;  %v335_v38 = vld [vmem:[%s5229_s0 + $0xa18] sm:$0xff] }
 0x238   :  { %v1845_v61 = vpop.f32.mrf.mxu2  ;;  %2179 = vmatpush.bf16.msrb.mxu1 %v521_v50  ;;  %v303_v50 = vld [vmem:[%s5229_s0 + $0x918] sm:$0xff] }
 0x239   :  { %v1846_v9 = vadd.f32 %v1845_v61, %v1797_v13  ;;  %v1894_v10 = vpop.f32.mrf.mxu3  ;;  %v1749_v11 = vpop.f32.mrf.mxu0  ;;  %v5379_v13 = vld [vmem:[#allocation19_spill] sm:$0xff]  ;;  %v505_v61 = vpack.c.bf16 %v279_v8, %v277_v31  ;;  %2228 = vmatpush.bf16.msrb.mxu2 %v537_v59  ;;  %v533_v59 = vpack.c.bf16 %v335_v38, %v333_v15  ;;  %v271_v8 = vld [vmem:[%s5229_s0 + $0x818] sm:$0xff] }
 0x23a   :  { %v1798_v48 = vpop.f32.mrf.mxu1  ;;  %v269_v31 = vld [vmem:[%s5229_s0 + $0x808] sm:$0xff] }
 0x23b   :  { %v4925_v60 = vadd.f32 %v1894_v10, %v1846_v9  ;;  %v1799_v49 = vadd.f32 %v1798_v48, %v1749_v11  ;;  %2130 = vmatpush.bf16.msrb.mxu0 %v505_v61  ;;  %v501_v61 = vpack.c.bf16 %v271_v8, %v269_v31 }
 0x23d   :  { %2229 = vmatpush.bf16.msrb.mxu2 %v535_v3 }
 0x240   :  { %v1847_v51 = vpop.f32.mrf.mxu2 }
 0x241   :  { %v1848_v52 = vadd.f32 %v1847_v51, %v1799_v49  ;;  %v1896_v24 = vpop.f32.mrf.mxu3  ;;  %v1752_v54 = vpop.f32.mrf.mxu0  ;;  %2230 = vmatpush.bf16.msrb.mxu2 %v533_v59 }
 0x242   :  { %v1801_v57 = vpop.f32.mrf.mxu1 }
 0x243   :  { %v4933_v25 = vadd.f32 %v1896_v24, %v1848_v52  ;;  %v1802_v26 = vadd.f32 %v1801_v57, %v1752_v54 }
 0x244   :  { %1947 = vmatmul.bf16.gmra.mxu0 %v5375_v22 }
 0x245   :  { %1996 = vmatmul.bf16.gmra.mxu1 %v5376_v27  ;;  %2045 = vmatmul.bf16.gmra.mxu2 %v5377_v16  ;;  %v5383_v27 = vld [vmem:[#allocation23_spill] sm:$0xff]  ;;  %v5384_v16 = vld [vmem:[#allocation24_spill] sm:$0xff] }
 0x246   :  { %2094 = vmatmul.bf16.gmra.mxu3 %v5378_v62  ;;  %v5385_v62 = vld [vmem:[#allocation25_spill] sm:$0xff] }
 0x248   :  { %v1850_v44 = vpop.f32.mrf.mxu2 }
 0x249   :  { %v1851_v45 = vadd.f32 %v1850_v44, %v1802_v26  ;;  %v1899_v46 = vpop.f32.mrf.mxu3  ;;  %v1754_v43 = vpop.f32.mrf.mxu0  ;;  %v503_v44 = vpack.c.bf16 %v275_v4, %v273_v40 }
 0x24a   :  { %v1803_v23 = vpop.f32.mrf.mxu1 }
 0x24b   :  { %v4957_v37 = vadd.f32 %v1899_v46, %v1851_v45  ;;  %v1804_v2 = vadd.f32 %v1803_v23, %v1754_v43  ;;  %2131 = vmatpush.bf16.msrb.mxu0 %v503_v44 }
 0x24f   :  { %2132 = vmatpush.bf16.msrb.mxu0 %v501_v61 }
 0x250   :  { %v1852_v1 = vpop.f32.mrf.mxu2 }
 0x251   :  { %v1853_v21 = vadd.f32 %v1852_v1, %v1804_v2  ;;  %v1901_v0 = vpop.f32.mrf.mxu3  ;;  %v1757_v6 = vpop.f32.mrf.mxu0  ;;  %v305_v2 = vld [vmem:[%s5229_s0 + $0x928] sm:$0xff] }
 0x252   :  { %v1806_v29 = vpop.f32.mrf.mxu1  ;;  %v519_v32 = vpack.c.bf16 %v307_v47, %v305_v2 }
 0x253   :  { %v4965_v12 = vadd.f32 %v1901_v0, %v1853_v21  ;;  %v1807_v30 = vadd.f32 %v1806_v29, %v1757_v6 }
 0x254   :  { %1952 = vmatmul.bf16.gmra.mxu0 %v5379_v13  ;;  %2180 = vmatpush.bf16.msrb.mxu1 %v519_v32  ;;  %v5387_v13 = vld [vmem:[#allocation27_spill] sm:$0xff] }
 0x255   :  { %2001 = vmatmul.bf16.gmra.mxu1 %v5380_v14  ;;  %2050 = vmatmul.bf16.gmra.mxu2 %v5381_v58  ;;  %v5388_v14 = vld [vmem:[#allocation28_spill] sm:$0xff]  ;;  %v5389_v58 = vld [vmem:[#allocation29_spill] sm:$0xff] }
 0x256   :  { %2099 = vmatmul.bf16.gmra.mxu3 %v5382_v34  ;;  %v5390_v34 = vld [vmem:[#allocation30_spill] sm:$0xff] }
 0x258   :  { %v1855_v33 = vpop.f32.mrf.mxu2 }
 0x259   :  { %v1856_v17 = vadd.f32 %v1855_v33, %v1807_v30  ;;  %v1904_v9 = vpop.f32.mrf.mxu3  ;;  %v1759_v10 = vpop.f32.mrf.mxu0 }
 0x25a   :  { %v1808_v11 = vpop.f32.mrf.mxu1 }
 0x25b   :  { %v4983_v48 = vadd.f32 %v1904_v9, %v1856_v17  ;;  %v1809_v49 = vadd.f32 %v1808_v11, %v1759_v10 }
 0x260   :  { %v1857_v51 = vpop.f32.mrf.mxu2 }
 0x261   :  { %v1858_v52 = vadd.f32 %v1857_v51, %v1809_v49  ;;  %v1906_v24 = vpop.f32.mrf.mxu3  ;;  %v1762_v54 = vpop.f32.mrf.mxu0  ;;  %v517_v51 = vpack.c.bf16 %v303_v50, %v301_v20  ;;  %v5401_v20 = vld [vmem:[#allocation41_spill] sm:$0xff]  ;;  %v5402_v50 = vld [vmem:[#allocation42_spill] sm:$0xff] }
 0x262   :  { %v1811_v57 = vpop.f32.mrf.mxu1 }
 0x263   :  { %v4991_v26 = vadd.f32 %v1906_v24, %v1858_v52  ;;  %v1812_v22 = vadd.f32 %v1811_v57, %v1762_v54  ;;  %2181 = vmatpush.bf16.msrb.mxu1 %v517_v51 }
 0x264   :  { %1957 = vmatmul.bf16.gmra.mxu0 %v5383_v27 }
 0x265   :  { %2006 = vmatmul.bf16.gmra.mxu1 %v5384_v16  ;;  %2055 = vmatmul.bf16.gmra.mxu2 %v5385_v62  ;;  %v5391_v62 = vld [vmem:[#allocation31_spill] sm:$0xff] }
 0x266   :  { %2104 = vmatmul.bf16.gmra.mxu3 %v5386_v35  ;;  %v5392_v35 = vld [vmem:[#allocation32_spill] sm:$0xff] }
 0x268   :  { %v1860_v18 = vpop.f32.mrf.mxu2 }
 0x269   :  { %v1861_v41 = vadd.f32 %v1860_v18, %v1812_v22  ;;  %v1909_v42 = vpop.f32.mrf.mxu3  ;;  %v1764_v45 = vpop.f32.mrf.mxu0 }
 0x26a   :  { %v1813_v46 = vpop.f32.mrf.mxu1 }
 0x26b   :  { %v5009_v43 = vadd.f32 %v1909_v42, %v1861_v41  ;;  %v1814_v23 = vadd.f32 %v1813_v46, %v1764_v45 }
 0x270   :  { %v1862_v36 = vpop.f32.mrf.mxu2 }
 0x271   :  { %v1863_v1 = vadd.f32 %v1862_v36, %v1814_v23  ;;  %v1911_v21 = vpop.f32.mrf.mxu3  ;;  %v1767_v0 = vpop.f32.mrf.mxu0 }
 0x272   :  { %v1816_v6 = vpop.f32.mrf.mxu1 }
 0x273   :  { %v5017_v29 = vadd.f32 %v1911_v21, %v1863_v1  ;;  %v1817_v30 = vadd.f32 %v1816_v6, %v1767_v0  ;;  %v5395_v1 = vld [vmem:[#allocation35_spill] sm:$0xff]  ;;  %v5396_v21 = vld [vmem:[#allocation36_spill] sm:$0xff]  ;;  %v5397_v0 = vld [vmem:[#allocation37_spill] sm:$0xff] }
 0x274   :  { %1962 = vmatmul.bf16.gmra.mxu0 %v5387_v13  ;;  %v5398_v6 = vld [vmem:[#allocation38_spill] sm:$0xff] }
 0x275   :  { %2011 = vmatmul.bf16.gmra.mxu1 %v5388_v14  ;;  %2060 = vmatmul.bf16.gmra.mxu2 %v5389_v58 }
 0x276   :  { %2109 = vmatmul.bf16.gmra.mxu3 %v5390_v34 }
 0x278   :  { %v1865_v33 = vpop.f32.mrf.mxu2 }
 0x279   :  { %v1866_v17 = vadd.f32 %v1865_v33, %v1817_v30  ;;  %v1914_v9 = vpop.f32.mrf.mxu3  ;;  %v1769_v10 = vpop.f32.mrf.mxu0 }
 0x27a   :  { %v1818_v11 = vpop.f32.mrf.mxu1 }
 0x27b   :  { %v5035_v49 = vadd.f32 %v1914_v9, %v1866_v17  ;;  %v1819_v53 = vadd.f32 %v1818_v11, %v1769_v10  ;;  %v5399_v11 = vld [vmem:[#allocation39_spill] sm:$0xff] }
 0x280   :  { %v1867_v52 = vpop.f32.mrf.mxu2 }
 0x281   :  { %v1868_v24 = vadd.f32 %v1867_v52, %v1819_v53  ;;  %v1916_v54 = vpop.f32.mrf.mxu3  ;;  %v1772_v57 = vpop.f32.mrf.mxu0  ;;  %v5400_v53 = vld [vmem:[#allocation40_spill] sm:$0xff] }
 0x282   :  { %v1821_v22 = vpop.f32.mrf.mxu1 }
 0x283   :  { %v5043_v27 = vadd.f32 %v1916_v54, %v1868_v24  ;;  %v1822_v16 = vadd.f32 %v1821_v22, %v1772_v57 }
 0x284   :  { %1967 = vmatmul.bf16.gmra.mxu0 %v5391_v62 }
 0x285   :  { %2016 = vmatmul.bf16.gmra.mxu1 %v5392_v35  ;;  %2065 = vmatmul.bf16.gmra.mxu2 %v5393_v63 }
 0x286   :  { %2114 = vmatmul.bf16.gmra.mxu3 %v5394_v5 }
 0x288   :  { %v1870_v40 = vpop.f32.mrf.mxu2 }
 0x289   :  { %v1871_v3 = vadd.f32 %v1870_v40, %v1822_v16  ;;  %v1919_v4 = vpop.f32.mrf.mxu3  ;;  %v1774_v18 = vpop.f32.mrf.mxu0 }
 0x28a   :  { %v1823_v44 = vpop.f32.mrf.mxu1 }
 0x28b   :  { %v5049_v41 = vadd.f32 %v1919_v4, %v1871_v3  ;;  %v1824_v42 = vadd.f32 %v1823_v44, %v1774_v18  ;;  %v5403_v44 = vld [vmem:[#allocation43_spill] sm:$0xff] }
 0x290   :  { %v1872_v45 = vpop.f32.mrf.mxu2 }
 0x291   :  { %v1873_v46 = vadd.f32 %v1872_v45, %v1824_v42  ;;  %v1921_v23 = vpop.f32.mrf.mxu3  ;;  %v1777_v2 = vpop.f32.mrf.mxu0  ;;  %v5404_v42 = vld [vmem:[#allocation44_spill] sm:$0xff]  ;;  %v5405_v45 = vld [vmem:[#allocation45_spill] sm:$0xff] }
 0x292   :  { %v1826_v47 = vpop.f32.mrf.mxu1 }
 0x293   :  { %v5051_v32 = vadd.f32 %v1921_v23, %v1873_v46  ;;  %v1827_v36 = vadd.f32 %v1826_v47, %v1777_v2 }
 0x294   :  { %1972 = vmatmul.bf16.gmra.mxu0 %v5395_v1 }
 0x295   :  { %2021 = vmatmul.bf16.gmra.mxu1 %v5396_v21  ;;  %2070 = vmatmul.bf16.gmra.mxu2 %v5397_v0 }
 0x296   :  { %2119 = vmatmul.bf16.gmra.mxu3 %v5398_v6 }
 0x298   :  { %v1875_v30 = vpop.f32.mrf.mxu2 }
 0x299   :  { %v1876_v13 = vadd.f32 %v1875_v30, %v1827_v36  ;;  %v1924_v14 = vpop.f32.mrf.mxu3  ;;  %v1779_v58 = vpop.f32.mrf.mxu0 }
 0x29a   :  { %v1828_v34 = vpop.f32.mrf.mxu1 }
 0x29b   :  { %v5057_v15 = vadd.f32 %v1924_v14, %v1876_v13  ;;  %v1829_v38 = vadd.f32 %v1828_v34, %v1779_v58 }
 0x2a0   :  { %v1877_v31 = vpop.f32.mrf.mxu2 }
 0x2a1   :  { %v1878_v59 = vadd.f32 %v1877_v31, %v1829_v38  ;;  %v1926_v8 = vpop.f32.mrf.mxu3  ;;  %v1938_v33 = vpop.f32.mrf.mxu0  ;;  %v5407_v31 = vld [vmem:[#allocation47_spill] sm:$0xff] }
 0x2a2   :  { %v1939_v61 = vadd.f32 %v1938_v33, %v4899_v55  ;;  %v1987_v17 = vpop.f32.mrf.mxu1 }
 0x2a3   :  { %v5060_v9 = vadd.f32 %v1926_v8, %v1878_v59  ;;  %v5408_v59 = vld [vmem:[#allocation48_spill] sm:$0xff]  ;;  %v5409_v8 = vld [vmem:[#allocation49_spill] sm:$0xff] }
 0x2a4   :  { %v1988_v10 = vadd.f32 %v1987_v17, %v1939_v61  ;;  %2133 = vmatmul.bf16.vlgmr.msrb.gmra.mxu0 %v5399_v11 }
 0x2a5   :  { %2182 = vmatmul.bf16.vlgmr.msrb.gmra.mxu1 %v5400_v53  ;;  %2231 = vmatmul.bf16.vlgmr.msrb.gmra.mxu2 %v5401_v20 }
 0x2a6   :  { %2750 = vmatmul.msk.bf16.vlgmr.msrb.gmra.mxu3 %vm1120_vm0, %v5402_v50 }
 0x2a8   :  { %v2036_v51 = vpop.f32.mrf.mxu2 }
 0x2a9   :  { %v2037_v52 = vadd.f32 %v2036_v51, %v1988_v10  ;;  %v2085_v24 = vpop.f32.mrf.mxu3  ;;  %v1940_v54 = vpop.f32.mrf.mxu0 }
 0x2aa   :  { %v1941_v57 = vadd.f32 %v1940_v54, %v4907_v56  ;;  %v1989_v55 = vpop.f32.mrf.mxu1  ;;  %v5406_v56 = vld [vmem:[#allocation46_spill] sm:$0xff] }
 0x2ab   :  { %v5068_v22 = vadd.f32 %v2085_v24, %v2037_v52 }
 0x2ac   :  { %v1990_v16 = vadd.f32 %v1989_v55, %v1941_v57 }
 0x2b0   :  { %v2038_v62 = vpop.f32.mrf.mxu2 }
 0x2b1   :  { %v2039_v35 = vadd.f32 %v2038_v62, %v1990_v16  ;;  %v2087_v63 = vpop.f32.mrf.mxu3  ;;  %v1943_v5 = vpop.f32.mrf.mxu0  ;;  %v5411_v62 = vld [vmem:[#allocation51_spill] sm:$0xff] }
 0x2b2   :  { %v1944_v40 = vadd.f32 %v1943_v5, %v4925_v60  ;;  %v1992_v3 = vpop.f32.mrf.mxu1 }
 0x2b3   :  { %v5071_v4 = vadd.f32 %v2087_v63, %v2039_v35  ;;  %v5412_v35 = vld [vmem:[#allocation52_spill] sm:$0xff]  ;;  %v5413_v63 = vld [vmem:[#allocation53_spill] sm:$0xff] }
 0x2b4   :  { %v1993_v18 = vadd.f32 %v1992_v3, %v1944_v40  ;;  %2138 = vmatmul.bf16.gmra.mxu0 %v5403_v44 }
 0x2b5   :  { %2187 = vmatmul.bf16.gmra.mxu1 %v5404_v42  ;;  %2236 = vmatmul.bf16.gmra.mxu2 %v5405_v45 }
 0x2b6   :  { %2751 = vmatmul.msk.bf16.gmra.mxu3 %vm1120_vm0, %v5406_v56 }
 0x2b8   :  { %v2041_v46 = vpop.f32.mrf.mxu2 }
 0x2b9   :  { %v2042_v23 = vadd.f32 %v2041_v46, %v1993_v18  ;;  %v2090_v2 = vpop.f32.mrf.mxu3  ;;  %v1945_v47 = vpop.f32.mrf.mxu0 }
 0x2ba   :  { %v1946_v36 = vadd.f32 %v1945_v47, %v4933_v25  ;;  %v1994_v60 = vpop.f32.mrf.mxu1  ;;  %v5410_v25 = vld [vmem:[#allocation50_spill] sm:$0xff] }
 0x2bb   :  { %v5079_v1 = vadd.f32 %v2090_v2, %v2042_v23 }
 0x2bc   :  { %v1995_v21 = vadd.f32 %v1994_v60, %v1946_v36 }
 0x2c0   :  { %v2043_v0 = vpop.f32.mrf.mxu2 }
 0x2c1   :  { %v2044_v6 = vadd.f32 %v2043_v0, %v1995_v21  ;;  %v2092_v30 = vpop.f32.mrf.mxu3  ;;  %v1948_v13 = vpop.f32.mrf.mxu0  ;;  %v5415_v0 = vld [vmem:[#allocation55_spill] sm:$0xff] }
 0x2c2   :  { %v1949_v14 = vadd.f32 %v1948_v13, %v4957_v37  ;;  %v1997_v58 = vpop.f32.mrf.mxu1 }
 0x2c3   :  { %v5082_v34 = vadd.f32 %v2092_v30, %v2044_v6  ;;  %v5416_v6 = vld [vmem:[#allocation56_spill] sm:$0xff]  ;;  %v5417_v30 = vld [vmem:[#allocation57_spill] sm:$0xff] }
 0x2c4   :  { %v1998_v38 = vadd.f32 %v1997_v58, %v1949_v14  ;;  %2143 = vmatmul.bf16.gmra.mxu0 %v5407_v31 }
 0x2c5   :  { %2192 = vmatmul.bf16.gmra.mxu1 %v5408_v59  ;;  %2241 = vmatmul.bf16.gmra.mxu2 %v5409_v8 }
 0x2c6   :  { %2752 = vmatmul.msk.bf16.gmra.mxu3 %vm1120_vm0, %v5410_v25 }
 0x2c8   :  { %v2046_v33 = vpop.f32.mrf.mxu2 }
 0x2c9   :  { %v2047_v61 = vadd.f32 %v2046_v33, %v1998_v38  ;;  %v2095_v17 = vpop.f32.mrf.mxu3  ;;  %v1950_v10 = vpop.f32.mrf.mxu0 }
 0x2ca   :  { %v1951_v11 = vadd.f32 %v1950_v10, %v4965_v12  ;;  %v1999_v37 = vpop.f32.mrf.mxu1  ;;  %v5414_v12 = vld [vmem:[#allocation54_spill] sm:$0xff] }
 0x2cb   :  { %v5090_v53 = vadd.f32 %v2095_v17, %v2047_v61 }
 0x2cc   :  { %v2000_v20 = vadd.f32 %v1999_v37, %v1951_v11 }
 0x2d0   :  { %v2048_v50 = vpop.f32.mrf.mxu2 }
 0x2d1   :  { %v2049_v51 = vadd.f32 %v2048_v50, %v2000_v20  ;;  %v2097_v52 = vpop.f32.mrf.mxu3  ;;  %v1953_v24 = vpop.f32.mrf.mxu0  ;;  %v5419_v50 = vld [vmem:[#allocation59_spill] sm:$0xff] }
 0x2d2   :  { %v1954_v54 = vadd.f32 %v1953_v24, %v4983_v48  ;;  %v2002_v57 = vpop.f32.mrf.mxu1 }
 0x2d3   :  { %v5093_v55 = vadd.f32 %v2097_v52, %v2049_v51  ;;  %v5420_v51 = vld [vmem:[#allocation60_spill] sm:$0xff]  ;;  %v5421_v52 = vld [vmem:[#allocation61_spill] sm:$0xff] }
 0x2d4   :  { %v2003_v16 = vadd.f32 %v2002_v57, %v1954_v54  ;;  %2148 = vmatmul.bf16.gmra.mxu0 %v5411_v62 }
 0x2d5   :  { %2197 = vmatmul.bf16.gmra.mxu1 %v5412_v35  ;;  %2246 = vmatmul.bf16.gmra.mxu2 %v5413_v63 }
 0x2d6   :  { %2753 = vmatmul.msk.bf16.gmra.mxu3 %vm1120_vm0, %v5414_v12 }
 0x2d8   :  { %v2051_v5 = vpop.f32.mrf.mxu2 }
 0x2d9   :  { %v2052_v40 = vadd.f32 %v2051_v5, %v2003_v16  ;;  %v2100_v3 = vpop.f32.mrf.mxu3  ;;  %v1955_v18 = vpop.f32.mrf.mxu0 }
 0x2da   :  { %v1956_v44 = vadd.f32 %v1955_v18, %v4991_v26  ;;  %v2004_v48 = vpop.f32.mrf.mxu1  ;;  %v5418_v26 = vld [vmem:[#allocation58_spill] sm:$0xff] }
 0x2db   :  { %v5101_v42 = vadd.f32 %v2100_v3, %v2052_v40 }
 0x2dc   :  { %v2005_v45 = vadd.f32 %v2004_v48, %v1956_v44 }
 0x2e0   :  { %v2053_v56 = vpop.f32.mrf.mxu2 }
 0x2e1   :  { %v2054_v46 = vadd.f32 %v2053_v56, %v2005_v45  ;;  %v2102_v23 = vpop.f32.mrf.mxu3  ;;  %v1958_v2 = vpop.f32.mrf.mxu0  ;;  %v5423_v56 = vld [vmem:[#allocation63_spill] sm:$0xff] }
 0x2e2   :  { %v1959_v47 = vadd.f32 %v1958_v2, %v5009_v43  ;;  %v2007_v36 = vpop.f32.mrf.mxu1 }
 0x2e3   :  { %v5104_v60 = vadd.f32 %v2102_v23, %v2054_v46  ;;  %v5424_v46 = vld [vmem:[#allocation64_spill] sm:$0xff]  ;;  %v5425_v23 = vld [vmem:[#allocation65_spill] sm:$0xff] }
 0x2e4   :  { %v2008_v21 = vadd.f32 %v2007_v36, %v1959_v47  ;;  %2153 = vmatmul.bf16.gmra.mxu0 %v5415_v0 }
 0x2e5   :  { %2202 = vmatmul.bf16.gmra.mxu1 %v5416_v6  ;;  %2251 = vmatmul.bf16.gmra.mxu2 %v5417_v30 }
 0x2e6   :  { %2754 = vmatmul.msk.bf16.gmra.mxu3 %vm1120_vm0, %v5418_v26 }
 0x2e8   :  { %v2056_v13 = vpop.f32.mrf.mxu2 }
 0x2e9   :  { %v2057_v14 = vadd.f32 %v2056_v13, %v2008_v21  ;;  %v2105_v58 = vpop.f32.mrf.mxu3  ;;  %v1960_v38 = vpop.f32.mrf.mxu0 }
 0x2ea   :  { %v1961_v31 = vadd.f32 %v1960_v38, %v5017_v29  ;;  %v2009_v43 = vpop.f32.mrf.mxu1  ;;  %v5422_v29 = vld [vmem:[#allocation62_spill] sm:$0xff] }
 0x2eb   :  { %v5112_v59 = vadd.f32 %v2105_v58, %v2057_v14 }
 0x2ec   :  { %v2010_v8 = vadd.f32 %v2009_v43, %v1961_v31 }
 0x2f0   :  { %v2058_v25 = vpop.f32.mrf.mxu2 }
 0x2f1   :  { %v2059_v33 = vadd.f32 %v2058_v25, %v2010_v8  ;;  %v2107_v61 = vpop.f32.mrf.mxu3  ;;  %v1963_v17 = vpop.f32.mrf.mxu0 }
 0x2f2   :  { %v1964_v10 = vadd.f32 %v1963_v17, %v5035_v49  ;;  %v2012_v11 = vpop.f32.mrf.mxu1 }
 0x2f3   :  { %v5115_v37 = vadd.f32 %v2107_v61, %v2059_v33 }
 0x2f4   :  { %v2013_v20 = vadd.f32 %v2012_v11, %v1964_v10  ;;  %2158 = vmatmul.bf16.gmra.mxu0 %v5419_v50 }
 0x2f5   :  { %2207 = vmatmul.bf16.gmra.mxu1 %v5420_v51  ;;  %2256 = vmatmul.bf16.gmra.mxu2 %v5421_v52 }
 0x2f6   :  { %2755 = vmatmul.msk.bf16.gmra.mxu3 %vm1120_vm0, %v5422_v29 }
 0x2f8   :  { %v2061_v24 = vpop.f32.mrf.mxu2 }
 0x2f9   :  { %v2062_v54 = vadd.f32 %v2061_v24, %v2013_v20  ;;  %v2110_v57 = vpop.f32.mrf.mxu3  ;;  %v1965_v16 = vpop.f32.mrf.mxu0 }
 0x2fa   :  { %v1966_v62 = vadd.f32 %v1965_v16, %v5043_v27  ;;  %v2014_v49 = vpop.f32.mrf.mxu1  ;;  %v5426_v27 = vld [vmem:[#allocation66_spill] sm:$0xff] }
 0x2fb   :  { %v5123_v35 = vadd.f32 %v2110_v57, %v2062_v54 }
 0x2fc   :  { %v2015_v63 = vadd.f32 %v2014_v49, %v1966_v62 }
 0x300   :  { %v2063_v12 = vpop.f32.mrf.mxu2 }
 0x301   :  { %v2064_v5 = vadd.f32 %v2063_v12, %v2015_v63  ;;  %v2112_v40 = vpop.f32.mrf.mxu3  ;;  %v1968_v3 = vpop.f32.mrf.mxu0 }
 0x302   :  { %v1969_v18 = vadd.f32 %v1968_v3, %v5049_v41  ;;  %v2017_v44 = vpop.f32.mrf.mxu1 }
 0x303   :  { %v5126_v48 = vadd.f32 %v2112_v40, %v2064_v5 }
 0x304   :  { %v2018_v45 = vadd.f32 %v2017_v44, %v1969_v18  ;;  %2163 = vmatmul.bf16.gmra.mxu0 %v5423_v56 }
 0x305   :  { %2212 = vmatmul.bf16.gmra.mxu1 %v5424_v46  ;;  %2261 = vmatmul.bf16.gmra.mxu2 %v5425_v23 }
 0x306   :  { %2756 = vmatmul.msk.bf16.gmra.mxu3 %vm1120_vm0, %v5426_v27 }
 0x308   :  { %v2066_v2 = vpop.f32.mrf.mxu2 }
 0x309   :  { %v2067_v47 = vadd.f32 %v2066_v2, %v2018_v45  ;;  %v2115_v36 = vpop.f32.mrf.mxu3  ;;  %v1970_v21 = vpop.f32.mrf.mxu0 }
 0x30a   :  { %v1971_v0 = vadd.f32 %v1970_v21, %v5051_v32  ;;  %v2019_v41 = vpop.f32.mrf.mxu1 }
 0x30b   :  { %v5134_v6 = vadd.f32 %v2115_v36, %v2067_v47 }
 0x30c   :  { %v2020_v30 = vadd.f32 %v2019_v41, %v1971_v0 }
 0x310   :  { %v2068_v26 = vpop.f32.mrf.mxu2 }
 0x311   :  { %v2069_v13 = vadd.f32 %v2068_v26, %v2020_v30  ;;  %v2117_v14 = vpop.f32.mrf.mxu3  ;;  %v1973_v58 = vpop.f32.mrf.mxu0 }
 0x312   :  { %v1974_v38 = vadd.f32 %v1973_v58, %v5057_v15  ;;  %v2022_v31 = vpop.f32.mrf.mxu1 }
 0x313   :  { %v5137_v43 = vadd.f32 %v2117_v14, %v2069_v13 }
 0x314   :  { %v2023_v8 = vadd.f32 %v2022_v31, %v1974_v38  ;;  %2168 = vmatmul.bf16.gmra.mxu0 %v4556_v28 }
 0x315   :  { %2217 = vmatmul.bf16.gmra.mxu1 %v4558_v19  ;;  %2266 = vmatmul.bf16.gmra.mxu2 %v4560_v7 }
 0x316   :  { %2757 = vmatmul.msk.bf16.gmra.mxu3 %vm1120_vm0, %v4563_v39 }
 0x318   :  { %v2071_v32 = vpop.f32.mrf.mxu2 }
 0x319   :  { %v2072_v25 = vadd.f32 %v2071_v32, %v2023_v8  ;;  %v2120_v33 = vpop.f32.mrf.mxu3  ;;  %v1975_v61 = vpop.f32.mrf.mxu0 }
 0x31a   :  { %v1976_v17 = vadd.f32 %v1975_v61, %v5060_v9  ;;  %v2024_v15 = vpop.f32.mrf.mxu1 }
 0x31b   :  { %v5145_v10 = vadd.f32 %v2120_v33, %v2072_v25 }
 0x31c   :  { %v2025_v11 = vadd.f32 %v2024_v15, %v1976_v17 }
 0x320   :  { %v2073_v20 = vpop.f32.mrf.mxu2 }
 0x321   :  { %v2074_v50 = vadd.f32 %v2073_v20, %v2025_v11  ;;  %v2122_v28 = vpop.f32.mrf.mxu3  ;;  %v2134_v51 = vpop.f32.mrf.mxu0 }
 0x322   :  { %v2183_v19 = vpop.f32.mrf.mxu1  ;;  %v2135_v7 = vadd.f32 %v2134_v51, %v5068_v22 }
 0x323   :  { %v5147_v52 = vadd.f32 %v2122_v28, %v2074_v50 }
 0x324   :  { %v2184_v39 = vadd.f32 %v2183_v19, %v2135_v7 }
 0x328   :  { %v2232_v29 = vpop.f32.mrf.mxu2 }
 0x329   :  { %v2233_v24 = vadd.f32 %v2232_v29, %v2184_v39  ;;  %v2281_v54 = vpop.f32.mrf.mxu3  ;;  %v2136_v57 = vpop.f32.mrf.mxu0 }
 0x32a   :  { %v2185_v9 = vpop.f32.mrf.mxu1  ;;  %v2137_v62 = vadd.f32 %v2136_v57, %v5071_v4 }
 0x32b   :  { %v2282_v16 = vadd.f32 %v2281_v54, %v2233_v24 }
 0x32c   :  { %v2186_v49 = vadd.f32 %v2185_v9, %v2137_v62 }
 0x32d   :  { %2323 = vst.msk [vmem:[%s5231_s2 + $0x8] sm:$0xff] %vm2322_vm1, %v2282_v16 }
 0x330   :  { %v2234_v63 = vpop.f32.mrf.mxu2 }
 0x331   :  { %v2235_v12 = vadd.f32 %v2234_v63, %v2186_v49  ;;  %v2283_v5 = vpop.f32.mrf.mxu3  ;;  %v2139_v22 = vpop.f32.mrf.mxu0 }
 0x332   :  { %v2188_v40 = vpop.f32.mrf.mxu1  ;;  %v2140_v18 = vadd.f32 %v2139_v22, %v5079_v1 }
 0x333   :  { %v2284_v3 = vadd.f32 %v2283_v5, %v2235_v12 }
 0x334   :  { %v2189_v4 = vadd.f32 %v2188_v40, %v2140_v18 }
 0x335   :  { %2325 = vst.msk [vmem:[%s5231_s2 + $0x18] sm:$0xff] %vm2322_vm1, %v2284_v3 }
 0x338   :  { %v2237_v44 = vpop.f32.mrf.mxu2 }
 0x339   :  { %v2238_v45 = vadd.f32 %v2237_v44, %v2189_v4  ;;  %v2286_v56 = vpop.f32.mrf.mxu3  ;;  %v2141_v46 = vpop.f32.mrf.mxu0 }
 0x33a   :  { %v2190_v23 = vpop.f32.mrf.mxu1  ;;  %v2142_v2 = vadd.f32 %v2141_v46, %v5082_v34 }
 0x33b   :  { %v2287_v27 = vadd.f32 %v2286_v56, %v2238_v45 }
 0x33c   :  { %v2191_v1 = vadd.f32 %v2190_v23, %v2142_v2 }
 0x33d   :  { %2327 = vst.msk [vmem:[%s5231_s2 + $0x28] sm:$0xff] %vm2322_vm1, %v2287_v27 }
 0x340   :  { %v2239_v47 = vpop.f32.mrf.mxu2 }
 0x341   :  { %v2240_v36 = vadd.f32 %v2239_v47, %v2191_v1  ;;  %v2288_v21 = vpop.f32.mrf.mxu3  ;;  %v2144_v0 = vpop.f32.mrf.mxu0 }
 0x342   :  { %v2193_v41 = vpop.f32.mrf.mxu1  ;;  %v2145_v26 = vadd.f32 %v2144_v0, %v5090_v53 }
 0x343   :  { %v2289_v30 = vadd.f32 %v2288_v21, %v2240_v36 }
 0x344   :  { %v2194_v34 = vadd.f32 %v2193_v41, %v2145_v26 }
 0x345   :  { %2329 = vst.msk [vmem:[%s5231_s2 + $0x38] sm:$0xff] %vm2322_vm1, %v2289_v30 }
 0x348   :  { %v2242_v13 = vpop.f32.mrf.mxu2 }
 0x349   :  { %v2243_v14 = vadd.f32 %v2242_v13, %v2194_v34  ;;  %v2291_v58 = vpop.f32.mrf.mxu3  ;;  %v2146_v38 = vpop.f32.mrf.mxu0 }
 0x34a   :  { %v2195_v31 = vpop.f32.mrf.mxu1  ;;  %v2147_v32 = vadd.f32 %v2146_v38, %v5093_v55 }
 0x34b   :  { %v2292_v8 = vadd.f32 %v2291_v58, %v2243_v14 }
 0x34c   :  { %v2196_v53 = vadd.f32 %v2195_v31, %v2147_v32 }
 0x34d   :  { %2331 = vst.msk [vmem:[%s5231_s2 + $0x48] sm:$0xff] %vm2322_vm1, %v2292_v8 }
 0x350   :  { %v2244_v25 = vpop.f32.mrf.mxu2 }
 0x351   :  { %v2245_v33 = vadd.f32 %v2244_v25, %v2196_v53  ;;  %v2293_v61 = vpop.f32.mrf.mxu3  ;;  %v2149_v17 = vpop.f32.mrf.mxu0 }
 0x352   :  { %v2198_v15 = vpop.f32.mrf.mxu1  ;;  %v2150_v20 = vadd.f32 %v2149_v17, %v5101_v42 }
 0x353   :  { %v2294_v11 = vadd.f32 %v2293_v61, %v2245_v33 }
 0x354   :  { %v2199_v55 = vadd.f32 %v2198_v15, %v2150_v20 }
 0x355   :  { %2333 = vst.msk [vmem:[%s5231_s2 + $0x58] sm:$0xff] %vm2322_vm1, %v2294_v11 }
 0x358   :  { %v2247_v50 = vpop.f32.mrf.mxu2 }
 0x359   :  { %v2248_v28 = vadd.f32 %v2247_v50, %v2199_v55  ;;  %v2296_v51 = vpop.f32.mrf.mxu3  ;;  %v2151_v19 = vpop.f32.mrf.mxu0 }
 0x35a   :  { %v2200_v7 = vpop.f32.mrf.mxu1  ;;  %v2152_v29 = vadd.f32 %v2151_v19, %v5104_v60 }
 0x35b   :  { %v2297_v39 = vadd.f32 %v2296_v51, %v2248_v28 }
 0x35c   :  { %v2201_v42 = vadd.f32 %v2200_v7, %v2152_v29 }
 0x35d   :  { %2335 = vst.msk [vmem:[%s5231_s2 + $0x68] sm:$0xff] %vm2322_vm1, %v2297_v39 }
 0x360   :  { %v2249_v24 = vpop.f32.mrf.mxu2 }
 0x361   :  { %v2250_v54 = vadd.f32 %v2249_v24, %v2201_v42  ;;  %v2298_v57 = vpop.f32.mrf.mxu3  ;;  %v2154_v9 = vpop.f32.mrf.mxu0 }
 0x362   :  { %v2203_v16 = vpop.f32.mrf.mxu1  ;;  %v2155_v49 = vadd.f32 %v2154_v9, %v5112_v59 }
 0x363   :  { %v2299_v62 = vadd.f32 %v2298_v57, %v2250_v54 }
 0x364   :  { %v2204_v60 = vadd.f32 %v2203_v16, %v2155_v49 }
 0x365   :  { %2337 = vst.msk [vmem:[%s5231_s2 + $0x78] sm:$0xff] %vm2322_vm1, %v2299_v62 }
 0x368   :  { %v2252_v63 = vpop.f32.mrf.mxu2 }
 0x369   :  { %v2253_v12 = vadd.f32 %v2252_v63, %v2204_v60  ;;  %v2301_v5 = vpop.f32.mrf.mxu3  ;;  %v2156_v22 = vpop.f32.mrf.mxu0 }
 0x36a   :  { %v2205_v40 = vpop.f32.mrf.mxu1  ;;  %v2157_v18 = vadd.f32 %v2156_v22, %v5115_v37 }
 0x36b   :  { %v2302_v3 = vadd.f32 %v2301_v5, %v2253_v12 }
 0x36c   :  { %v2206_v59 = vadd.f32 %v2205_v40, %v2157_v18 }
 0x36d   :  { %2339 = vst.msk [vmem:[%s5231_s2 + $0x88] sm:$0xff] %vm2322_vm1, %v2302_v3 }
 0x370   :  { %v2254_v4 = vpop.f32.mrf.mxu2 }
 0x371   :  { %v2255_v44 = vadd.f32 %v2254_v4, %v2206_v59  ;;  %v2303_v45 = vpop.f32.mrf.mxu3  ;;  %v2159_v56 = vpop.f32.mrf.mxu0 }
 0x372   :  { %v2208_v46 = vpop.f32.mrf.mxu1  ;;  %v2160_v27 = vadd.f32 %v2159_v56, %v5123_v35 }
 0x373   :  { %v2304_v23 = vadd.f32 %v2303_v45, %v2255_v44 }
 0x374   :  { %v2209_v37 = vadd.f32 %v2208_v46, %v2160_v27 }
 0x375   :  { %2341 = vst.msk [vmem:[%s5231_s2 + $0x98] sm:$0xff] %vm2322_vm1, %v2304_v23 }
 0x378   :  { %v2257_v2 = vpop.f32.mrf.mxu2 }
 0x379   :  { %v2258_v1 = vadd.f32 %v2257_v2, %v2209_v37  ;;  %v2306_v47 = vpop.f32.mrf.mxu3  ;;  %v2161_v36 = vpop.f32.mrf.mxu0 }
 0x37a   :  { %v2210_v21 = vpop.f32.mrf.mxu1  ;;  %v2162_v41 = vadd.f32 %v2161_v36, %v5126_v48 }
 0x37b   :  { %v2307_v0 = vadd.f32 %v2306_v47, %v2258_v1 }
 0x37c   :  { %v2211_v35 = vadd.f32 %v2210_v21, %v2162_v41 }
 0x37d   :  { %2343 = vst.msk [vmem:[%s5231_s2 + $0xa8] sm:$0xff] %vm2322_vm1, %v2307_v0 }
 0x380   :  { %v2259_v30 = vpop.f32.mrf.mxu2 }
 0x381   :  { %v2260_v26 = vadd.f32 %v2259_v30, %v2211_v35  ;;  %v2308_v34 = vpop.f32.mrf.mxu3  ;;  %v2164_v13 = vpop.f32.mrf.mxu0 }
 0x382   :  { %v2213_v14 = vpop.f32.mrf.mxu1  ;;  %v2165_v38 = vadd.f32 %v2164_v13, %v5134_v6 }
 0x383   :  { %v2309_v58 = vadd.f32 %v2308_v34, %v2260_v26 }
 0x384   :  { %v2214_v48 = vadd.f32 %v2213_v14, %v2165_v38 }
 0x385   :  { %2345 = vst.msk [vmem:[%s5231_s2 + $0xb8] sm:$0xff] %vm2322_vm1, %v2309_v58 }
 0x388   :  { %v2262_v31 = vpop.f32.mrf.mxu2 }
 0x389   :  { %v2263_v8 = vadd.f32 %v2262_v31, %v2214_v48  ;;  %v2311_v32 = vpop.f32.mrf.mxu3  ;;  %v2166_v53 = vpop.f32.mrf.mxu0 }
 0x38a   :  { %v2215_v25 = vpop.f32.mrf.mxu1  ;;  %v2167_v61 = vadd.f32 %v2166_v53, %v5137_v43 }
 0x38b   :  { %v2312_v33 = vadd.f32 %v2311_v32, %v2263_v8 }
 0x38c   :  { %v2216_v6 = vadd.f32 %v2215_v25, %v2167_v61 }
 0x38d   :  { %2347 = vst.msk [vmem:[%s5231_s2 + $0xc8] sm:$0xff] %vm2322_vm1, %v2312_v33 }
 0x390   :  { %v2264_v17 = vpop.f32.mrf.mxu2 }
 0x391   :  { %v2265_v15 = vadd.f32 %v2264_v17, %v2216_v6  ;;  %v2313_v11 = vpop.f32.mrf.mxu3  ;;  %v2169_v20 = vpop.f32.mrf.mxu0 }
 0x392   :  { %v2170_v50 = vadd.f32 %v2169_v20, %v5145_v10  ;;  %v2218_v28 = vpop.f32.mrf.mxu1 }
 0x393   :  { %v2314_v55 = vadd.f32 %v2313_v11, %v2265_v15 }
 0x394   :  { %v2219_v43 = vadd.f32 %v2218_v28, %v2170_v50 }
 0x395   :  { %2349 = vst.msk [vmem:[%s5231_s2 + $0xd8] sm:$0xff] %vm2322_vm1, %v2314_v55 }
 0x398   :  { %v2267_v51 = vpop.f32.mrf.mxu2 }
 0x399   :  { %v2268_v19 = vadd.f32 %v2267_v51, %v2219_v43  ;;  %v2316_v7 = vpop.f32.mrf.mxu3  ;;  %v2171_v39 = vpop.f32.mrf.mxu0 }
 0x39a   :  { %v2172_v42 = vadd.f32 %v2171_v39, %v5147_v52  ;;  %v2220_v10 = vpop.f32.mrf.mxu1 }
 0x39b   :  { %v2317_v29 = vadd.f32 %v2316_v7, %v2268_v19 }
 0x39c   :  { %v2221_v24 = vadd.f32 %v2220_v10, %v2172_v42 }
 0x39d   :  { %2351 = vst.msk [vmem:[%s5231_s2 + $0xe8] sm:$0xff] %vm2322_vm1, %v2317_v29 }
 0x3a0   :  { %v2269_v54 = vpop.f32.mrf.mxu2 }
 0x3a1   :  { %v2270_v57 = vadd.f32 %v2269_v54, %v2221_v24  ;;  %v2318_v9 = vpop.f32.mrf.mxu3 }
 0x3a3   :  { %v2319_v16 = vadd.f32 %v2318_v9, %v2270_v57 }
 0x3a5   :  { %2353 = vst.msk [vmem:[%s5231_s2 + $0xf8] sm:$0xff] %vm2322_vm1, %v2319_v16 }

</bundles_post_ra>
